<compile_context>
chip_gen: v7x
topology: tpu7x:2x2x1
jax: 0.10.0
libtpu: 0.0.40
codegen_flags: <defaults>
</compile_context>

<pallas_src>
import functools

import jax
import jax.numpy as jnp
from jax.experimental import pallas as pl
from jax.experimental.pallas import tpu as pltpu


def _cheb_conv_kernel(x_ref, att_ref, cheb_ref, theta_ref, out_ref, *,
                      K, T, F_in, F_out, acc_precision):
    # x_ref:     (1, T*F_in, Np)   time/feature-flattened signal, N in lanes
    # att_ref:   (1, Np, Np)       spatial attention for current batch
    # cheb_ref:  (K, Np, Np)       Chebyshev polynomials (grid-invariant)
    # theta_ref: (F_out, K*F_in)   Theta packed as [o, k*F_in + f]
    # out_ref:   (1, T, F_out, Np)
    n_pad = att_ref.shape[-1]
    x2 = x_ref[0]                                # (T*F_in, Np)
    att = att_ref[0]                             # (Np, Np)

    # Lane-concatenated graph operand: m_cat[:, k*Np:(k+1)*Np] = T_k * A_b.
    # The elementwise product stays in the storage dtype (bf16 on the fast
    # path; v5e emulates bf16 VPU mults but this kernel is MXU-bound).
    m_cat = jnp.concatenate([cheb_ref[k] * att for k in range(K)], axis=-1)   # (Np, K*Np)

    # Single fused graph matmul over all K orders:
    #   z_cat[t*F_in+f, k*Np+i] = sum_j x[b,j,f,t] * (T_k*A_b)[j,i]
    z_cat = jnp.dot(x2, m_cat, preferred_element_type=jnp.float32,
                    precision=acc_precision)                                  # (T*F_in, K*Np)

    # Regroup into a (T, K*F_in, Np) stack so the Theta stage is ONE
    # T-batched matmul with joint (k, f) contraction and full Np lane extent.
    z3 = z_cat.reshape(T, F_in, K * n_pad).astype(theta_ref.dtype)
    z_b = jnp.concatenate(
        [z3[:, :, k * n_pad:(k + 1) * n_pad] for k in range(K)], axis=1)      # (T, K*F_in, Np)

    # Theta broadcast exactly once (hoisted), then a single batched matmul.
    th_b = jnp.broadcast_to(theta_ref[...], (T, F_out, K * F_in))
    out = jnp.einsum('tok,tkn->ton', th_b, z_b,
                     preferred_element_type=jnp.float32,
                     precision=acc_precision)                                 # (T, F_out, Np)

    out_ref[0] = jnp.maximum(out, 0.0).astype(out_ref.dtype)


def _vmem_limit_bytes():
    # ~75% of per-core VMEM: ~96 MiB on 128 MiB parts (v5e/v6e), 48 MiB on
    # v7x's 64 MiB parts, per the generation-specific review guidance.
    try:
        cap = pltpu.get_tpu_info().vmem_capacity_bytes
    except Exception:
        cap = 64 * 1024 * 1024
    return max(32 * 1024 * 1024, min(int(cap * 3 // 4), 112 * 1024 * 1024))


def cheb_conv_with_sat(x, spatial_attention, cheb_polynomials, theta,
                       matmul_dtype=jnp.bfloat16):
    """x: (B, N, F_in, T), spatial_attention: (B, N, N),
    cheb_polynomials: (K, N, N), theta: (K, F_in, F_out) -> (B, N, F_out, T)."""
    B, N, F_in, T = x.shape
    K, _, F_out = theta.shape

    # Lane-pad the vertex dimension to a multiple of 128 (zero padding is
    # semantically inert: padded rows/cols of cheb*att and padded x lanes are
    # zero and the padded output lanes are sliced off).
    n_pad = ((N + 127) // 128) * 128
    pad_n = n_pad - N

    # (B, N, F_in, T) -> (B, T, F_in, N) -> (B, T*F_in, Np), N in lanes.
    x_r = jnp.transpose(x, (0, 3, 2, 1)).reshape(B, T * F_in, N)
    x_r = jnp.pad(x_r, ((0, 0), (0, 0), (0, pad_n))).astype(matmul_dtype)

    # Attention and Chebyshev operands ship as matmul_dtype (bf16 by default)
    # to halve HBM DMA / VMEM for the largest non-x operands.
    att_p = jnp.pad(spatial_attention,
                    ((0, 0), (0, pad_n), (0, pad_n))).astype(matmul_dtype)
    cheb_p = jnp.pad(cheb_polynomials,
                     ((0, 0), (0, pad_n), (0, pad_n))).astype(matmul_dtype)

    # Theta packed once as (F_out, K*F_in) with [o, k*F_in + f] = theta[k,f,o].
    theta_all = jnp.transpose(theta, (2, 0, 1)).reshape(F_out, K * F_in)
    theta_all = theta_all.astype(matmul_dtype)

    is_f32 = jnp.dtype(matmul_dtype) == jnp.dtype(jnp.float32)
    acc_precision = (jax.lax.Precision.HIGHEST if is_f32
                     else jax.lax.Precision.DEFAULT)

    kernel = functools.partial(_cheb_conv_kernel, K=K, T=T, F_in=F_in,
                               F_out=F_out, acc_precision=acc_precision)

    def _make_call(single_buffer_invariants):
        if single_buffer_invariants:
            # Grid-invariant operands: constant index_map -> no re-DMA across
            # batches; single-buffer them so VMEM isn't spent on a dead copy.
            cheb_spec = pl.BlockSpec((K, n_pad, n_pad), lambda b: (0, 0, 0),
                                     pipeline_mode=pl.Buffered(buffer_count=1))
            theta_spec = pl.BlockSpec((F_out, K * F_in), lambda b: (0, 0),
                                      pipeline_mode=pl.Buffered(buffer_count=1))
        else:
            cheb_spec = pl.BlockSpec((K, n_pad, n_pad), lambda b: (0, 0, 0))
            theta_spec = pl.BlockSpec((F_out, K * F_in), lambda b: (0, 0))
        return pl.pallas_call(
            kernel,
            out_shape=jax.ShapeDtypeStruct((B, T, F_out, n_pad), x.dtype),
            grid=(B,),
            in_specs=[
                pl.BlockSpec((1, T * F_in, n_pad), lambda b: (b, 0, 0)),
                pl.BlockSpec((1, n_pad, n_pad), lambda b: (b, 0, 0)),
                cheb_spec,
                theta_spec,
            ],
            out_specs=pl.BlockSpec((1, T, F_out, n_pad),
                                   lambda b: (b, 0, 0, 0)),
            compiler_params=pltpu.CompilerParams(
                dimension_semantics=("parallel",),
                vmem_limit_bytes=_vmem_limit_bytes()),
        )

    try:
        out_btop = _make_call(True)(x_r, att_p, cheb_p, theta_all)
    except Exception:
        # Fallback: identical kernel with default double-buffering if this
        # JAX build rejects pipeline_mode=pl.Buffered(1).
        out_btop = _make_call(False)(x_r, att_p, cheb_p, theta_all)

    # (B, T, F_out, Np) -> (B, N, F_out, T); slice before transposing so the
    # transpose moves N, not n_pad, worth of data.
    return jnp.transpose(out_btop[:, :, :, :N], (0, 3, 2, 1))


def cheb_conv_with_sat_ref(x, spatial_attention, cheb_polynomials, theta):
    """Pure-JAX reference mirroring the PyTorch loop structure."""
    B, N, F_in, T = x.shape
    K, _, F_out = theta.shape
    outs = []
    for t in range(T):
        gs = x[:, :, :, t]                                  # (B, N, F_in)
        out = jnp.zeros((B, N, F_out), dtype=x.dtype)
        for k in range(K):
            t_k_with_at = cheb_polynomials[k][None] * spatial_attention
            rhs = jnp.einsum('bji,bjf->bif', t_k_with_at, gs)
            out = out + rhs @ theta[k]
        outs.append(out[..., None])
    return jax.nn.relu(jnp.concatenate(outs, axis=-1))


if __name__ == "__main__":
    B, N, F_in, F_out, T, K = 2, 16, 4, 8, 8, 3

    key = jax.random.PRNGKey(0)
    k_adj, k_theta, k_x, k_att = jax.random.split(key, 4)

    # Deterministic Chebyshev polynomials from a synthetic symmetric graph
    # (eig-free: Gershgorin bound for lambda_max of the Laplacian).
    adj = jax.random.uniform(k_adj, (N, N))
    adj = ((adj + adj.T) > 1.0).astype(jnp.float32)
    adj = adj * (1.0 - jnp.eye(N, dtype=jnp.float32))
    deg = adj.sum(axis=1)
    lap = jnp.diag(deg) - adj
    lam_max = 2.0 * jnp.max(deg) + 1e-6
    l_tilde = (2.0 / lam_max) * lap - jnp.eye(N, dtype=jnp.float32)
    cheb_list = [jnp.eye(N, dtype=jnp.float32), l_tilde]
    for _ in range(2, K):
        cheb_list.append(2.0 * l_tilde @ cheb_list[-1] - cheb_list[-2])
    cheb = jnp.stack(cheb_list[:K]).astype(jnp.float32)       # (K, N, N)

    # Theta parameters (K, F_in, F_out), deterministic init.
    theta = 0.1 * jax.random.normal(k_theta, (K, F_in, F_out), dtype=jnp.float32)

    # Inputs.
    x = jax.random.normal(k_x, (B, N, F_in, T), dtype=jnp.float32)
    spatial_attention = jax.nn.softmax(
        jax.random.normal(k_att, (B, N, N), dtype=jnp.float32), axis=-1)

    ref = cheb_conv_with_sat_ref(x, spatial_attention, cheb, theta)

    # f32 matmul path (precision=HIGHEST): must match the reference tightly.
    out_f32 = cheb_conv_with_sat(x, spatial_attention, cheb, theta,
                                 matmul_dtype=jnp.float32)
    out_f32 = jax.block_until_ready(out_f32)
    assert out_f32.shape == (B, N, F_out, T)
    assert jnp.allclose(out_f32, ref, rtol=1e-4, atol=1e-5), "f32 mismatch vs reference"

    # bf16 matmul path (default, MXU/DMA-friendly): relaxed tolerance.
    out = cheb_conv_with_sat(x, spatial_attention, cheb, theta)
    out = jax.block_until_ready(out)
    assert out.shape == (B, N, F_out, T)
    assert jnp.allclose(out, ref, rtol=3e-2, atol=2e-2), "bf16 mismatch vs reference"

    print("KERNEL_OK")
</pallas_src>

<mosaic_0001>
module attributes {stable_mosaic.version = 11 : i64} {
  func.func @_cheb_conv_kernel(%arg0: i32, %arg1: memref<1x32x128xf32, #tpu.memory_space<vmem>>, %arg2: memref<1x128x128xf32, #tpu.memory_space<vmem>>, %arg3: memref<3x128x128xf32, #tpu.memory_space<vmem>>, %arg4: memref<8x12xf32, #tpu.memory_space<vmem>>, %arg5: memref<1x8x8x128xf32, #tpu.memory_space<vmem>>) attributes {dimension_semantics = [#tpu.dimension_semantics<parallel>], iteration_bounds = array<i64: 2>, scalar_prefetch = 0 : i64, scratch_operands = 0 : i64, tpu.core_type = #tpu.core_type<tc>, window_params = [{transform_indices = @transform_0, window_bounds = array<i64: 1, 32, 128>}, {transform_indices = @transform_1, window_bounds = array<i64: 1, 128, 128>}, {pipeline_mode = #tpu.pipeline_mode<synchronous>, transform_indices = @transform_2, window_bounds = array<i64: 3, 128, 128>}, {pipeline_mode = #tpu.pipeline_mode<synchronous>, transform_indices = @transform_3, window_bounds = array<i64: 8, 12>}, {transform_indices = @transform_4, window_bounds = array<i64: 1, 8, 8, 128>}]} {
    %c0 = arith.constant 0 : index
    %c0_0 = arith.constant 0 : index
    %c0_1 = arith.constant 0 : index
    %0 = vector.load %arg1[%c0, %c0_0, %c0_1] : memref<1x32x128xf32, #tpu.memory_space<vmem>>, vector<1x32x128xf32>
    %1 = vector.shape_cast %0 : vector<1x32x128xf32> to vector<32x128xf32>
    %c0_2 = arith.constant 0 : index
    %c0_3 = arith.constant 0 : index
    %c0_4 = arith.constant 0 : index
    %2 = vector.load %arg2[%c0_2, %c0_3, %c0_4] : memref<1x128x128xf32, #tpu.memory_space<vmem>>, vector<1x128x128xf32>
    %3 = vector.shape_cast %2 : vector<1x128x128xf32> to vector<128x128xf32>
    %c0_5 = arith.constant 0 : index
    %c0_6 = arith.constant 0 : index
    %c0_7 = arith.constant 0 : index
    %4 = vector.load %arg3[%c0_5, %c0_6, %c0_7] : memref<3x128x128xf32, #tpu.memory_space<vmem>>, vector<1x128x128xf32>
    %5 = vector.shape_cast %4 : vector<1x128x128xf32> to vector<128x128xf32>
    %6 = arith.mulf %5, %3 : vector<128x128xf32>
    %c1 = arith.constant 1 : index
    %c0_8 = arith.constant 0 : index
    %c0_9 = arith.constant 0 : index
    %7 = vector.load %arg3[%c1, %c0_8, %c0_9] : memref<3x128x128xf32, #tpu.memory_space<vmem>>, vector<1x128x128xf32>
    %8 = vector.shape_cast %7 : vector<1x128x128xf32> to vector<128x128xf32>
    %9 = arith.mulf %8, %3 : vector<128x128xf32>
    %c2 = arith.constant 2 : index
    %c0_10 = arith.constant 0 : index
    %c0_11 = arith.constant 0 : index
    %10 = vector.load %arg3[%c2, %c0_10, %c0_11] : memref<3x128x128xf32, #tpu.memory_space<vmem>>, vector<1x128x128xf32>
    %11 = vector.shape_cast %10 : vector<1x128x128xf32> to vector<128x128xf32>
    %12 = arith.mulf %11, %3 : vector<128x128xf32>
    %13 = tpu.concatenate %6, %9, %12 in 1 : vector<128x128xf32>, vector<128x128xf32>, vector<128x128xf32> -> vector<128x384xf32>
    %cst = arith.constant dense<0.000000e+00> : vector<32x384xf32>
    %14 = tpu.matmul %1, %13, %cst {dimension_numbers = #tpu.dot_dimension_numbers<[1], [0], [0], [1], [0, 0, 1, 1], [], []>, precision = #tpu.contract_precision<fp32>} : vector<32x128xf32>, vector<128x384xf32>, vector<32x384xf32> -> vector<32x384xf32>
    %15 = vector.shape_cast %14 : vector<32x384xf32> to vector<8x4x384xf32>
    %16 = vector.extract_strided_slice %15 {offsets = [0, 0, 0], sizes = [8, 4, 128], strides = [1, 1, 1]} : vector<8x4x384xf32> to vector<8x4x128xf32>
    %17 = vector.extract_strided_slice %15 {offsets = [0, 0, 128], sizes = [8, 4, 128], strides = [1, 1, 1]} : vector<8x4x384xf32> to vector<8x4x128xf32>
    %18 = vector.extract_strided_slice %15 {offsets = [0, 0, 256], sizes = [8, 4, 128], strides = [1, 1, 1]} : vector<8x4x384xf32> to vector<8x4x128xf32>
    %19 = tpu.concatenate %16, %17, %18 in 1 : vector<8x4x128xf32>, vector<8x4x128xf32>, vector<8x4x128xf32> -> vector<8x12x128xf32>
    %c0_12 = arith.constant 0 : index
    %c0_13 = arith.constant 0 : index
    %20 = vector.load %arg4[%c0_12, %c0_13] : memref<8x12xf32, #tpu.memory_space<vmem>>, vector<8x12xf32>
    %21 = vector.shape_cast %20 : vector<8x12xf32> to vector<1x8x12xf32>
    %22 = vector.broadcast %21 : vector<1x8x12xf32> to vector<8x8x12xf32>
    "tpu.trace_start"() <{level = 10 : i32, message = "tok,tkn->ton"}> : () -> ()
    %cst_14 = arith.constant dense<0.000000e+00> : vector<8x8x128xf32>
    %23 = tpu.matmul %22, %19, %cst_14 {dimension_numbers = #tpu.dot_dimension_numbers<[2], [1], [1], [2], [0, 0, 0, 1, 1, 2], [0], [0]>, precision = #tpu.contract_precision<fp32>} : vector<8x8x12xf32>, vector<8x12x128xf32>, vector<8x8x128xf32> -> vector<8x8x128xf32>
    "tpu.trace_stop"() : () -> ()
    %cst_15 = arith.constant 0.000000e+00 : f32
    %24 = vector.broadcast %cst_15 : f32 to vector<8x8x128xf32>
    %25 = arith.maximumf %23, %24 : vector<8x8x128xf32>
    %c0_16 = arith.constant 0 : index
    %c0_17 = arith.constant 0 : index
    %c0_18 = arith.constant 0 : index
    %c0_19 = arith.constant 0 : index
    %26 = vector.load %arg5[%c0_16, %c0_17, %c0_18, %c0_19] : memref<1x8x8x128xf32, #tpu.memory_space<vmem>>, vector<1x8x8x128xf32>
    %27 = vector.shape_cast %26 : vector<1x8x8x128xf32> to vector<8x8x128xf32>
    %28 = vector.shape_cast %25 : vector<8x8x128xf32> to vector<1x8x8x128xf32>
    tpu.vector_store %arg5[%c0_16, %c0_17, %c0_18, %c0_19], %28 {strides = array<i32>} : memref<1x8x8x128xf32, #tpu.memory_space<vmem>>, vector<1x8x8x128xf32>,
    return
  }
  func.func @transform_0(%arg0: i32) -> (i32, i32, i32) {
    %c0_i32 = arith.constant 0 : i32
    %c0_i32_0 = arith.constant 0 : i32
    %c0_i32_1 = arith.constant 0 : i32
    return %arg0, %c0_i32, %c0_i32_0 : i32, i32, i32
  }
  func.func @transform_1(%arg0: i32) -> (i32, i32, i32) {
    %c0_i32 = arith.constant 0 : i32
    %c0_i32_0 = arith.constant 0 : i32
    %c0_i32_1 = arith.constant 0 : i32
    return %arg0, %c0_i32, %c0_i32_0 : i32, i32, i32
  }
  func.func @transform_2(%arg0: i32) -> (i32, i32, i32) {
    %c0_i32 = arith.constant 0 : i32
    %c0_i32_0 = arith.constant 0 : i32
    %c0_i32_1 = arith.constant 0 : i32
    %c0_i32_2 = arith.constant 0 : i32
    return %c0_i32, %c0_i32_0, %c0_i32_1 : i32, i32, i32
  }
  func.func @transform_3(%arg0: i32) -> (i32, i32) {
    %c0_i32 = arith.constant 0 : i32
    %c0_i32_0 = arith.constant 0 : i32
    %c0_i32_1 = arith.constant 0 : i32
    return %c0_i32, %c0_i32_0 : i32, i32
  }
  func.func @transform_4(%arg0: i32) -> (i32, i32, i32, i32) {
    %c0_i32 = arith.constant 0 : i32
    %c0_i32_0 = arith.constant 0 : i32
    %c0_i32_1 = arith.constant 0 : i32
    %c0_i32_2 = arith.constant 0 : i32
    return %arg0, %c0_i32, %c0_i32_0, %c0_i32_1 : i32, i32, i32, i32
  }
}

module attributes {stable_mosaic.version = 11 : i64} {
  func.func @_cheb_conv_kernel(%arg0: i32, %arg1: memref<1x32x128xf32, #tpu.memory_space<vmem>>, %arg2: memref<1x128x128xf32, #tpu.memory_space<vmem>>, %arg3: memref<3x128x128xf32, #tpu.memory_space<vmem>>, %arg4: memref<8x12xf32, #tpu.memory_space<vmem>>, %arg5: memref<1x8x8x128xf32, #tpu.memory_space<vmem>>) attributes {dimension_semantics = [#tpu.dimension_semantics<parallel>], iteration_bounds = array<i64: 2>, scalar_prefetch = 0 : i64, scratch_operands = 0 : i64, tpu.core_type = #tpu.core_type<tc>, window_params = [{transform_indices = @transform_0, window_bounds = array<i64: 1, 32, 128>}, {transform_indices = @transform_1, window_bounds = array<i64: 1, 128, 128>}, {pipeline_mode = #tpu.pipeline_mode<synchronous>, transform_indices = @transform_2, window_bounds = array<i64: 3, 128, 128>}, {pipeline_mode = #tpu.pipeline_mode<synchronous>, transform_indices = @transform_3, window_bounds = array<i64: 8, 12>}, {transform_indices = @transform_4, window_bounds = array<i64: 1, 8, 8, 128>}]} {
    %c0 = arith.constant 0 : index
    %c0_0 = arith.constant 0 : index
    %c0_1 = arith.constant 0 : index
    %0 = vector.load %arg1[%c0, %c0_0, %c0_1] : memref<1x32x128xf32, #tpu.memory_space<vmem>>, vector<1x32x128xf32>
    %1 = vector.shape_cast %0 : vector<1x32x128xf32> to vector<32x128xf32>
    %c0_2 = arith.constant 0 : index
    %c0_3 = arith.constant 0 : index
    %c0_4 = arith.constant 0 : index
    %2 = vector.load %arg2[%c0_2, %c0_3, %c0_4] : memref<1x128x128xf32, #tpu.memory_space<vmem>>, vector<1x128x128xf32>
    %3 = vector.shape_cast %2 : vector<1x128x128xf32> to vector<128x128xf32>
    %c0_5 = arith.constant 0 : index
    %c0_6 = arith.constant 0 : index
    %c0_7 = arith.constant 0 : index
    %4 = vector.load %arg3[%c0_5, %c0_6, %c0_7] : memref<3x128x128xf32, #tpu.memory_space<vmem>>, vector<1x128x128xf32>
    %5 = vector.shape_cast %4 : vector<1x128x128xf32> to vector<128x128xf32>
    %6 = arith.mulf %5, %3 : vector<128x128xf32>
    %c1 = arith.constant 1 : index
    %c0_8 = arith.constant 0 : index
    %c0_9 = arith.constant 0 : index
    %7 = vector.load %arg3[%c1, %c0_8, %c0_9] : memref<3x128x128xf32, #tpu.memory_space<vmem>>, vector<1x128x128xf32>
    %8 = vector.shape_cast %7 : vector<1x128x128xf32> to vector<128x128xf32>
    %9 = arith.mulf %8, %3 : vector<128x128xf32>
    %c2 = arith.constant 2 : index
    %c0_10 = arith.constant 0 : index
    %c0_11 = arith.constant 0 : index
    %10 = vector.load %arg3[%c2, %c0_10, %c0_11] : memref<3x128x128xf32, #tpu.memory_space<vmem>>, vector<1x128x128xf32>
    %11 = vector.shape_cast %10 : vector<1x128x128xf32> to vector<128x128xf32>
    %12 = arith.mulf %11, %3 : vector<128x128xf32>
    %13 = tpu.concatenate %6, %9, %12 in 1 : vector<128x128xf32>, vector<128x128xf32>, vector<128x128xf32> -> vector<128x384xf32>
    %cst = arith.constant dense<0.000000e+00> : vector<32x384xf32>
    %14 = tpu.matmul %1, %13, %cst {dimension_numbers = #tpu.dot_dimension_numbers<[1], [0], [0], [1], [0, 0, 1, 1], [], []>, precision = #tpu.contract_precision<fp32>} : vector<32x128xf32>, vector<128x384xf32>, vector<32x384xf32> -> vector<32x384xf32>
    %15 = vector.shape_cast %14 : vector<32x384xf32> to vector<8x4x384xf32>
    %16 = vector.extract_strided_slice %15 {offsets = [0, 0, 0], sizes = [8, 4, 128], strides = [1, 1, 1]} : vector<8x4x384xf32> to vector<8x4x128xf32>
    %17 = vector.extract_strided_slice %15 {offsets = [0, 0, 128], sizes = [8, 4, 128], strides = [1, 1, 1]} : vector<8x4x384xf32> to vector<8x4x128xf32>
    %18 = vector.extract_strided_slice %15 {offsets = [0, 0, 256], sizes = [8, 4, 128], strides = [1, 1, 1]} : vector<8x4x384xf32> to vector<8x4x128xf32>
    %19 = tpu.concatenate %16, %17, %18 in 1 : vector<8x4x128xf32>, vector<8x4x128xf32>, vector<8x4x128xf32> -> vector<8x12x128xf32>
    %c0_12 = arith.constant 0 : index
    %c0_13 = arith.constant 0 : index
    %20 = vector.load %arg4[%c0_12, %c0_13] : memref<8x12xf32, #tpu.memory_space<vmem>>, vector<8x12xf32>
    %21 = vector.shape_cast %20 : vector<8x12xf32> to vector<1x8x12xf32>
    %22 = vector.broadcast %21 : vector<1x8x12xf32> to vector<8x8x12xf32>
    "tpu.trace_start"() <{level = 10 : i32, message = "tok,tkn->ton"}> : () -> ()
    %cst_14 = arith.constant dense<0.000000e+00> : vector<8x8x128xf32>
    %23 = tpu.matmul %22, %19, %cst_14 {dimension_numbers = #tpu.dot_dimension_numbers<[2], [1], [1], [2], [0, 0, 0, 1, 1, 2], [0], [0]>, precision = #tpu.contract_precision<fp32>} : vector<8x8x12xf32>, vector<8x12x128xf32>, vector<8x8x128xf32> -> vector<8x8x128xf32>
    "tpu.trace_stop"() : () -> ()
    %cst_15 = arith.constant 0.000000e+00 : f32
    %24 = vector.broadcast %cst_15 : f32 to vector<8x8x128xf32>
    %25 = arith.maximumf %23, %24 : vector<8x8x128xf32>
    %c0_16 = arith.constant 0 : index
    %c0_17 = arith.constant 0 : index
    %c0_18 = arith.constant 0 : index
    %c0_19 = arith.constant 0 : index
    %26 = vector.load %arg5[%c0_16, %c0_17, %c0_18, %c0_19] : memref<1x8x8x128xf32, #tpu.memory_space<vmem>>, vector<1x8x8x128xf32>
    %27 = vector.shape_cast %26 : vector<1x8x8x128xf32> to vector<8x8x128xf32>
    %28 = vector.shape_cast %25 : vector<8x8x128xf32> to vector<1x8x8x128xf32>
    tpu.vector_store %arg5[%c0_16, %c0_17, %c0_18, %c0_19], %28 {strides = array<i32>} : memref<1x8x8x128xf32, #tpu.memory_space<vmem>>, vector<1x8x8x128xf32>,
    return
  }
  func.func @transform_0(%arg0: i32) -> (i32, i32, i32) {
    %c0_i32 = arith.constant 0 : i32
    %c0_i32_0 = arith.constant 0 : i32
    %c0_i32_1 = arith.constant 0 : i32
    return %arg0, %c0_i32, %c0_i32_0 : i32, i32, i32
  }
  func.func @transform_1(%arg0: i32) -> (i32, i32, i32) {
    %c0_i32 = arith.constant 0 : i32
    %c0_i32_0 = arith.constant 0 : i32
    %c0_i32_1 = arith.constant 0 : i32
    return %arg0, %c0_i32, %c0_i32_0 : i32, i32, i32
  }
  func.func @transform_2(%arg0: i32) -> (i32, i32, i32) {
    %c0_i32 = arith.constant 0 : i32
    %c0_i32_0 = arith.constant 0 : i32
    %c0_i32_1 = arith.constant 0 : i32
    %c0_i32_2 = arith.constant 0 : i32
    return %c0_i32, %c0_i32_0, %c0_i32_1 : i32, i32, i32
  }
  func.func @transform_3(%arg0: i32) -> (i32, i32) {
    %c0_i32 = arith.constant 0 : i32
    %c0_i32_0 = arith.constant 0 : i32
    %c0_i32_1 = arith.constant 0 : i32
    return %c0_i32, %c0_i32_0 : i32, i32
  }
  func.func @transform_4(%arg0: i32) -> (i32, i32, i32, i32) {
    %c0_i32 = arith.constant 0 : i32
    %c0_i32_0 = arith.constant 0 : i32
    %c0_i32_1 = arith.constant 0 : i32
    %c0_i32_2 = arith.constant 0 : i32
    return %arg0, %c0_i32, %c0_i32_0, %c0_i32_1 : i32, i32, i32, i32
  }
}

</mosaic_0001>

<bundles_post_ra>
// kernel: tpu_custom_call.1
= control target key start
LH: loop header
LB: loop body
LE: loop exit
PB: predicated region body
PF: predicated region fallthrough
CT: control target
= control target key end

     0   :  { %s9466_s0 = inlined_call_operand.hbm [shape: f32[2,32,128], index: 0, kind: input, shape index: {}]   ;;  %s9467_s1 = inlined_call_operand.hbm [shape: f32[2,128,128], index: 1, kind: input, shape index: {}]   ;;  %s9468_s2 = inlined_call_operand.hbm [shape: f32[3,128,128], index: 2, kind: input, shape index: {}]   ;;  %s9469_s3 = inlined_call_operand.vmem [shape: f32[8,12], index: 3, kind: input, shape index: {}]   ;;  %s9470_s4 = inlined_call_operand.hbm [shape: f32[2,8,8,128], index: 4, kind: output, shape index: {}]  }
   0x1   :  { %9639 = sst [smem:[#allocation60_spill]] %s9466_s0 }
   0x2   :  { %9640 = sst [smem:[#allocation61_spill]] %s9468_s2 }
   0x3   :  { %9 = vsyncpa [#allocation3], 0 }
   0x4   :  { %11 = vsyncpa [#allocation3 + $0x1], 0 }
   0x5   :  { %12 = vsyncpa [#allocation6], 0 }
   0x6   :  { %14 = vsyncpa [#allocation6 + $0x1], 0 }
   0x7   :  { %15 = vsyncpa [#allocation4], 0 }
   0x8   :  { %17 = vsyncpa [#allocation4 + $0x1], 0  ;;  %s7808_s15 = smov 0   ;;  %s7810_s16 = smov 0  }
   0x9   :  { %s7812_s17 = smov 0   ;;  %s7814_s18 = smov 0  }
   0xa LB: > { %s7829_s19 = sadd.s32 4294967295, %s7770_s18   ;;  %s6021_s20 = sadd.s32 4294967294, %s7770_s18   ;;  %s7770_s18 = sphi %s7814_s18, %s9833_s18   ;;  %s7766_s17 = sphi %s7812_s17, %s9832_s17   ;;  %s7762_s16 = sphi %s7810_s16, %s9831_s16   ;;  %s7758_s15 = sphi %s7808_s15, %s9830_s15  }
   0xb   : > { %p43_p0 = scmp.ne.s32.totalorder %s7762_s16, %s7758_s15  ;;  %p9471_p1 = scmp.eq.s32.totalorder %s7829_s19, 0 }
   0xc   : > { %p141_p3 = scmp.eq.s32.totalorder %s6021_s20, 1  ;;  %p6022_p5 = scmp.ge.s32.totalorder %s7770_s18, 1 }
   0xd   : > { %p7838_p4 = por %p9471_p1, %p43_p0  ;;  %p148_p7 = scmp.lt.s32.totalorder %s7770_s18, 3 }
   0xe   : > { %p7843_p6 = por %p141_p3, %p43_p0  ;;  %s7772_s24 = smov [#allocation7]  }
   0xf   : > { %s9641_s21 = scalar_select %p7838_p4, 1, 0 }
  0x10   : > { %s9642_s22 = scalar_select %p7843_p6, 1, 0 }
  0x11   : > { %p7848_p8 = pnand %p6022_p5, %p148_p7  ;;  %s160_s25 = sshll.u32 %s7772_s24, 4  ;;  %s7852_s25 = int_to_ptr.vmem [resolvable:$true] %s160_s25 }
  0x12   : > { %s7864_s27 = sadd.s32 1, %s7770_s18   ;;  %s30_s28 = sadd.s32 1, %s7766_s17 }
  0x13   : > { %s9643_s23 = scalar_select %p7848_p8, 1, 0 }
  0x14   : > { %p7549_p9 = pneg %p7848_p8  ;;  %s27_s29 = ssub.s32 %s7770_s18, %s7864_s27 }
  0x15   : > { %s9645_s2 = sld [smem:[#allocation61_spill]] }
  0x16   : > { %p7859_p11 = pnand %p7549_p9, %p9471_p1 }
  0x18   : > { %p7610_p13 = pneg %p7859_p11 }
  0x1b   : > { %s7608_s6 = scalar_lea.hbm %s9645_s2, 6144 }
  0x1c   : > { %p7609_p12 = scmp.ne.s32.totalorder %s9645_s2, %s7608_s6  ;;  %p7615_p5 = scmp.lt.u32.totalorder %s7608_s6, %s9645_s2 }
  0x1e   : > { %p7611_p0 = pnand %p7610_p13, %p7609_p12 }
  0x20   : > { %p7612_p3 = pneg %p7611_p0 }
  0x22   : > { %p7617_p7 = pnand %p7615_p5, %p7612_p3 }
  0x24   : > { %7620 = shalt.err (!%p7617_p7)
}
  0x25   : > { %s7621_s11 = scalar_lea.vmem %s7852_s25, 6144  ;;  %p7629_p2 = scmp.lt.s32.totalorder %s7852_s25, %s7852_s25 }
  0x26   : > { %p7622_p9 = scmp.ne.s32.totalorder %s7852_s25, %s7621_s11  ;;  %p7630_p6 = scmp.lt.s32.totalorder %s7621_s11, %s7621_s11 }
  0x28   : > { %p7624_p10 = pnand %p7622_p9, %p7610_p13  ;;  %p7631_p4 = por %p7630_p6, %p7629_p2 }
  0x2a   : > { %p7625_p1 = pneg %p7624_p10 }
  0x2c   : > { %p7632_p8 = pnand %p7631_p4, %p7625_p1 }
  0x2e   : > { %7635 = shalt.err (!%p7632_p8)
}
  0x2f   : > { %s7773_s12 = smov 128   ;;  %s7774_s13 = smov 8  }
  0x30   : > { %7552 = dma.hbm_to_vmem [thread:$0]  (!%p7859_p11), %s9645_s2, 6144, %s7852_s25, [#allocation6], %s7773_s12, %s7773_s12, %s7774_s13  }
  0x31   : > { %p28_p1 = scmp.eq.s32.totalorder %s27_s29, 0  ;;  %p37_p2 = scmp.ne.s32.totalorder %s7766_s17, %s7762_s16 }
  0x32   : > { %p38_p4 = scmp.eq.s32.totalorder %s7770_s18, 0  ;;  %p7565_p6 = scmp.lt.s32.totalorder %s7770_s18, 2 }
  0x33   : > { %s7898_s24 = scalar_select %p28_p1, %s7766_s17, %s30_s28  }
  0x34   : > { %p39_p8 = por %p38_p4, %p37_p2  ;;  %p9646_p10 = scmp.eq.s32.totalorder %s7829_s19, 1 }
  0x35   : > { %s7907_s26 = sand.u32 1, %s7766_s17   ;;  %s6041_s5 = sshll.u32 %s7770_s18, 9 }
  0x36   : > { %p7902_p12 = por %p9646_p10, %p37_p2  ;;  %s6025_s6 = sshll.u32 %s7907_s26, 5 }
  0x37   : > { %s9648_s0 = sld [smem:[#allocation60_spill]]  ;;  %s181_s28 = scalar_lea.vmem [#allocation2], %s6025_s6 }
  0x38   : > { %s188_s8 = sshll.u32 %s181_s28, 4  ;;  %p7916_p11 = pnand %p7565_p6, %p39_p8  ;;  %s7920_s8 = int_to_ptr.vmem [resolvable:$true] %s188_s8 }
  0x39   : > { %s198_s10 = sand.u32 1, %s7770_s18   ;;  %s178_s11 = scalar_lea.sflag [#allocation3], %s7907_s26 }
  0x3a   : > { %p7638_p0 = pneg %p7916_p11 }
  0x3d   : > { %s7914_s29 = scalar_lea.hbm %s9648_s0, %s6041_s5  ;;  %s7641_s6 = scalar_lea.hbm %s9648_s0, 1024 }
  0x3e   : > { %s7636_s14 = scalar_lea.hbm %s7914_s29, 512  ;;  %p7642_p7 = scmp.lt.u32.totalorder %s7914_s29, %s9648_s0 }
  0x3f   : > { %p7637_p13 = scmp.ne.s32.totalorder %s7914_s29, %s7636_s14  ;;  %p7643_p9 = scmp.lt.u32.totalorder %s7641_s6, %s7636_s14 }
  0x40   : > { %p7645_p2 = scmp.lt.u32.totalorder %s7636_s14, %s7914_s29 }
  0x41   : > { %p7639_p3 = pnand %p7638_p0, %p7637_p13  ;;  %p7644_p1 = por %p7643_p9, %p7642_p7 }
  0x43   : > { %p7640_p5 = pneg %p7639_p3  ;;  %p7646_p4 = por %p7645_p2, %p7644_p1 }
  0x45   : > { %p7647_p6 = pnand %p7646_p4, %p7640_p5 }
  0x47   : > { %7650 = shalt.err (!%p7647_p6)
}
  0x48   : > { %s7651_s28 = scalar_lea.vmem %s7920_s8, 512  ;;  %s7775_s20 = smov [#allocation2]  }
  0x49   : > { %p7652_p8 = scmp.ne.s32.totalorder %s7920_s8, %s7651_s28  ;;  %s7656_s5 = sshll.u32 %s7775_s20, 4  ;;  %s7657_s5 = int_to_ptr.vmem [resolvable:$false] %s7656_s5 }
  0x4a   : > { %s7658_s25 = scalar_lea.vmem %s7657_s5, 1024  ;;  %p7659_p3 = scmp.lt.s32.totalorder %s7920_s8, %s7657_s5 }
  0x4b   : > { %p7654_p10 = pnand %p7652_p8, %p7638_p0  ;;  %p7660_p7 = scmp.lt.s32.totalorder %s7658_s25, %s7651_s28 }
  0x4d   : > { %p7655_p13 = pneg %p7654_p10  ;;  %p7661_p9 = por %p7660_p7, %p7659_p3 }
  0x4f   : > { %p7662_p1 = pnand %p7661_p9, %p7655_p13 }
  0x51   : > { %7665 = shalt.err (!%p7662_p1)
}
  0x52   : > { %7556 = dma.hbm_to_vmem [thread:$0]  (!%p7916_p11), %s7914_s29, 512, %s7920_s8, %s178_s11, %s7773_s12, %s7773_s12, %s7774_s13  }
  0x53   : > { %s6028_s14 = sshll.u32 %s7907_s26, 7  ;;  %s6042_s6 = sshll.u32 %s7770_s18, 11 }
  0x54   : > { %s7959_s20 = scalar_lea.hbm %s9467_s1, %s6042_s6  ;;  %s202_s5 = scalar_lea.vmem [#allocation5], %s6028_s14 }
  0x55   : > { %s209_s25 = sshll.u32 %s202_s5, 4  ;;  %s7965_s0 = scalar_lea.sflag [#allocation6], %s198_s10  ;;  %s7961_s25 = int_to_ptr.vmem [resolvable:$true] %s209_s25 }
  0x56   : > { %s7666_s2 = scalar_lea.hbm %s7959_s20, 2048  ;;  %s7671_s8 = scalar_lea.hbm %s9467_s1, 4096 }
  0x57   : > { %p7667_p5 = scmp.ne.s32.totalorder %s7959_s20, %s7666_s2  ;;  %p7672_p6 = scmp.lt.u32.totalorder %s7959_s20, %s9467_s1 }
  0x58   : > { %p7673_p8 = scmp.lt.u32.totalorder %s7671_s8, %s7666_s2  ;;  %p7675_p13 = scmp.lt.u32.totalorder %s7666_s2, %s7959_s20 }
  0x59   : > { %p7669_p2 = pnand %p7667_p5, %p7638_p0 }
  0x5a   : > { %p7674_p10 = por %p7673_p8, %p7672_p6 }
  0x5b   : > { %p7670_p4 = pneg %p7669_p2 }
  0x5c   : > { %p7676_p3 = por %p7675_p13, %p7674_p10 }
  0x5e   : > { %p7677_p7 = pnand %p7676_p3, %p7670_p4 }
  0x60   : > { %7680 = shalt.err (!%p7677_p7)
}
  0x61   : > { %s7681_s10 = scalar_lea.vmem %s7961_s25, 2048  ;;  %s7776_s14 = smov [#allocation5]  }
  0x62   : > { %p7682_p9 = scmp.ne.s32.totalorder %s7961_s25, %s7681_s10  ;;  %s7686_s7 = sshll.u32 %s7776_s14, 4  ;;  %s7687_s7 = int_to_ptr.vmem [resolvable:$false] %s7686_s7 }
  0x63   : > { %s7688_s28 = scalar_lea.vmem %s7687_s7, 4096  ;;  %p7689_p2 = scmp.lt.s32.totalorder %s7961_s25, %s7687_s7 }
  0x64   : > { %p7684_p1 = pnand %p7682_p9, %p7638_p0  ;;  %p7690_p6 = scmp.lt.s32.totalorder %s7688_s28, %s7681_s10 }
  0x66   : > { %p7685_p5 = pneg %p7684_p1  ;;  %p7691_p8 = por %p7690_p6, %p7689_p2 }
  0x68   : > { %p7692_p10 = pnand %p7691_p8, %p7685_p5 }
  0x6a   : > { %7695 = shalt.err (!%p7692_p10)
}
  0x6b   : > { %7559 = dma.hbm_to_vmem [thread:$0]  (!%p7916_p11), %s7959_s20, 2048, %s7961_s25, %s7965_s0, %s7773_s12, %s7773_s12, %s7774_s13  }
  0x6c   : > { %p9650_p0 = scmp.ne.s32.totalorder %s9643_s23, 0 }
  0x6e   : > { %221 = sbr.rel (%p9650_p0) target bundleno = 999 (0x3e7), region = 36 }
  0x75   : > { %s7997_s2 = sand.u32 1, %s7762_s16   ;;  %p9651_p4 = scmp.ne.s32.totalorder %s9641_s21, 0 }
  0x76   : > { %s6032_s5 = sshll.u32 %s7997_s2, 5  ;;  %s224_s26 = scalar_lea.sflag [#allocation3], %s7997_s2 }
  0x77   : > { %s8001_s29 = scalar_lea.vmem [#allocation2], %s6032_s5 }
  0x78   : > { %7741 = dma.done.wait (%p9651_p4), %s224_s26, 512  }
  0x79   : > { %7743 = vsyncadd (%p9651_p4), %s224_s26, 4294966784  ;;  %s232_s0 = sand.u32 1, %s7829_s19   ;;  %s6033_s23 = sshll.u32 %s7997_s2, 7 }
  0x7a   : > { %s233_s12 = scalar_lea.sflag [#allocation6], %s232_s0  ;;  %s8009_s13 = scalar_lea.vmem [#allocation5], %s6033_s23 }
  0x7b   : > { %7745 = dma.done.wait (%p9651_p4), %s233_s12, 2048  }
  0x7c   : > { %7747 = vsyncadd (%p9651_p4), %s233_s12, 4294965248  ;;  %p9652_p11 = scmp.eq.s32.totalorder %s7829_s19, 0 }
  0x7e   : > { %7749 = dma.done.wait (%p9652_p11), [#allocation6], 6144   ;;  %p9653_p13 = pmov %p9652_p11 }
  0x7f   : > { %v9478_v0 = vmov 0.0   ;;  %v274_v1 = vld [vmem:[%s8009_s13] sm:$0xff]  ;;  %v275_v2 = vld [vmem:[%s8009_s13 + $0x8] sm:$0xff]  ;;  %v276_v13 = vld [vmem:[%s8009_s13 + $0x10] sm:$0xff]  ;;  %vm7779_vm0 = vmmov 0   ;;  %vm2193_vm1 = vcmask 97280  }
  0x80   : > { %7751 = vsyncadd (%p9653_p13), [#allocation6], 4294961152  ;;  %484 = vmatprep.mubr.f32.mxu0 %v9478_v0  ;;  %v323_v3 = vld [vmem:[#allocation7 + $0x80] sm:$0xff]  ;;  %v324_v4 = vld [vmem:[#allocation7 + $0x88] sm:$0xff]  ;;  %vm2197_vm2 = vcmask 1043456   ;;  %s6035_s20 = sshll.u32 %s7997_s2, 6 }
  0x81   : > { %v339_v5 = vmul.f32 %v323_v3, %v274_v1  ;;  %v356_v6 = vld [vmem:[#allocation7 + $0x100] sm:$0xff]  ;;  %v357_v7 = vld [vmem:[#allocation7 + $0x108] sm:$0xff]  ;;  %v340_v8 = vmul.f32 %v324_v4, %v275_v2  ;;  %v277_v17 = vld [vmem:[%s8009_s13 + $0x18] sm:$0xff]  ;;  %s9405_s25 = scalar_lea.vmem [#allocation8], %s6035_s20  ;;  %s6043_s11 = sshll.u32 %s7829_s19, 10 }
  0x82   : > { %v8022_v9 = vmul.f32 %v356_v6, %v274_v1  ;;  %v8024_v10 = vmul.f32 %v357_v7, %v275_v2  ;;  %v290_v11 = vld [vmem:[#allocation7] sm:$0xff]  ;;  %v291_v12 = vld [vmem:[#allocation7 + $0x8] sm:$0xff]  ;;  %v325_v18 = vld [vmem:[#allocation7 + $0x90] sm:$0xff]  ;;  %s5916_s8 = sshll.u32 %s9405_s25, 4  ;;  %s9420_s14 = scalar_lea.hbm %s9470_s4, %s6043_s11  ;;  %s9415_s8 = int_to_ptr.vmem [resolvable:$true] %s5916_s8 }
  0x83   : > { %v388_v14 = vand.u32 4294901760, %v339_v5  ;;  %v306_v15 = vmul.f32 %v290_v11, %v274_v1  ;;  %v307_v16 = vmul.f32 %v291_v12, %v275_v2  ;;  %v326_v19 = vld [vmem:[#allocation7 + $0x98] sm:$0xff]  ;;  %v392_v20 = vand.u32 4294901760, %v340_v8  ;;  %v358_v24 = vld [vmem:[#allocation7 + $0x110] sm:$0xff]  ;;  %v278_v32 = vld [vmem:[%s8009_s13 + $0x20] sm:$0xff]  ;;  %s5903_s7 = scalar_lea.sflag [#allocation4], %s7997_s2 }
  0x84   : > { %v9483_v21 = vand.u32 4294901760, %v8022_v9  ;;  %v9482_v22 = vand.u32 4294901760, %v8024_v10  ;;  %v341_v23 = vmul.f32 %v325_v18, %v276_v13  ;;  %v359_v25 = vld [vmem:[#allocation7 + $0x118] sm:$0xff]  ;;  %v342_v29 = vmul.f32 %v326_v19, %v277_v17  ;;  %v292_v30 = vld [vmem:[#allocation7 + $0x10] sm:$0xff]  ;;  %v279_v37 = vld [vmem:[%s8009_s13 + $0x28] sm:$0xff]  ;;  %s7696_s19 = scalar_lea.vmem %s9415_s8, 1024 }
  0x85   : > { %v8030_v26 = vsub.f32 %v339_v5, %v388_v14  ;;  %v390_v27 = vand.u32 4294901760, %v306_v15  ;;  %v394_v28 = vand.u32 4294901760, %v307_v16  ;;  %v293_v31 = vld [vmem:[#allocation7 + $0x18] sm:$0xff]  ;;  %v8033_v33 = vpack.c.bf16 %v392_v20, %v388_v14  ;;  %v327_v38 = vld [vmem:[#allocation7 + $0xa0] sm:$0xff]  ;;  %v328_v39 = vld [vmem:[#allocation7 + $0xa8] sm:$0xff]  ;;  %p7697_p3 = scmp.ne.s32.totalorder %s9415_s8, %s7696_s19  ;;  %s7780_s28 = smov [#allocation8]  }
  0x86   : > { %v8035_v34 = vsub.f32 %v340_v8, %v392_v20  ;;  %v8041_v35 = vpack.c.bf16 %v9482_v22, %v9483_v21  ;;  %v8043_v36 = vmul.f32 %v358_v24, %v276_v13  ;;  %v8052_v43 = vmul.f32 %v359_v25, %v277_v17  ;;  %v360_v48 = vld [vmem:[#allocation7 + $0x120] sm:$0xff]  ;;  %v361_v49 = vld [vmem:[#allocation7 + $0x128] sm:$0xff]  ;;  %v280_v1 = vld [vmem:[%s8009_s13 + $0x30] sm:$0xff]  ;;  %s7700_s5 = sshll.u32 %s7780_s28, 4  ;;  %s7701_s5 = int_to_ptr.vmem [resolvable:$false] %s7700_s5 }
  0x87   : > { %9654 = vst [vmem:[#allocation13_spill] sm:$0xff] %v8030_v26  ;;  %9655 = vst [vmem:[#allocation14_spill] sm:$0xff] %v8033_v33  ;;  %v8046_v40 = vpack.c.bf16 %v394_v28, %v390_v27  ;;  %v8048_v41 = vsub.f32 %v306_v15, %v390_v27  ;;  %v8050_v42 = vsub.f32 %v307_v16, %v394_v28  ;;  %6873 = vmatprep.subr.bf16.mxu0 %v8033_v33  ;;  %v294_v54 = vld [vmem:[#allocation7 + $0x20] sm:$0xff]  ;;  %v295_v63 = vld [vmem:[#allocation7 + $0x28] sm:$0xff]  ;;  %p7698_p7 = pnand %p7697_p3, %p7902_p12  ;;  %s7702_s26 = scalar_lea.vmem %s7701_s5, 2048 }
  0x88   : > { %9656 = vst [vmem:[#allocation15_spill] sm:$0xff] %v8041_v35  ;;  %7065 = vmatprep.subr.bf16.mxu1 %v8041_v35  ;;  %v396_v44 = vand.u32 4294901760, %v341_v23  ;;  %v400_v45 = vand.u32 4294901760, %v342_v29  ;;  %v9481_v46 = vand.u32 4294901760, %v8043_v36  ;;  %v308_v47 = vmul.f32 %v292_v30, %v276_v13  ;;  %v281_v6 = vld [vmem:[%s8009_s13 + $0x38] sm:$0xff]  ;;  %v329_v7 = vld [vmem:[#allocation7 + $0xb0] sm:$0xff]  ;;  %p7703_p1 = scmp.lt.s32.totalorder %s9415_s8, %s7701_s5  ;;  %p7704_p5 = scmp.lt.s32.totalorder %s7702_s26, %s7696_s19 }
  0x89   : > { %9657 = vst [vmem:[#allocation16_spill] sm:$0xff] %v8046_v40  ;;  %9658 = vst [vmem:[#allocation17_spill] sm:$0xff] %v8048_v41  ;;  %6875 = vmatpush1.bf16.msra.mxu0 %v8046_v40  ;;  %7067 = vmatpush3.bf16.msra.mxu1 %v8041_v35  ;;  %v9480_v50 = vand.u32 4294901760, %v8052_v43  ;;  %v309_v51 = vmul.f32 %v293_v31, %v277_v17  ;;  %v343_v52 = vmul.f32 %v327_v38, %v278_v32  ;;  %v330_v8 = vld [vmem:[#allocation7 + $0xb8] sm:$0xff]  ;;  %v362_v15 = vld [vmem:[#allocation7 + $0x130] sm:$0xff]  ;;  %p7699_p9 = pneg %p7698_p7 }
  0x8a   : > { %9659 = vst [vmem:[#allocation18_spill] sm:$0xff] %v8050_v42  ;;  %v344_v53 = vmul.f32 %v328_v39, %v279_v37  ;;  %v8060_v55 = vpack.c.bf16 %v400_v45, %v396_v44  ;;  %v8062_v56 = vsub.f32 %v341_v23, %v396_v44  ;;  %v8064_v57 = vsub.f32 %v342_v29, %v400_v45  ;;  %v363_v16 = vld [vmem:[#allocation7 + $0x138] sm:$0xff]  ;;  %v296_v17 = vld [vmem:[#allocation7 + $0x30] sm:$0xff]  ;;  %v282_v38 = vld [vmem:[%s8009_s13 + $0x40] sm:$0xff]  ;;  %p7705_p2 = por %p7704_p5, %p7703_p1 }
  0x8b   : > { %v398_v58 = vand.u32 4294901760, %v308_v47  ;;  %v8070_v59 = vpack.c.bf16 %v9480_v50, %v9481_v46  ;;  %v402_v60 = vand.u32 4294901760, %v309_v51  ;;  %v8072_v61 = vmul.f32 %v360_v48, %v278_v32  ;;  %v297_v24 = vld [vmem:[#allocation7 + $0x38] sm:$0xff]  ;;  %v283_v48 = vld [vmem:[%s8009_s13 + $0x48] sm:$0xff]  ;;  %v270_v33 = vld [vmem:[%s8001_s29] sm:$0xff] }
  0x8c   : > { %9660 = vst [vmem:[#allocation19_spill] sm:$0xff] %v8060_v55  ;;  %v8074_v62 = vmul.f32 %v361_v49, %v279_v37  ;;  %6877 = vmatprep.subr.bf16.mxu0 %v8060_v55  ;;  %v404_v3 = vand.u32 4294901760, %v343_v52  ;;  %v408_v4 = vand.u32 4294901760, %v344_v53  ;;  %v310_v5 = vmul.f32 %v294_v54, %v278_v32  ;;  %v331_v49 = vld [vmem:[#allocation7 + $0xc0] sm:$0xff]  ;;  %v301_v50 = vld [vmem:[#allocation7 + $0x58] sm:$0xff]  ;;  %p7706_p6 = pnand %p7705_p2, %p7699_p9 }
  0x8d   : > { %9661 = vst [vmem:[#allocation20_spill] sm:$0xff] %v8070_v59  ;;  %v8078_v2 = vsub.f32 %v308_v47, %v398_v58  ;;  %7069 = vmatprep.subr.bf16.mxu1 %v8070_v59  ;;  %v8082_v11 = vpack.c.bf16 %v402_v60, %v398_v58  ;;  %v8084_v12 = vsub.f32 %v309_v51, %v402_v60  ;;  %v9477_v13 = vand.u32 4294901760, %v8072_v61  ;;  %v332_v51 = vld [vmem:[#allocation7 + $0xc8] sm:$0xff]  ;;  %v364_v60 = vld [vmem:[#allocation7 + $0x140] sm:$0xff]  ;;  %v371_v40 = vld [vmem:[#allocation7 + $0x178] sm:$0xff] }
  0x8e   : > { %v9476_v14 = vand.u32 4294901760, %v8074_v62  ;;  %7071 = vmatpush3.bf16.msra.mxu1 %v8070_v59  ;;  %v8089_v18 = vpack.c.bf16 %v408_v4, %v404_v3  ;;  %v8091_v19 = vsub.f32 %v343_v52, %v404_v3  ;;  %v8093_v20 = vsub.f32 %v344_v53, %v408_v4 }
  0x8f   : > { %9662 = vst [vmem:[#allocation21_spill] sm:$0xff] %v8078_v2  ;;  %9663 = vst [vmem:[#allocation22_spill] sm:$0xff] %v8082_v11  ;;  %v311_v23 = vmul.f32 %v295_v63, %v279_v37  ;;  %6879 = vmatpush1.bf16.msra.mxu0 %v8082_v11  ;;  %v406_v27 = vand.u32 4294901760, %v310_v5  ;;  %v345_v28 = vmul.f32 %v329_v7, %v280_v1  ;;  %v365_v63 = vld [vmem:[#allocation7 + $0x148] sm:$0xff] }
  0x90   : > { %9664 = vst [vmem:[#allocation23_spill] sm:$0xff] %v8089_v18  ;;  %9665 = vst [vmem:[#allocation24_spill] sm:$0xff] %v8093_v20  ;;  %v8100_v25 = vpack.c.bf16 %v9476_v14, %v9477_v13  ;;  %v346_v29 = vmul.f32 %v330_v8, %v281_v6  ;;  %6881 = vmatprep.subr.bf16.mxu0 %v8089_v18  ;;  %v8103_v31 = vmul.f32 %v362_v15, %v280_v1  ;;  %v367_v14 = vld [vmem:[#allocation7 + $0x158] sm:$0xff]  ;;  %v300_v13 = vld [vmem:[#allocation7 + $0x50] sm:$0xff] }
  0x91   : > { %v410_v30 = vand.u32 4294901760, %v311_v23  ;;  %v8105_v32 = vmul.f32 %v363_v16, %v281_v6  ;;  %v312_v37 = vmul.f32 %v296_v17, %v280_v1  ;;  %v8109_v39 = vsub.f32 %v310_v5, %v406_v27  ;;  %v298_v1 = vld [vmem:[#allocation7 + $0x40] sm:$0xff]  ;;  %v299_v17 = vld [vmem:[#allocation7 + $0x48] sm:$0xff] }
  0x92   : > { %9666 = vst [vmem:[#allocation25_spill] sm:$0xff] %v8100_v25  ;;  %7073 = vmatprep.subr.bf16.mxu1 %v8100_v25  ;;  %v412_v44 = vand.u32 4294901760, %v345_v28  ;;  %v416_v45 = vand.u32 4294901760, %v346_v29  ;;  %v313_v47 = vmul.f32 %v297_v24, %v281_v6  ;;  %v9475_v54 = vand.u32 4294901760, %v8103_v31 }
  0x93   : > { %v8112_v52 = vpack.c.bf16 %v410_v30, %v406_v27  ;;  %v8114_v53 = vsub.f32 %v311_v23, %v410_v30  ;;  %7075 = vmatpush3.bf16.msra.mxu1 %v8100_v25  ;;  %v9474_v58 = vand.u32 4294901760, %v8105_v32  ;;  %v414_v6 = vand.u32 4294901760, %v312_v37  ;;  %v333_v30 = vld [vmem:[#allocation7 + $0xd0] sm:$0xff] }
  0x94   : > { %v8119_v3 = vpack.c.bf16 %v416_v45, %v412_v44  ;;  %v8121_v4 = vsub.f32 %v345_v28, %v412_v44  ;;  %v8123_v5 = vsub.f32 %v346_v29, %v416_v45  ;;  %v418_v8 = vand.u32 4294901760, %v313_v47  ;;  %v284_v29 = vld [vmem:[%s8009_s13 + $0x50] sm:$0xff] }
  0x95   : > { %9667 = vst [vmem:[#allocation26_spill] sm:$0xff] %v8112_v52  ;;  %6883 = vmatpush1.bf16.msra.mxu0 %v8112_v52  ;;  %v8130_v7 = vpack.c.bf16 %v9474_v58, %v9475_v54  ;;  %v347_v15 = vmul.f32 %v331_v49, %v282_v38  ;;  %v348_v16 = vmul.f32 %v332_v51, %v283_v48  ;;  %v285_v58 = vld [vmem:[%s8009_s13 + $0x58] sm:$0xff]  ;;  %v303_v52 = vld [vmem:[#allocation7 + $0x68] sm:$0xff] }
  0x96   : > { %9668 = vst [vmem:[#allocation27_spill] sm:$0xff] %v8119_v3  ;;  %6885 = vmatprep.subr.bf16.mxu0 %v8119_v3  ;;  %v8133_v23 = vsub.f32 %v312_v37, %v414_v6  ;;  %v8135_v24 = vmul.f32 %v364_v60, %v282_v38  ;;  %v8137_v27 = vmul.f32 %v365_v63, %v283_v48  ;;  %v334_v54 = vld [vmem:[#allocation7 + $0xd8] sm:$0xff]  ;;  %v302_v3 = vld [vmem:[#allocation7 + $0x60] sm:$0xff] }
  0x97   : > { %9669 = vst [vmem:[#allocation28_spill] sm:$0xff] %v8130_v7  ;;  %v314_v28 = vmul.f32 %v298_v1, %v282_v38  ;;  %7077 = vmatprep.subr.bf16.mxu1 %v8130_v7  ;;  %v8141_v44 = vpack.c.bf16 %v418_v8, %v414_v6  ;;  %v8143_v45 = vsub.f32 %v313_v47, %v418_v8  ;;  %v420_v49 = vand.u32 4294901760, %v347_v15  ;;  %v366_v1 = vld [vmem:[#allocation7 + $0x150] sm:$0xff] }
  0x98   : > { %v424_v51 = vand.u32 4294901760, %v348_v16  ;;  %7079 = vmatpush3.bf16.msra.mxu1 %v8130_v7  ;;  %v9487_v37 = vand.u32 4294901760, %v8135_v24  ;;  %v9486_v60 = vand.u32 4294901760, %v8137_v27  ;;  %v315_v63 = vmul.f32 %v299_v17, %v283_v48  ;;  %v287_v7 = vld [vmem:[%s8009_s13 + $0x68] sm:$0xff] }
  0x99   : > { %9670 = vst [vmem:[#allocation29_spill] sm:$0xff] %v8141_v44  ;;  %v422_v38 = vand.u32 4294901760, %v314_v28  ;;  %6887 = vmatpush1.bf16.msra.mxu0 %v8141_v44  ;;  %v8152_v6 = vsub.f32 %v347_v15, %v420_v49  ;;  %v349_v0 = vmul.f32 %v333_v30, %v284_v29  ;;  %v350_v22 = vmul.f32 %v334_v54, %v285_v58  ;;  %v336_v54 = vld [vmem:[#allocation7 + $0xe8] sm:$0xff] }
  0x9a   : > { %v8150_v47 = vpack.c.bf16 %v424_v51, %v420_v49  ;;  %v8154_v8 = vsub.f32 %v348_v16, %v424_v51  ;;  %v8160_v48 = vpack.c.bf16 %v9486_v60, %v9487_v37  ;;  %v426_v17 = vand.u32 4294901760, %v315_v63  ;;  %v286_v49 = vld [vmem:[%s8009_s13 + $0x60] sm:$0xff] }
  0x9b   : > { %v8162_v46 = vsub.f32 %v314_v28, %v422_v38  ;;  %v8165_v21 = vmul.f32 %v366_v1, %v284_v29  ;;  %v8167_v15 = vmul.f32 %v367_v14, %v285_v58  ;;  %v428_v16 = vand.u32 4294901760, %v349_v0  ;;  %v335_v51 = vld [vmem:[#allocation7 + $0xe0] sm:$0xff] }
  0x9c   : > { %9671 = vst [vmem:[#allocation30_spill] sm:$0xff] %v8150_v47  ;;  %9672 = vst [vmem:[#allocation31_spill] sm:$0xff] %v8160_v48  ;;  %6889 = vmatprep.subr.bf16.mxu0 %v8150_v47  ;;  %v316_v30 = vmul.f32 %v300_v13, %v284_v29  ;;  %7081 = vmatprep.subr.bf16.mxu1 %v8160_v48  ;;  %v8171_v44 = vpack.c.bf16 %v426_v17, %v422_v38  ;;  %v432_v37 = vand.u32 4294901760, %v350_v22  ;;  %v368_v47 = vld [vmem:[#allocation7 + $0x160] sm:$0xff]  ;;  %v369_v38 = vld [vmem:[#allocation7 + $0x168] sm:$0xff] }
  0x9d   : > { %v8173_v60 = vsub.f32 %v315_v63, %v426_v17  ;;  %v317_v28 = vmul.f32 %v301_v50, %v285_v58  ;;  %7083 = vmatpush3.bf16.msra.mxu1 %v8160_v48  ;;  %v8177_v14 = vsub.f32 %v349_v0, %v428_v16  ;;  %v9511_v13 = vand.u32 4294901760, %v8165_v21  ;;  %v288_v48 = vld [vmem:[%s8009_s13 + $0x70] sm:$0xff] }
  0x9e   : > { %9673 = vst [vmem:[#allocation32_spill] sm:$0xff] %v8171_v44  ;;  %v9510_v29 = vand.u32 4294901760, %v8167_v15  ;;  %v430_v1 = vand.u32 4294901760, %v316_v30  ;;  %6891 = vmatpush1.bf16.msra.mxu0 %v8171_v44  ;;  %v8182_v63 = vpack.c.bf16 %v432_v37, %v428_v16  ;;  %v8184_v50 = vsub.f32 %v350_v22, %v432_v37  ;;  %v289_v16 = vld [vmem:[%s8009_s13 + $0x78] sm:$0xff]  ;;  %v337_v44 = vld [vmem:[#allocation7 + $0xf0] sm:$0xff] }
  0x9f   : > { %v434_v58 = vand.u32 4294901760, %v317_v28  ;;  %v351_v17 = vmul.f32 %v335_v51, %v286_v49  ;;  %v352_v18 = vmul.f32 %v336_v54, %v287_v7  ;;  %v8195_v11 = vmul.f32 %v368_v47, %v286_v49  ;;  %v338_v22 = vld [vmem:[#allocation7 + $0xf8] sm:$0xff] }
  0xa0   : > { %9674 = vst [vmem:[#allocation33_spill] sm:$0xff] %v8182_v63  ;;  %v8191_v0 = vpack.c.bf16 %v9510_v29, %v9511_v13  ;;  %v8193_v25 = vsub.f32 %v316_v30, %v430_v1  ;;  %6893 = vmatprep.subr.bf16.mxu0 %v8182_v63  ;;  %v8203_v59 = vmul.f32 %v369_v38, %v287_v7  ;;  %v370_v13 = vld [vmem:[#allocation7 + $0x170] sm:$0xff] }
  0xa1   : > { %v8199_v37 = vpack.c.bf16 %v434_v58, %v430_v1  ;;  %v8201_v51 = vsub.f32 %v317_v28, %v434_v58  ;;  %v436_v55 = vand.u32 4294901760, %v351_v17  ;;  %v440_v29 = vand.u32 4294901760, %v352_v18 }
  0xa2   : > { %9675 = vst [vmem:[#allocation34_spill] sm:$0xff] %v8191_v0  ;;  %7085 = vmatprep.subr.bf16.mxu1 %v8191_v0  ;;  %v318_v54 = vmul.f32 %v302_v3, %v286_v49  ;;  %v319_v47 = vmul.f32 %v303_v52, %v287_v7  ;;  %v9524_v28 = vand.u32 4294901760, %v8203_v59  ;;  %v353_v38 = vmul.f32 %v337_v44, %v288_v48  ;;  %v304_v52 = vld [vmem:[#allocation7 + $0x70] sm:$0xff] }
  0xa3   : > { %9676 = vst [vmem:[#allocation35_spill] sm:$0xff] %v8199_v37  ;;  %6895 = vmatpush1.bf16.msra.mxu0 %v8199_v37  ;;  %7087 = vmatpush3.bf16.msra.mxu1 %v8191_v0  ;;  %v8209_v1 = vsub.f32 %v351_v17, %v436_v55  ;;  %v354_v58 = vmul.f32 %v338_v22, %v289_v16  ;;  %v9678_v7 = vand.u32 4294901760, %v8195_v11  ;;  %v305_v22 = vld [vmem:[#allocation7 + $0x78] sm:$0xff] }
  0xa4   : > { %v8212_v63 = vpack.c.bf16 %v440_v29, %v436_v55  ;;  %v8214_v35 = vsub.f32 %v352_v18, %v440_v29  ;;  %v438_v30 = vand.u32 4294901760, %v318_v54  ;;  %v442_v3 = vand.u32 4294901760, %v319_v47 }
  0xa5   : > { %v8220_v49 = vpack.c.bf16 %v9524_v28, %v9678_v7  ;;  %v8222_v17 = vmul.f32 %v370_v13, %v288_v48  ;;  %v8224_v37 = vmul.f32 %v371_v40, %v289_v16  ;;  %v444_v44 = vand.u32 4294901760, %v353_v38 }
  0xa6   : > { %9677 = vst [vmem:[#allocation36_spill] sm:$0xff] %v8212_v63  ;;  %6897 = vmatprep.subr.bf16.mxu0 %v8212_v63  ;;  %v8227_v55 = vpack.c.bf16 %v442_v3, %v438_v30  ;;  %v8229_v18 = vsub.f32 %v318_v54, %v438_v30  ;;  %v8231_v29 = vsub.f32 %v319_v47, %v442_v3  ;;  %v448_v0 = vand.u32 4294901760, %v354_v58 }
  0xa7   : > { %9679 = vst [vmem:[#allocation37_spill] sm:$0xff] %v8220_v49  ;;  %7089 = vmatprep.subr.bf16.mxu1 %v8220_v49  ;;  %v8235_v7 = vsub.f32 %v353_v38, %v444_v44  ;;  %v9528_v13 = vand.u32 4294901760, %v8222_v17  ;;  %v9527_v40 = vand.u32 4294901760, %v8224_v37  ;;  %v320_v28 = vmul.f32 %v304_v52, %v288_v48 }
  0xa8   : > { %9680 = vst [vmem:[#allocation38_spill] sm:$0xff] %v8227_v55  ;;  %9681 = vst [vmem:[#allocation39_spill] sm:$0xff] %v8229_v18  ;;  %6899 = vmatpush1.bf16.msra.mxu0 %v8227_v55  ;;  %7091 = vmatpush3.bf16.msra.mxu1 %v8220_v49  ;;  %v8241_v63 = vpack.c.bf16 %v448_v0, %v444_v44  ;;  %v8243_v30 = vsub.f32 %v354_v58, %v448_v0  ;;  %v9531_v47 = vand.u32 4294901760, %v8030_v26 }
  0xa9   : > { %9682 = vst [vmem:[#allocation40_spill] sm:$0xff] %v8231_v29  ;;  %9683 = vst [vmem:[#allocation41_spill] sm:$0xff] %v8235_v7  ;;  %v321_v54 = vmul.f32 %v305_v22, %v289_v16  ;;  %v8250_v38 = vpack.c.bf16 %v9527_v40, %v9528_v13  ;;  %v446_v3 = vand.u32 4294901760, %v320_v28  ;;  %v9538_v48 = vand.u32 4294901760, %v8035_v34 }
  0xaa   : > { %9684 = vst [vmem:[#allocation42_spill] sm:$0xff] %v8241_v63  ;;  %9685 = vst [vmem:[#allocation43_spill] sm:$0xff] %v8243_v30  ;;  %v8253_v52 = vand.u32 4294901760, %v270_v33  ;;  %6901 = vmatprep.subr.bf16.mxu0 %v8241_v63  ;;  %v532_v0 = vsub.f32 %v8030_v26, %v9531_v47  ;;  %v9688_v16 = vand.u32 4294901760, %v8022_v9  ;;  %v9689_v22 = vand.u32 4294901760, %v8024_v10 }
  0xab   : > { %9686 = vst [vmem:[#allocation44_spill] sm:$0xff] %v8250_v38  ;;  %v450_v44 = vand.u32 4294901760, %v321_v54  ;;  %7093 = vmatprep.subr.bf16.mxu1 %v8250_v38  ;;  %v8270_v13 = vsub.f32 %v320_v28, %v446_v3  ;;  %v544_v63 = vsub.f32 %v8035_v34, %v9538_v48  ;;  %v9541_v55 = vand.u32 4294901760, %v8048_v41 }
  0xac   : > { %9687 = vst [vmem:[#allocation45_spill] sm:$0xff] %v8253_v52  ;;  %v8262_v58 = vsub.f32 %v8022_v9, %v9688_v16  ;;  %v8267_v40 = vsub.f32 %v8024_v10, %v9689_v22  ;;  %v8276_v47 = vsub.f32 %v270_v33, %v8253_v52  ;;  %v271_v9 = vld [vmem:[%s8001_s29 + $0x8] sm:$0xff]  ;;  %7095 = vmatpush3.bf16.msra.mxu1 %v8250_v38  ;;  %v533_v10 = vand.u32 4294901760, %v532_v0 }
  0xad   : > { %9690 = vst [vmem:[#allocation46_spill] sm:$0xff] %v8270_v13  ;;  %v8280_v16 = vpack.c.bf16 %v450_v44, %v446_v3  ;;  %v8282_v49 = vsub.f32 %v321_v54, %v450_v44  ;;  %v545_v22 = vand.u32 4294901760, %v544_v63  ;;  %v538_v33 = vsub.f32 %v8048_v41, %v9541_v55 }
  0xae   : > { %9691 = vst [vmem:[#allocation47_spill] sm:$0xff] %v8276_v47  ;;  %v9546_v28 = vand.u32 4294901760, %v8262_v58  ;;  %v8287_v26 = vand.u32 4294901760, %v8276_v47  ;;  %v9553_v3 = vand.u32 4294901760, %v8050_v42  ;;  %v8298_v44 = vand.u32 4294901760, %v271_v9 }
  0xaf   : > { %9692 = vst [vmem:[#allocation48_spill] sm:$0xff] %v8280_v16  ;;  %9693 = vst [vmem:[#allocation49_spill] sm:$0xff] %v8282_v49  ;;  %6903 = vmatpush1.bf16.msra.mxu0 %v8280_v16  ;;  %v9559_v63 = vand.u32 4294901760, %v8062_v56  ;;  %v6904_v0 = vpack.c.bf16 %v545_v22, %v533_v10  ;;  %v9696_v38 = vand.u32 4294901760, %v8267_v40  ;;  %v539_v52 = vand.u32 4294901760, %v538_v33 }
  0xb0   : > { %9694 = vst [vmem:[#allocation50_spill] sm:$0xff] %v8287_v26  ;;  %v1515_v54 = vsub.f32 %v8262_v58, %v9546_v28  ;;  %9695 = vst [vmem:[#allocation51_spill] sm:$0xff] %v8298_v44  ;;  %v488_v48 = vsub.f32 %v8276_v47, %v8287_v26  ;;  %v550_v28 = vsub.f32 %v8050_v42, %v9553_v3  ;;  %v9558_v47 = vand.u32 4294901760, %v8064_v57 }
  0xb1   : > { %v1522_v55 = vsub.f32 %v8267_v40, %v9696_v38  ;;  %v8310_v41 = vsub.f32 %v271_v9, %v8298_v44  ;;  %v556_v10 = vsub.f32 %v8062_v56, %v9559_v63  ;;  %6905 = vmatprep.subr.bf16.mxu0 %v6904_v0  ;;  %v9698_v38 = vand.u32 4294901760, %v8043_v36 }
  0xb2   : > { %v1516_v16 = vand.u32 4294901760, %v1515_v54  ;;  %v489_v22 = vand.u32 4294901760, %v488_v48  ;;  %v551_v54 = vand.u32 4294901760, %v550_v28  ;;  %v9700_v44 = vand.u32 4294901760, %v8052_v43 }
  0xb3   : > { %9697 = vst [vmem:[#allocation52_spill] sm:$0xff] %v8310_v41  ;;  %v1523_v26 = vand.u32 4294901760, %v1522_v55  ;;  %v8319_v33 = vsub.f32 %v8043_v36, %v9698_v38  ;;  %v8322_v3 = vand.u32 4294901760, %v8310_v41  ;;  %v557_v9 = vand.u32 4294901760, %v556_v10 }
  0xb4   : > { %v8327_v42 = vsub.f32 %v8052_v43, %v9700_v44  ;;  %6340 = vmatprep.mubr.f32.mxu1 %v489_v22  ;;  %490 = vmatmul.mubr.f32.vlgmr.msra.gmra.mrb[0].mxu0 %v489_v22  ;;  %v568_v55 = vsub.f32 %v8064_v57, %v9558_v47  ;;  %v9565_v28 = vand.u32 4294901760, %v8078_v2  ;;  %v6906_v0 = vpack.c.bf16 %v551_v54, %v539_v52 }
  0xb5   : > { %9699 = vst [vmem:[#allocation53_spill] sm:$0xff] %v8322_v3  ;;  %v7096_v48 = vpack.c.bf16 %v1523_v26, %v1516_v16  ;;  %v9562_v36 = vand.u32 4294901760, %v8319_v33  ;;  %v499_v10 = vsub.f32 %v8310_v41, %v8322_v3  ;;  %v9569_v43 = vand.u32 4294901760, %v8084_v12 }
  0xb6   : > { %v9566_v38 = vand.u32 4294901760, %v8327_v42  ;;  %v9701_v44 = vmov 0.0   ;;  %v569_v26 = vand.u32 4294901760, %v568_v55  ;;  %v562_v22 = vsub.f32 %v8078_v2, %v9565_v28  ;;  %6907 = vmatpush1.bf16.msra.mxu0 %v6906_v0 }
  0xb7   : > { %495 = vmatprep.mubr.f32.mxu0 %v9701_v44  ;;  %7097 = vmatprep.subr.bf16.mxu1 %v7096_v48  ;;  %v1529_v16 = vsub.f32 %v8319_v33, %v9562_v36  ;;  %v9571_v52 = vand.u32 4294901760, %v8091_v19  ;;  %v500_v54 = vand.u32 4294901760, %v499_v10  ;;  %v574_v55 = vsub.f32 %v8084_v12, %v9569_v43 }
  0xb8   : > { %v1536_v47 = vsub.f32 %v8327_v42, %v9566_v38  ;;  %v9570_v63 = vand.u32 4294901760, %v8093_v20  ;;  %v6908_v3 = vpack.c.bf16 %v569_v26, %v557_v9  ;;  %v563_v41 = vand.u32 4294901760, %v562_v22 }
  0xb9   : > { %v1530_v36 = vand.u32 4294901760, %v1529_v16  ;;  %v580_v28 = vsub.f32 %v8091_v19, %v9571_v52  ;;  %6341 = vmatmul.mubr.f32.vlgmr.msra.gmra.mrb[0].mxu1 %v500_v54  ;;  %v575_v10 = vand.u32 4294901760, %v574_v55  ;;  %v9702_v2 = vand.u32 4294901760, %v8072_v61  ;;  %501 = vmatmul.mubr.f32.gmra.mrb[2].mxu0 %v500_v54 }
  0xba   : > { %v1537_v0 = vand.u32 4294901760, %v1536_v47  ;;  %v592_v38 = vsub.f32 %v8093_v20, %v9570_v63  ;;  %7099 = vmatpush3.bf16.msra.mxu1 %v7096_v48  ;;  %6909 = vmatprep.subr.bf16.mxu0 %v6908_v3  ;;  %v9703_v26 = vand.u32 4294901760, %v8074_v62  ;;  %v9575_v47 = vand.u32 4294901760, %v8109_v39 }
  0xbb   : > { %v8362_v43 = vsub.f32 %v8072_v61, %v9702_v2  ;;  %v581_v9 = vand.u32 4294901760, %v580_v28  ;;  %v9574_v22 = vand.u32 4294901760, %v8114_v53  ;;  %v6910_v63 = vpack.c.bf16 %v575_v10, %v563_v41  ;;  %506 = vmatprep.mubr.f32.mxu0 %v9701_v44 }
  0xbc   : > { %v8367_v16 = vsub.f32 %v8074_v62, %v9703_v26  ;;  %v7100_v55 = vpack.c.bf16 %v1537_v0, %v1530_v36  ;;  %v593_v52 = vand.u32 4294901760, %v592_v38  ;;  %v586_v2 = vsub.f32 %v8109_v39, %v9575_v47 }
  0xbd   : > { %v9585_v20 = vand.u32 4294901760, %v8362_v43  ;;  %v598_v62 = vsub.f32 %v8114_v53, %v9574_v22  ;;  %v9577_v3 = vand.u32 4294901760, %v8121_v4  ;;  %6911 = vmatpush1.bf16.msra.mxu0 %v6910_v63  ;;  %v9576_v36 = vand.u32 4294901760, %v8123_v5 }
  0xbe   : > { %v9584_v61 = vand.u32 4294901760, %v8367_v16  ;;  %7101 = vmatprep.subr.bf16.mxu1 %v7100_v55  ;;  %v6912_v41 = vpack.c.bf16 %v593_v52, %v581_v9  ;;  %v9704_v28 = vand.u32 4294901760, %v8103_v31  ;;  %v587_v0 = vand.u32 4294901760, %v586_v2 }
  0xbf   : > { %v1543_v48 = vsub.f32 %v8362_v43, %v9585_v20  ;;  %7103 = vmatpush3.bf16.msra.mxu1 %v7100_v55  ;;  %v599_v10 = vand.u32 4294901760, %v598_v62  ;;  %v604_v63 = vsub.f32 %v8121_v4, %v9577_v3  ;;  %v616_v9 = vsub.f32 %v8123_v5, %v9576_v36 }
  0xc0   : > { %v8388_v38 = vsub.f32 %v8103_v31, %v9704_v28  ;;  %v1550_v54 = vsub.f32 %v8367_v16, %v9584_v61  ;;  %6913 = vmatprep.subr.bf16.mxu0 %v6912_v41  ;;  %v9705_v26 = vand.u32 4294901760, %v8105_v32  ;;  %v9578_v22 = vand.u32 4294901760, %v8133_v23 }
  0xc1   : > { %v1544_v52 = vand.u32 4294901760, %v1543_v48  ;;  %v6914_v2 = vpack.c.bf16 %v599_v10, %v587_v0  ;;  %v605_v62 = vand.u32 4294901760, %v604_v63  ;;  %v617_v47 = vand.u32 4294901760, %v616_v9 }
  0xc2   : > { %v9582_v31 = vand.u32 4294901760, %v8388_v38  ;;  %v8403_v55 = vsub.f32 %v8105_v32, %v9705_v26  ;;  %v1551_v28 = vand.u32 4294901760, %v1550_v54  ;;  %v9579_v36 = vand.u32 4294901760, %v8143_v45 }
  0xc3   : > { %6915 = vmatpush1.bf16.msra.mxu0 %v6914_v2  ;;  %v610_v32 = vsub.f32 %v8133_v23, %v9578_v22  ;;  %v9580_v54 = vand.u32 4294901760, %v8152_v6  ;;  %v9583_v0 = vand.u32 4294901760, %v8154_v8  ;;  %v6916_v10 = vpack.c.bf16 %v617_v47, %v605_v62 }
  0xc4   : > { %v1557_v41 = vsub.f32 %v8388_v38, %v9582_v31  ;;  %v9581_v48 = vand.u32 4294901760, %v8403_v55  ;;  %v7104_v3 = vpack.c.bf16 %v1551_v28, %v1544_v52  ;;  %v622_v26 = vsub.f32 %v8143_v45, %v9579_v36 }
  0xc5   : > { %v611_v52 = vand.u32 4294901760, %v610_v32  ;;  %v628_v28 = vsub.f32 %v8152_v6, %v9580_v54  ;;  %v640_v2 = vsub.f32 %v8154_v8, %v9583_v0  ;;  %v9706_v47 = vand.u32 4294901760, %v8135_v24  ;;  %6917 = vmatprep.subr.bf16.mxu0 %v6916_v10 }
  0xc6   : > { %v1558_v63 = vand.u32 4294901760, %v1557_v41  ;;  %v1564_v9 = vsub.f32 %v8403_v55, %v9581_v48  ;;  %7105 = vmatprep.subr.bf16.mxu1 %v7104_v3  ;;  %v623_v22 = vand.u32 4294901760, %v622_v26  ;;  %v9707_v36 = vand.u32 4294901760, %v8137_v27 }
  0xc7   : > { %v8431_v62 = vsub.f32 %v8135_v24, %v9706_v47  ;;  %7107 = vmatpush3.bf16.msra.mxu1 %v7104_v3  ;;  %v9588_v54 = vand.u32 4294901760, %v8162_v46  ;;  %v629_v48 = vand.u32 4294901760, %v628_v28  ;;  %v641_v31 = vand.u32 4294901760, %v640_v2 }
  0xc8   : > { %v1565_v41 = vand.u32 4294901760, %v1564_v9  ;;  %v8436_v32 = vsub.f32 %v8137_v27, %v9707_v36  ;;  %v9586_v61 = vand.u32 4294901760, %v8173_v60  ;;  %v6918_v24 = vpack.c.bf16 %v623_v22, %v611_v52 }
  0xc9   : > { %v9602_v0 = vand.u32 4294901760, %v8431_v62  ;;  %v634_v10 = vsub.f32 %v8162_v46, %v9588_v54  ;;  %v6920_v9 = vpack.c.bf16 %v641_v31, %v629_v48  ;;  %v9587_v26 = vand.u32 4294901760, %v8177_v14 }
  0xca   : > { %v7108_v20 = vpack.c.bf16 %v1565_v41, %v1558_v63  ;;  %v9594_v3 = vand.u32 4294901760, %v8436_v32  ;;  %v646_v36 = vsub.f32 %v8173_v60, %v9586_v61  ;;  %6919 = vmatpush1.bf16.msra.mxu0 %v6918_v24  ;;  %v9592_v52 = vand.u32 4294901760, %v8184_v50 }
  0xcb   : > { %v1571_v27 = vsub.f32 %v8431_v62, %v9602_v0  ;;  %v635_v63 = vand.u32 4294901760, %v634_v10  ;;  %v9708_v31 = vand.u32 4294901760, %v8165_v21  ;;  %6921 = vmatprep.subr.bf16.mxu0 %v6920_v9  ;;  %v652_v47 = vsub.f32 %v8177_v14, %v9587_v26 }
  0xcc   : > { %7109 = vmatprep.subr.bf16.mxu1 %v7108_v20  ;;  %v1578_v22 = vsub.f32 %v8436_v32, %v9594_v3  ;;  %v647_v2 = vand.u32 4294901760, %v646_v36  ;;  %v9709_v41 = vand.u32 4294901760, %v8167_v15  ;;  %v664_v61 = vsub.f32 %v8184_v50, %v9592_v52 }
  0xcd   : > { %v8459_v48 = vsub.f32 %v8165_v21, %v9708_v31  ;;  %7111 = vmatpush3.bf16.msra.mxu1 %v7108_v20  ;;  %v1572_v28 = vand.u32 4294901760, %v1571_v27  ;;  %v9590_v20 = vand.u32 4294901760, %v8193_v25  ;;  %v653_v27 = vand.u32 4294901760, %v652_v47  ;;  %v272_v47 = vld [vmem:[%s8001_s29 + $0x10] sm:$0xff] }
  0xce   : > { %v8467_v24 = vsub.f32 %v8167_v15, %v9709_v41  ;;  %v1579_v10 = vand.u32 4294901760, %v1578_v22  ;;  %v6922_v9 = vpack.c.bf16 %v647_v2, %v635_v63  ;;  %v9593_v31 = vand.u32 4294901760, %v8201_v51 }
  0xcf   : > { %v9589_v21 = vand.u32 4294901760, %v8459_v48  ;;  %v665_v54 = vand.u32 4294901760, %v664_v61  ;;  %v658_v22 = vsub.f32 %v8193_v25, %v9590_v20  ;;  %v9595_v61 = vand.u32 4294901760, %v8214_v35 }
  0xd0   : > { %v9591_v36 = vand.u32 4294901760, %v8467_v24  ;;  %v7112_v26 = vpack.c.bf16 %v1579_v10, %v1572_v28  ;;  %6923 = vmatpush1.bf16.msra.mxu0 %v6922_v9  ;;  %v670_v2 = vsub.f32 %v8201_v51, %v9593_v31  ;;  %v9596_v28 = vand.u32 4294901760, %v8209_v1 }
  0xd1   : > { %v1585_v15 = vsub.f32 %v8459_v48, %v9589_v21  ;;  %v6924_v41 = vpack.c.bf16 %v665_v54, %v653_v27  ;;  %v659_v21 = vand.u32 4294901760, %v658_v22  ;;  %v9710_v20 = vand.u32 4294901760, %v8195_v11 }
  0xd2   : > { %v1592_v63 = vsub.f32 %v8467_v24, %v9591_v36  ;;  %7113 = vmatprep.subr.bf16.mxu1 %v7112_v26  ;;  %v671_v52 = vand.u32 4294901760, %v670_v2  ;;  %v676_v31 = vsub.f32 %v8209_v1, %v9596_v28  ;;  %v688_v3 = vsub.f32 %v8214_v35, %v9595_v61 }
  0xd3   : > { %v1586_v10 = vand.u32 4294901760, %v1585_v15  ;;  %v8494_v9 = vsub.f32 %v8195_v11, %v9710_v20  ;;  %7115 = vmatpush3.bf16.msra.mxu1 %v7112_v26  ;;  %6925 = vmatprep.subr.bf16.mxu0 %v6924_v41  ;;  %v9711_v27 = vand.u32 4294901760, %v8203_v59  ;;  %v8508_v11 = vand.u32 4294901760, %v272_v47 }
  0xd4   : > { %v1593_v36 = vand.u32 4294901760, %v1592_v63  ;;  %v9597_v26 = vand.u32 4294901760, %v8229_v18  ;;  %v6926_v22 = vpack.c.bf16 %v671_v52, %v659_v21  ;;  %v677_v63 = vand.u32 4294901760, %v676_v31 }
  0xd5   : > { %v9600_v54 = vand.u32 4294901760, %v8494_v9  ;;  %v8506_v15 = vsub.f32 %v8203_v59, %v9711_v27  ;;  %v689_v2 = vand.u32 4294901760, %v688_v3  ;;  %v8516_v28 = vsub.f32 %v272_v47, %v8508_v11 }
  0xd6   : > { %v7116_v20 = vpack.c.bf16 %v1593_v36, %v1586_v10  ;;  %v682_v59 = vsub.f32 %v8229_v18, %v9597_v26  ;;  %6927 = vmatpush1.bf16.msra.mxu0 %v6926_v22  ;;  %v9599_v52 = vand.u32 4294901760, %v8231_v29  ;;  %v9601_v3 = vand.u32 4294901760, %v8235_v7  ;;  %v273_v36 = vld [vmem:[%s8001_s29 + $0x18] sm:$0xff]  ;;  %v9732_v18 = vld [vmem:[#allocation51_spill] sm:$0xff] }
  0xd7   : > { %v1599_v41 = vsub.f32 %v8494_v9, %v9600_v54  ;;  %v9598_v61 = vand.u32 4294901760, %v8506_v15  ;;  %9712 = vst [vmem:[#allocation54_spill] sm:$0xff] %v8516_v28  ;;  %v6928_v27 = vpack.c.bf16 %v689_v2, %v677_v63  ;;  %v9605_v21 = vand.u32 4294901760, %v8243_v30 }
  0xd8   : > { %7117 = vmatprep.subr.bf16.mxu1 %v7116_v20  ;;  %v8529_v10 = vand.u32 4294901760, %v8516_v28  ;;  %v683_v26 = vand.u32 4294901760, %v682_v59  ;;  %v694_v22 = vsub.f32 %v8231_v29, %v9599_v52  ;;  %v700_v63 = vsub.f32 %v8235_v7, %v9601_v3 }
  0xd9   : > { %7119 = vmatpush3.bf16.msra.mxu1 %v7116_v20  ;;  %v1600_v31 = vand.u32 4294901760, %v1599_v41  ;;  %v1606_v47 = vsub.f32 %v8506_v15, %v9598_v61  ;;  %6929 = vmatprep.subr.bf16.mxu0 %v6928_v27  ;;  %v712_v20 = vsub.f32 %v8243_v30, %v9605_v21  ;;  %v9714_v2 = vand.u32 4294901760, %v8222_v17 }
  0xda   : > { %9713 = vst [vmem:[#allocation55_spill] sm:$0xff] %v8529_v10  ;;  %v510_v59 = vsub.f32 %v8516_v28, %v8529_v10  ;;  %v9716_v27 = vand.u32 4294901760, %v8224_v37  ;;  %v8552_v54 = vand.u32 4294901760, %v273_v36  ;;  %v695_v3 = vand.u32 4294901760, %v694_v22 }
  0xdb   : > { %v8543_v41 = vsub.f32 %v8222_v17, %v9714_v2  ;;  %v1607_v61 = vand.u32 4294901760, %v1606_v47  ;;  %v701_v0 = vand.u32 4294901760, %v700_v63  ;;  %v713_v7 = vand.u32 4294901760, %v712_v20 }
  0xdc   : > { %v8550_v52 = vsub.f32 %v8224_v37, %v9716_v27  ;;  %v511_v29 = vand.u32 4294901760, %v510_v59  ;;  %v8557_v47 = vsub.f32 %v273_v36, %v8552_v54  ;;  %v6930_v2 = vpack.c.bf16 %v695_v3, %v683_v26 }
  0xdd   : > { %9715 = vst [vmem:[#allocation56_spill] sm:$0xff] %v8543_v41  ;;  %v9615_v21 = vand.u32 4294901760, %v8543_v41  ;;  %v7120_v30 = vpack.c.bf16 %v1607_v61, %v1600_v31  ;;  %v6932_v10 = vpack.c.bf16 %v713_v7, %v701_v0  ;;  %v9612_v27 = vand.u32 4294901760, %v8270_v13 }
  0xde   : > { %9717 = vst [vmem:[#allocation57_spill] sm:$0xff] %v8550_v52  ;;  %v9613_v17 = vand.u32 4294901760, %v8550_v52  ;;  %9718 = vst [vmem:[#allocation58_spill] sm:$0xff] %v8557_v47  ;;  %512 = vmatmul.mubr.f32.gmra.mrb[4].mxu0 %v511_v29  ;;  %v8567_v31 = vand.u32 4294901760, %v8557_v47  ;;  %v9614_v36 = vand.u32 4294901760, %v8282_v49  ;;  %6343 = vmatprep.mubr.f32.mxu1 %v511_v29  ;;  %v6940_v29 = vpack.c.bf16 %v8064_v57, %v8062_v56 }
  0xdf   : > { %v1613_v37 = vsub.f32 %v8543_v41, %v9615_v21  ;;  %7121 = vmatprep.subr.bf16.mxu1 %v7120_v30  ;;  %6931 = vmatpush1.bf16.msra.mxu0 %v6930_v2  ;;  %v706_v0 = vsub.f32 %v8270_v13, %v9612_v27  ;;  %v9720_v2 = vld [vmem:[#allocation13_spill] sm:$0xff]  ;;  %v9729_v28 = vand.u32 4294901760, %v8267_v40 }
  0xe0   : > { %v1620_v61 = vsub.f32 %v8550_v52, %v9613_v17  ;;  %9719 = vst [vmem:[#allocation59_spill] sm:$0xff] %v8567_v31  ;;  %7123 = vmatpush3.bf16.msra.mxu1 %v7120_v30  ;;  %517 = vmatprep.mubr.f32.mxu0 %v9701_v44  ;;  %v521_v3 = vsub.f32 %v8557_v47, %v8567_v31  ;;  %v9722_v17 = vld [vmem:[#allocation18_spill] sm:$0xff]  ;;  %v9726_v21 = vand.u32 4294901760, %v9720_v2  ;;  %v9727_v31 = vand.u32 4294901760, %v8035_v34 }
  0xe1   : > { %v1614_v7 = vand.u32 4294901760, %v1613_v37  ;;  %6933 = vmatprep.subr.bf16.mxu0 %v6932_v10  ;;  %v718_v22 = vsub.f32 %v8282_v49, %v9614_v36  ;;  %v707_v63 = vand.u32 4294901760, %v706_v0  ;;  %v6936_v37 = vpack.c.bf16 %v8035_v34, %v9720_v2  ;;  %v9723_v0 = vld [vmem:[#allocation21_spill] sm:$0xff] }
  0xe2   : > { %v1621_v26 = vand.u32 4294901760, %v1620_v61  ;;  %v522_v30 = vand.u32 4294901760, %v521_v3  ;;  %v7128_v10 = vpack.c.bf16 %v8267_v40, %v8262_v58  ;;  %v9721_v61 = vld [vmem:[#allocation17_spill] sm:$0xff]  ;;  %v9724_v3 = vld [vmem:[#allocation24_spill] sm:$0xff]  ;;  %v9728_v47 = vand.u32 4294901760, %v8262_v58 }
  0xe3   : > { %v719_v59 = vand.u32 4294901760, %v718_v22  ;;  %v6938_v36 = vpack.c.bf16 %v9722_v17, %v9721_v61  ;;  %v6944_v22 = vpack.c.bf16 %v9724_v3, %v8091_v19  ;;  %v9730_v13 = vand.u32 4294901760, %v9721_v61 }
  0xe4   : > { %v7124_v20 = vpack.c.bf16 %v1621_v26, %v1614_v7  ;;  %523 = vmatmul.mubr.f32.gmra.mrb[6].mxu0 %v522_v30  ;;  %6344 = vmatmul.mubr.f32.gmra.mrb[2].mxu1 %v522_v30  ;;  %v7132_v7 = vpack.c.bf16 %v8327_v42, %v8319_v33  ;;  %v6942_v26 = vpack.c.bf16 %v8084_v12, %v9723_v0  ;;  %v9731_v52 = vand.u32 4294901760, %v9722_v17 }
  0xe5   : > { %v6934_v27 = vpack.c.bf16 %v719_v59, %v707_v63  ;;  %753 = vmatprep.mubr.f32.mxu0 %v9701_v44  ;;  %v9725_v63 = vld [vmem:[#allocation45_spill] sm:$0xff]  ;;  %v7136_v30 = vpack.c.bf16 %v8367_v16, %v8362_v43  ;;  %v6946_v59 = vpack.c.bf16 %v8114_v53, %v8109_v39  ;;  %v8613_v49 = vpack.c.bf16 %v9729_v28, %v9728_v47 }
  0xe6   : > { %7125 = vmatprep.subr.bf16.mxu1 %v7124_v20  ;;  %6378 = vmatprep.mubr.f32.mxu1 %v9725_v63  ;;  %v8619_v41 = vpack.c.bf16 %v9731_v52, %v9730_v13  ;;  %v9733_v34 = vand.u32 4294901760, %v8062_v56  ;;  %v9735_v40 = vand.u32 4294901760, %v8319_v33  ;;  %v9736_v58 = vand.u32 4294901760, %v8327_v42 }
  0xe7   : > { %6935 = vmatpush1.bf16.msra.mxu0 %v6934_v27  ;;  %7127 = vmatpush3.bf16.msra.mxu1 %v7124_v20  ;;  %v6948_v27 = vpack.c.bf16 %v8123_v5, %v8121_v4  ;;  %v7140_v20 = vpack.c.bf16 %v8403_v55, %v8388_v38  ;;  %v9737_v17 = vand.u32 4294901760, %v9723_v0  ;;  %v9738_v13 = vand.u32 4294901760, %v8084_v12 }
  0xe8   : > { %6937 = vmatprep.subr.bf16.mxu0 %v6936_v37  ;;  %7129 = vmatprep.subr.bf16.mxu1 %v7128_v10  ;;  %v8607_v37 = vpack.c.bf16 %v9727_v31, %v9726_v21  ;;  %v9734_v21 = vand.u32 4294901760, %v8064_v57  ;;  %v8633_v28 = vpack.c.bf16 %v9736_v58, %v9735_v40  ;;  %v9739_v56 = vand.u32 4294901760, %v8091_v19 }
  0xe9   : > { %v8639_v52 = vpack.c.bf16 %v9738_v13, %v9737_v17  ;;  %v9740_v57 = vand.u32 4294901760, %v9724_v3  ;;  %v9741_v33 = vand.u32 4294901760, %v8362_v43  ;;  %v9742_v42 = vand.u32 4294901760, %v8367_v16 }
  0xea   : > { %755 = vmatmul.mubr.f32.vlgmr.msra.gmra.mrb[0].mxu0 %v9725_v63  ;;  %6379 = vmatmul.mubr.f32.vlgmr.msra.gmra.mrb[0].mxu1 %v9732_v18  ;;  %v8627_v31 = vpack.c.bf16 %v9734_v21, %v9733_v34  ;;  %v9743_v61 = vand.u32 4294901760, %v8109_v39  ;;  %v9744_v12 = vand.u32 4294901760, %v8114_v53  ;;  %v9745_v19 = vand.u32 4294901760, %v8121_v4 }
  0xeb   : > { %6939 = vmatpush1.bf16.msra.mxu0 %v6938_v36  ;;  %7131 = vmatpush3.bf16.msra.mxu1 %v7128_v10  ;;  %v8645_v47 = vpack.c.bf16 %v9740_v57, %v9739_v56  ;;  %v8651_v2 = vpack.c.bf16 %v9742_v42, %v9741_v33  ;;  %v9746_v36 = vand.u32 4294901760, %v8123_v5  ;;  %v9747_v43 = vand.u32 4294901760, %v8388_v38 }
  0xec   : > { %v8657_v0 = vpack.c.bf16 %v9744_v12, %v9743_v61  ;;  %6941 = vmatprep.subr.bf16.mxu0 %v6940_v29  ;;  %7133 = vmatprep.subr.bf16.mxu1 %v7132_v7  ;;  %v9748_v16 = vand.u32 4294901760, %v8403_v55  ;;  %v9749_v39 = vand.u32 4294901760, %v8133_v23  ;;  %v9750_v53 = vand.u32 4294901760, %v8143_v45 }
  0xed   : > { %v8663_v10 = vpack.c.bf16 %v9746_v36, %v9745_v19  ;;  %760 = vmatprep.mubr.f32.mxu0 %v9701_v44  ;;  %6381 = vmatprep.mubr.f32.mxu1 %v8508_v11  ;;  %v9751_v4 = vand.u32 4294901760, %v8152_v6  ;;  %v9752_v5 = vand.u32 4294901760, %v8154_v8  ;;  %v9753_v38 = vand.u32 4294901760, %v8431_v62 }
  0xee   : > { %v8669_v3 = vpack.c.bf16 %v9748_v16, %v9747_v43  ;;  %v8675_v34 = vpack.c.bf16 %v9750_v53, %v9749_v39  ;;  %v9754_v55 = vand.u32 4294901760, %v8436_v32  ;;  %v9755_v40 = vand.u32 4294901760, %v8162_v46  ;;  %762 = vmatmul.mubr.f32.gmra.mrb[2].mxu0 %v9732_v18  ;;  %6382 = vmatmul.mubr.f32.gmra.mrb[2].mxu1 %v8552_v54 }
  0xef   : > { %v8683_v29 = vpack.c.bf16 %v9752_v5, %v9751_v4  ;;  %v9756_v58 = vand.u32 4294901760, %v8173_v60  ;;  %v9757_v13 = vand.u32 4294901760, %v8177_v14  ;;  %v9758_v56 = vand.u32 4294901760, %v8184_v50  ;;  %6943 = vmatpush1.bf16.msra.mxu0 %v6942_v26  ;;  %7135 = vmatpush3.bf16.msra.mxu1 %v7132_v7  ;;  %v9773_v7 = vld [vmem:[#allocation41_spill] sm:$0xff] }
  0xf0   : > { %v8689_v21 = vpack.c.bf16 %v9754_v55, %v9753_v38  ;;  %v9759_v33 = vand.u32 4294901760, %v8459_v48  ;;  %v9760_v42 = vand.u32 4294901760, %v8467_v24  ;;  %v9761_v12 = vand.u32 4294901760, %v8193_v25  ;;  %v9769_v38 = vld [vmem:[#allocation39_spill] sm:$0xff]  ;;  %6945 = vmatprep.subr.bf16.mxu0 %v6944_v22  ;;  %7137 = vmatprep.subr.bf16.mxu1 %v7136_v30 }
  0xf1   : > { %v8695_v17 = vpack.c.bf16 %v9756_v58, %v9755_v40  ;;  %v8703_v57 = vpack.c.bf16 %v9758_v56, %v9757_v13  ;;  %v9762_v19 = vand.u32 4294901760, %v8201_v51  ;;  %v9763_v43 = vand.u32 4294901760, %v8209_v1  ;;  %v9771_v40 = vld [vmem:[#allocation40_spill] sm:$0xff]  ;;  %v9775_v56 = vld [vmem:[#allocation43_spill] sm:$0xff]  ;;  %767 = vmatprep.mubr.f32.mxu0 %v9701_v44 }
  0xf2   : > { %v8709_v61 = vpack.c.bf16 %v9760_v42, %v9759_v33  ;;  %v9764_v16 = vand.u32 4294901760, %v8214_v35  ;;  %v9766_v53 = vand.u32 4294901760, %v8494_v9  ;;  %v9767_v4 = vand.u32 4294901760, %v8506_v15  ;;  %v9785_v22 = vld [vmem:[#allocation47_spill] sm:$0xff]  ;;  %769 = vmatmul.mubr.f32.gmra.mrb[4].mxu0 %v8508_v11 }
  0xf3   : > { %v8715_v36 = vpack.c.bf16 %v9762_v19, %v9761_v12  ;;  %v9770_v55 = vand.u32 4294901760, %v9769_v38  ;;  %v9772_v58 = vand.u32 4294901760, %v9771_v40  ;;  %v9774_v26 = vand.u32 4294901760, %v9773_v7  ;;  %v9777_v12 = vld [vmem:[#allocation56_spill] sm:$0xff]  ;;  %6416 = vmatprep.mubr.f32.mxu1 %v9785_v22  ;;  %6947 = vmatpush1.bf16.msra.mxu0 %v6946_v59  ;;  %v9795_v59 = vld [vmem:[#allocation23_spill] sm:$0xff] }
  0xf4   : > { %v8721_v39 = vpack.c.bf16 %v9764_v16, %v9763_v43  ;;  %v8727_v5 = vpack.c.bf16 %v9767_v4, %v9766_v53  ;;  %v9776_v33 = vand.u32 4294901760, %v9775_v56  ;;  %v9778_v19 = vand.u32 4294901760, %v9777_v12  ;;  %v9779_v43 = vld [vmem:[#allocation57_spill] sm:$0xff]  ;;  %v9781_v4 = vld [vmem:[#allocation46_spill] sm:$0xff]  ;;  %7139 = vmatpush3.bf16.msra.mxu1 %v7136_v30  ;;  %6949 = vmatprep.subr.bf16.mxu0 %v6948_v27 }
  0xf5   : > { %v8733_v13 = vpack.c.bf16 %v9772_v58, %v9770_v55  ;;  %v9780_v16 = vand.u32 4294901760, %v9779_v43  ;;  %v9782_v18 = vand.u32 4294901760, %v9781_v4  ;;  %v6950_v58 = vpack.c.bf16 %v8143_v45, %v8133_v23  ;;  %7141 = vmatprep.subr.bf16.mxu1 %v7140_v20  ;;  %774 = vmatprep.mubr.f32.mxu0 %v9701_v44  ;;  %v9796_v27 = vld [vmem:[#allocation25_spill] sm:$0xff] }
  0xf6   : > { %9765 = vst [vmem:[#allocation13_spill] sm:$0xff] %v8721_v39  ;;  %9768 = vst [vmem:[#allocation17_spill] sm:$0xff] %v8727_v5  ;;  %v8739_v42 = vpack.c.bf16 %v9776_v33, %v9774_v26  ;;  %v9783_v5 = vld [vmem:[#allocation49_spill] sm:$0xff]  ;;  %v6952_v26 = vpack.c.bf16 %v8154_v8, %v8152_v6  ;;  %776 = vmatmul.mubr.f32.gmra.mrb[6].mxu0 %v8552_v54  ;;  %v6954_v30 = vpack.c.bf16 %v8173_v60, %v8162_v46  ;;  %v9804_v33 = vld [vmem:[#allocation32_spill] sm:$0xff] }
  0xf7   : > { %v8745_v53 = vpack.c.bf16 %v9780_v16, %v9778_v19  ;;  %v9784_v39 = vand.u32 4294901760, %v9783_v5  ;;  %6951 = vmatpush1.bf16.msra.mxu0 %v6950_v58  ;;  %v6956_v23 = vpack.c.bf16 %v8184_v50, %v8177_v14  ;;  %v7148_v45 = vpack.c.bf16 %v8467_v24, %v8459_v48  ;;  %910 = vmatprep.mubr.f32.mxu0 %v9701_v44  ;;  %v9786_v50 = vld [vmem:[#allocation14_spill] sm:$0xff]  ;;  %v9791_v48 = vld [vmem:[#allocation20_spill] sm:$0xff] }
  0xf8   : > { %7143 = vmatpush3.bf16.msra.mxu1 %v7140_v20  ;;  %6953 = vmatprep.subr.bf16.mxu0 %v6952_v26  ;;  %v6958_v6 = vpack.c.bf16 %v8201_v51, %v8193_v25  ;;  %v6960_v46 = vpack.c.bf16 %v8214_v35, %v8209_v1  ;;  %v7152_v60 = vpack.c.bf16 %v8506_v15, %v8494_v9  ;;  %v9787_v51 = vld [vmem:[#allocation15_spill] sm:$0xff]  ;;  %v9788_v1 = vld [vmem:[#allocation52_spill] sm:$0xff]  ;;  %v9792_v24 = vld [vmem:[#allocation54_spill] sm:$0xff] }
  0xf9   : > { %v8751_v55 = vpack.c.bf16 %v9784_v39, %v9782_v18  ;;  %v7144_v18 = vpack.c.bf16 %v8436_v32, %v8431_v62  ;;  %v6962_v8 = vpack.c.bf16 %v9771_v40, %v9769_v38  ;;  %v6964_v14 = vpack.c.bf16 %v9775_v56, %v9773_v7  ;;  %v9789_v62 = vld [vmem:[#allocation16_spill] sm:$0xff]  ;;  %v9790_v32 = vld [vmem:[#allocation19_spill] sm:$0xff]  ;;  %v9793_v9 = vld [vmem:[#allocation58_spill] sm:$0xff] }
  0xfa   : > { %v7156_v25 = vpack.c.bf16 %v9779_v43, %v9777_v12  ;;  %v6966_v35 = vpack.c.bf16 %v9783_v5, %v9781_v4  ;;  %v9794_v15 = vld [vmem:[#allocation22_spill] sm:$0xff]  ;;  %v9799_v5 = vld [vmem:[#allocation27_spill] sm:$0xff]  ;;  %v9800_v38 = vld [vmem:[#allocation28_spill] sm:$0xff] }
  0xfb   : > { %7145 = vmatprep.subr.bf16.mxu1 %v7144_v18  ;;  %6955 = vmatpush1.bf16.msra.mxu0 %v6954_v30  ;;  %v9797_v20 = vld [vmem:[#allocation50_spill] sm:$0xff]  ;;  %v9801_v40 = vld [vmem:[#allocation29_spill] sm:$0xff]  ;;  %v9803_v56 = vld [vmem:[#allocation31_spill] sm:$0xff] }
  0xfc   : > { %7147 = vmatpush3.bf16.msra.mxu1 %v7144_v18  ;;  %6957 = vmatprep.subr.bf16.mxu0 %v6956_v23  ;;  %v9798_v39 = vld [vmem:[#allocation26_spill] sm:$0xff]  ;;  %v9805_v12 = vld [vmem:[#allocation33_spill] sm:$0xff]  ;;  %v9807_v43 = vld [vmem:[#allocation35_spill] sm:$0xff] }
  0xfd   : > { %7149 = vmatprep.subr.bf16.mxu1 %v7148_v45  ;;  %v9802_v7 = vld [vmem:[#allocation30_spill] sm:$0xff]  ;;  %v9808_v16 = vld [vmem:[#allocation36_spill] sm:$0xff]  ;;  %v9809_v4 = vld [vmem:[#allocation37_spill] sm:$0xff] }
  0xfe   : > { %v9806_v19 = vld [vmem:[#allocation34_spill] sm:$0xff]  ;;  %v9812_v26 = vld [vmem:[#allocation44_spill] sm:$0xff]  ;;  %v9814_v30 = vld [vmem:[#allocation53_spill] sm:$0xff] }
  0xff   : > { %6959 = vmatpush1.bf16.msra.mxu0 %v6958_v6  ;;  %v9811_v58 = vld [vmem:[#allocation42_spill] sm:$0xff]  ;;  %v9813_v18 = vld [vmem:[#allocation48_spill] sm:$0xff]  ;;  %v9815_v23 = vld [vmem:[#allocation55_spill] sm:$0xff] }
 0x100   : > { %7151 = vmatpush3.bf16.msra.mxu1 %v7148_v45  ;;  %6961 = vmatprep.subr.bf16.mxu0 %v6960_v46 }
 0x101   : > { %7153 = vmatprep.subr.bf16.mxu1 %v7152_v60 }
 0x103   : > { %6963 = vmatpush1.bf16.msra.mxu0 %v6962_v8 }
 0x104   : > { %7155 = vmatpush3.bf16.msra.mxu1 %v7152_v60  ;;  %6965 = vmatprep.subr.bf16.mxu0 %v6964_v14 }
 0x105   : > { %7157 = vmatprep.subr.bf16.mxu1 %v7156_v25 }
 0x107   : > { %6967 = vmatpush1.bf16.msra.mxu0 %v6966_v35 }
 0x108   : > { %7159 = vmatpush3.bf16.msra.mxu1 %v7156_v25  ;;  %6969 = vmatprep.subr.bf16.mxu0 %v9786_v50 }
 0x109   : > { %7161 = vmatprep.subr.bf16.mxu1 %v9787_v51 }
 0x10a   : > { %913 = vmatmul.mubr.f32.vlgmr.msra.gmra.mrb[0].mxu0 %v9785_v22  ;;  %v9810_v22 = vld [vmem:[#allocation38_spill] sm:$0xff] }
 0x10b   : > { %6417 = vmatmul.mubr.f32.vlgmr.msra.gmra.mrb[0].mxu1 %v9788_v1  ;;  %6971 = vmatpush1.bf16.msra.mxu0 %v9789_v62 }
 0x10c   : > { %7163 = vmatpush3.bf16.msra.mxu1 %v9787_v51  ;;  %6973 = vmatprep.subr.bf16.mxu0 %v9790_v32 }
 0x10d   : > { %7165 = vmatprep.subr.bf16.mxu1 %v9791_v48  ;;  %918 = vmatprep.mubr.f32.mxu0 %v9701_v44 }
 0x10e   : > { %6419 = vmatprep.mubr.f32.mxu1 %v9792_v24  ;;  %921 = vmatmul.mubr.f32.gmra.mrb[2].mxu0 %v9788_v1 }
 0x10f   : > { %6420 = vmatmul.mubr.f32.gmra.mrb[2].mxu1 %v9793_v9  ;;  %6975 = vmatpush1.bf16.msra.mxu0 %v9794_v15 }
 0x110   : > { %7167 = vmatpush3.bf16.msra.mxu1 %v9791_v48  ;;  %6977 = vmatprep.subr.bf16.mxu0 %v9795_v59 }
 0x111   : > { %7169 = vmatprep.subr.bf16.mxu1 %v9796_v27  ;;  %926 = vmatprep.mubr.f32.mxu0 %v9701_v44 }
 0x112   : > { %6454 = vmatprep.mubr.f32.mxu1 %v9797_v20  ;;  %929 = vmatmul.mubr.f32.gmra.mrb[4].mxu0 %v9792_v24 }
 0x113   : > { %6979 = vmatpush1.bf16.msra.mxu0 %v9798_v39  ;;  %934 = vmatprep.mubr.f32.mxu0 %v9701_v44 }
 0x114   : > { %7171 = vmatpush3.bf16.msra.mxu1 %v9796_v27  ;;  %6981 = vmatprep.subr.bf16.mxu0 %v9799_v5 }
 0x115   : > { %7173 = vmatprep.subr.bf16.mxu1 %v9800_v38 }
 0x116   : > { %937 = vmatmul.mubr.f32.gmra.mrb[6].mxu0 %v9793_v9 }
 0x117   : > { %6983 = vmatpush1.bf16.msra.mxu0 %v9801_v40  ;;  %1039 = vmatprep.mubr.f32.mxu0 %v9701_v44 }
 0x118   : > { %7175 = vmatpush3.bf16.msra.mxu1 %v9800_v38  ;;  %6985 = vmatprep.subr.bf16.mxu0 %v9802_v7 }
 0x119   : > { %7177 = vmatprep.subr.bf16.mxu1 %v9803_v56 }
 0x11b   : > { %6987 = vmatpush1.bf16.msra.mxu0 %v9804_v33 }
 0x11c   : > { %7179 = vmatpush3.bf16.msra.mxu1 %v9803_v56  ;;  %6989 = vmatprep.subr.bf16.mxu0 %v9805_v12 }
 0x11d   : > { %7181 = vmatprep.subr.bf16.mxu1 %v9806_v19 }
 0x11f   : > { %6991 = vmatpush1.bf16.msra.mxu0 %v9807_v43 }
 0x120   : > { %7183 = vmatpush3.bf16.msra.mxu1 %v9806_v19  ;;  %6993 = vmatprep.subr.bf16.mxu0 %v9808_v16 }
 0x121   : > { %7185 = vmatprep.subr.bf16.mxu1 %v9809_v4 }
 0x123   : > { %6995 = vmatpush1.bf16.msra.mxu0 %v9810_v22 }
 0x124   : > { %7187 = vmatpush3.bf16.msra.mxu1 %v9809_v4  ;;  %6997 = vmatprep.subr.bf16.mxu0 %v9811_v58 }
 0x125   : > { %7189 = vmatprep.subr.bf16.mxu1 %v9812_v26 }
 0x127   : > { %6999 = vmatpush1.bf16.msra.mxu0 %v9813_v18 }
 0x128   : > { %7191 = vmatpush3.bf16.msra.mxu1 %v9812_v26  ;;  %7001 = vmatprep.subr.bf16.mxu0 %v8607_v37  ;;  %v9816_v37 = vld [vmem:[#allocation59_spill] sm:$0xff] }
 0x129   : > { %7193 = vmatprep.subr.bf16.mxu1 %v8613_v49 }
 0x12a   : > { %1043 = vmatmul.mubr.f32.vlgmr.msra.gmra.mrb[0].mxu0 %v9797_v20 }
 0x12b   : > { %6455 = vmatmul.mubr.f32.vlgmr.msra.gmra.mrb[0].mxu1 %v9814_v30  ;;  %7003 = vmatpush1.bf16.msra.mxu0 %v8619_v41  ;;  %v9818_v41 = vld [vmem:[#allocation17_spill] sm:$0xff] }
 0x12c   : > { %7195 = vmatpush3.bf16.msra.mxu1 %v8613_v49  ;;  %7005 = vmatprep.subr.bf16.mxu0 %v8627_v31  ;;  %v9817_v49 = vld [vmem:[#allocation13_spill] sm:$0xff]  ;;  %v9819_v31 = vld [vmem:[#allocation51_spill] sm:$0xff] }
 0x12d   : > { %7197 = vmatprep.subr.bf16.mxu1 %v8633_v28  ;;  %1048 = vmatprep.mubr.f32.mxu0 %v9701_v44 }
 0x12e   : > { %6457 = vmatprep.mubr.f32.mxu1 %v9815_v23  ;;  %1052 = vmatmul.mubr.f32.gmra.mrb[2].mxu0 %v9814_v30 }
 0x12f   : > { %6458 = vmatmul.mubr.f32.gmra.mrb[2].mxu1 %v9816_v37  ;;  %7007 = vmatpush1.bf16.msra.mxu0 %v8639_v52 }
 0x130   : > { %7199 = vmatpush3.bf16.msra.mxu1 %v8633_v28  ;;  %7009 = vmatprep.subr.bf16.mxu0 %v8645_v47  ;;  %v7778_v28 = vmov 0.0|0.0  }
 0x131   : > { %7201 = vmatprep.subr.bf16.mxu1 %v8651_v2  ;;  %1057 = vmatprep.mubr.f32.mxu0 %v9701_v44 }
 0x132   : > { %6492 = vmatprep.mubr.f32.mxu1 %v9725_v63  ;;  %1061 = vmatmul.mubr.f32.gmra.mrb[4].mxu0 %v9815_v23 }
 0x133   : > { %7011 = vmatpush1.bf16.msra.mxu0 %v8657_v0  ;;  %1066 = vmatprep.mubr.f32.mxu0 %v9701_v44 }
 0x134   : > { %7203 = vmatpush3.bf16.msra.mxu1 %v8651_v2  ;;  %7013 = vmatprep.subr.bf16.mxu0 %v8663_v10 }
 0x135   : > { %7205 = vmatprep.subr.bf16.mxu1 %v8669_v3 }
 0x136   : > { %1070 = vmatmul.mubr.f32.gmra.mrb[6].mxu0 %v9816_v37 }
 0x137   : > { %7015 = vmatpush1.bf16.msra.mxu0 %v8675_v34  ;;  %1236 = vmatprep.mubr.f32.mxu0 %v9701_v44 }
 0x138   : > { %7207 = vmatpush3.bf16.msra.mxu1 %v8669_v3  ;;  %7017 = vmatprep.subr.bf16.mxu0 %v8683_v29 }
 0x139   : > { %7209 = vmatprep.subr.bf16.mxu1 %v8689_v21 }
 0x13b   : > { %7019 = vmatpush1.bf16.msra.mxu0 %v8695_v17 }
 0x13c   : > { %7211 = vmatpush3.bf16.msra.mxu1 %v8689_v21  ;;  %7021 = vmatprep.subr.bf16.mxu0 %v8703_v57 }
 0x13d   : > { %7213 = vmatprep.subr.bf16.mxu1 %v8709_v61 }
 0x13f   : > { %7023 = vmatpush1.bf16.msra.mxu0 %v8715_v36 }
 0x140   : > { %7215 = vmatpush3.bf16.msra.mxu1 %v8709_v61  ;;  %7025 = vmatprep.subr.bf16.mxu0 %v9817_v49 }
 0x141   : > { %7217 = vmatprep.subr.bf16.mxu1 %v9818_v41 }
 0x143   : > { %7027 = vmatpush1.bf16.msra.mxu0 %v8733_v13 }
 0x144   : > { %7219 = vmatpush3.bf16.msra.mxu1 %v9818_v41  ;;  %7029 = vmatprep.subr.bf16.mxu0 %v8739_v42 }
 0x145   : > { %7221 = vmatprep.subr.bf16.mxu1 %v8745_v53 }
 0x147   : > { %7031 = vmatpush1.bf16.msra.mxu0 %v8751_v55 }
 0x148   : > { %7223 = vmatpush3.bf16.msra.mxu1 %v8745_v53  ;;  %7033 = vmatprep.subr.bf16.mxu0 %v9786_v50 }
 0x149   : > { %7225 = vmatprep.subr.bf16.mxu1 %v9787_v51 }
 0x14a   : > { %1238 = vmatmul.mubr.f32.vlgmr.msra.gmra.mrb[0].mxu0 %v9725_v63 }
 0x14b   : > { %6493 = vmatmul.mubr.f32.vlgmr.msra.gmra.mrb[0].mxu1 %v9819_v31  ;;  %7035 = vmatpush1.bf16.msra.mxu0 %v9789_v62 }
 0x14c   : > { %7227 = vmatpush3.bf16.msra.mxu1 %v9787_v51  ;;  %7037 = vmatprep.subr.bf16.mxu0 %v9790_v32 }
 0x14d   : > { %7229 = vmatprep.subr.bf16.mxu1 %v9791_v48  ;;  %1243 = vmatprep.mubr.f32.mxu0 %v9701_v44 }
 0x14e   : > { %6495 = vmatprep.mubr.f32.mxu1 %v8508_v11  ;;  %1245 = vmatmul.mubr.f32.gmra.mrb[2].mxu0 %v9819_v31 }
 0x14f   : > { %6496 = vmatmul.mubr.f32.gmra.mrb[2].mxu1 %v8552_v54  ;;  %7039 = vmatpush1.bf16.msra.mxu0 %v9794_v15 }
 0x150   : > { %7231 = vmatpush3.bf16.msra.mxu1 %v9791_v48  ;;  %7041 = vmatprep.subr.bf16.mxu0 %v9795_v59 }
 0x151   : > { %7233 = vmatprep.subr.bf16.mxu1 %v9796_v27  ;;  %1250 = vmatprep.mubr.f32.mxu0 %v9701_v44 }
 0x152   : > { %6530 = vmatprep.mubr.f32.mxu1 %v9725_v63  ;;  %1252 = vmatmul.mubr.f32.gmra.mrb[4].mxu0 %v8508_v11 }
 0x153   : > { %7043 = vmatpush1.bf16.msra.mxu0 %v9798_v39  ;;  %1257 = vmatprep.mubr.f32.mxu0 %v9701_v44 }
 0x154   : > { %7235 = vmatpush3.bf16.msra.mxu1 %v9796_v27  ;;  %7045 = vmatprep.subr.bf16.mxu0 %v9799_v5 }
 0x155   : > { %7237 = vmatprep.subr.bf16.mxu1 %v9800_v38 }
 0x156   : > { %1259 = vmatmul.mubr.f32.gmra.mrb[6].mxu0 %v8552_v54 }
 0x157   : > { %7047 = vmatpush1.bf16.msra.mxu0 %v9801_v40  ;;  %1361 = vmatprep.mubr.f32.mxu0 %v9701_v44 }
 0x158   : > { %7239 = vmatpush3.bf16.msra.mxu1 %v9800_v38  ;;  %7049 = vmatprep.subr.bf16.mxu0 %v9802_v7 }
 0x159   : > { %7241 = vmatprep.subr.bf16.mxu1 %v9803_v56 }
 0x15b   : > { %7051 = vmatpush1.bf16.msra.mxu0 %v9804_v33 }
 0x15c   : > { %7243 = vmatpush3.bf16.msra.mxu1 %v9803_v56  ;;  %7053 = vmatprep.subr.bf16.mxu0 %v9805_v12 }
 0x15d   : > { %7245 = vmatprep.subr.bf16.mxu1 %v9806_v19 }
 0x15f   : > { %7055 = vmatpush1.bf16.msra.mxu0 %v9807_v43 }
 0x160   : > { %7247 = vmatpush3.bf16.msra.mxu1 %v9806_v19  ;;  %7057 = vmatprep.subr.bf16.mxu0 %v9808_v16 }
 0x161   : > { %7249 = vmatprep.subr.bf16.mxu1 %v9809_v4 }
 0x163   : > { %7059 = vmatpush1.bf16.msra.mxu0 %v9810_v22 }
 0x164   : > { %7251 = vmatpush3.bf16.msra.mxu1 %v9809_v4  ;;  %7061 = vmatprep.subr.bf16.mxu0 %v9811_v58 }
 0x165   : > { %7253 = vmatprep.subr.bf16.mxu1 %v9812_v26 }
 0x167   : > { %7063 = vmatpush1.bf16.msra.mxu0 %v9813_v18 }
 0x168   : > { %7255 = vmatpush3.bf16.msra.mxu1 %v9812_v26  ;;  %7277 = vmatprep.subr.bf16.mxu0 %v7778_v28 }
 0x169   : > { %7256 = vmatprep.subr.bf16.mxu1 %v7778_v28 }
 0x16a   : > { %1363 = vmatmul.mubr.f32.vlgmr.msra.gmra.mrb[0].mxu0 %v9725_v63 }
 0x16b   : > { %6531 = vmatmul.mubr.f32.vlgmr.msra.gmra.mrb[0].mxu1 %v9819_v31  ;;  %1368 = vmatprep.mubr.f32.mxu0 %v9701_v44 }
 0x16c   : > { %6533 = vmatprep.mubr.f32.mxu1 %v8508_v11 }
 0x16e   : > { %1370 = vmatmul.mubr.f32.gmra.mrb[2].mxu0 %v9819_v31 }
 0x16f   : > { %6534 = vmatmul.mubr.f32.gmra.mrb[2].mxu1 %v8552_v54  ;;  %1375 = vmatprep.mubr.f32.mxu0 %v9701_v44 }
 0x170   : > { %6540 = vmatprep.mubr.msk.f32.mxu1 %vm7779_vm0, %v9701_v44 }
 0x172   : > { %1377 = vmatmul.mubr.f32.gmra.mrb[4].mxu0 %v8508_v11  ;;  %v2192_v11 = vld [vmem:[%s9469_s3] sm:$0xff] }
 0x173   : > { %1382 = vmatprep.mubr.f32.mxu0 %v9701_v44  ;;  %v2195_v63 = vsel %vm2193_vm1, %v2192_v11, 0 }
 0x174   : > { %v8936_v52 = vand.u32 4294901760, %v2195_v63 }
 0x176   : > { %1384 = vmatmul.mubr.f32.gmra.mrb[6].mxu0 %v8552_v54  ;;  %v8939_v54 = vsub.f32 %v2195_v63, %v8936_v52 }
 0x177   : > { %6589 = vmatprep.mubr.msk.f32.mxu0 %vm7779_vm0, %v9701_v44 }
 0x178   : > { %v8942_v47 = vand.u32 4294901760, %v8939_v54 }
 0x17a   : > { %v2270_v2 = vsub.f32 %v8939_v54, %v8942_v47 }
 0x17c   : > { %v8954_v53 = vand.u32 4294901760, %v2270_v2 }
 0x23d   : > { %v1364_v0 = vpop.f32.mrb[0].mxu0 }
 0x23e   : > { %v6532_v10 = vpop.f32.mrb[0].mxu1  ;;  %v1366_v29 = vpop.f32.mrb[1].mxu0 }
 0x23f   : > { %v2177_v3 = vcombine.high %v6532_v10, %v6532_v10  ;;  %v8947_v34 = vsel %vm2197_vm2, %v6532_v10, 0  ;;  %v2138_v21 = vpop.f32.mrb[1].mxu1  ;;  %v2172_v57 = vcombine.low %v1364_v0, %v1366_v29  ;;  %v2173_v61 = vcombine.high %v1364_v0, %v1366_v29 }
 0x240   : > { %v3126_v17 = vand.u32 4294901760, %v8947_v34  ;;  %v2174_v36 = vcombine.high %v2138_v21, %v2138_v21  ;;  %v2198_v42 = vsel %vm2197_vm2, %v2138_v21, 0 }
 0x241   : > { %v8951_v13 = vsel %vm2197_vm2, %v2177_v3, 0  ;;  %v2201_v6 = vand.u32 4294901760, %v2172_v57  ;;  %v2662_v46 = vand.u32 4294901760, %v2173_v61  ;;  %v1371_v60 = vpop.f32.mrb[2].mxu0  ;;  %v2204_v14 = vand.u32 4294901760, %v2198_v42 }
 0x242   : > { %v8959_v55 = vsub.f32 %v8947_v34, %v3126_v17  ;;  %v3587_v45 = vand.u32 4294901760, %v8951_v13  ;;  %v6535_v8 = vpop.f32.mrb[2].mxu1  ;;  %v2659_v25 = vsel %vm2197_vm2, %v2174_v36, 0  ;;  %v1373_v51 = vpop.f32.mrb[3].mxu0 }
 0x243   : > { %v2183_v35 = vcombine.high %v6535_v8, %v6535_v8  ;;  %v8964_v50 = vsel %vm2197_vm2, %v6535_v8, 0  ;;  %v2150_v1 = vpop.f32.mrb[3].mxu1  ;;  %v8972_v48 = vsub.f32 %v2172_v57, %v2201_v6  ;;  %v8974_v24 = vsub.f32 %v2173_v61, %v2662_v46 }
 0x244   : > { %v9636_v62 = vand.u32 4294901760, %v8959_v55  ;;  %v8970_v32 = vsub.f32 %v8951_v13, %v3587_v45  ;;  %v8976_v9 = vpack.c.bf16 %v2204_v14, %v2201_v6  ;;  %v8978_v15 = vsub.f32 %v2198_v42, %v2204_v14 }
 0x245   : > { %v2665_v59 = vand.u32 4294901760, %v2659_v25  ;;  %v4970_v27 = vand.u32 4294901760, %v8964_v50  ;;  %v2280_v5 = vand.u32 4294901760, %v8972_v48  ;;  %v2741_v38 = vand.u32 4294901760, %v8974_v24  ;;  %v1378_v40 = vpop.f32.mrb[4].mxu0 }
 0x246   : > { %v8984_v20 = vsub.f32 %v8959_v55, %v9636_v62  ;;  %v9637_v39 = vand.u32 4294901760, %v8970_v32  ;;  %v2287_v7 = vand.u32 4294901760, %v8978_v15  ;;  %7258 = vmatpush3.bf16.msra.mxu1 %v8976_v9  ;;  %v1380_v19 = vpop.f32.mrb[5].mxu0  ;;  %v9024_v30 = vsel %vm2197_vm2, %v2183_v35, 0 }
 0x247   : > { %v8992_v33 = vpack.c.bf16 %v2665_v59, %v2662_v46  ;;  %v8994_v12 = vsub.f32 %v2659_v25, %v2665_v59  ;;  %v9006_v4 = vsub.f32 %v8972_v48, %v2280_v5  ;;  %v9011_v22 = vsub.f32 %v8974_v24, %v2741_v38  ;;  %7259 = vmatprep.subr.bf16.mxu1 %v7778_v28 }
 0x248   : > { %v9001_v16 = vsub.f32 %v8970_v32, %v9637_v39  ;;  %v2288_v58 = vsub.f32 %v8978_v15, %v2287_v7  ;;  %v9021_v18 = vsub.f32 %v8964_v50, %v4970_v27  ;;  %v5431_v49 = vand.u32 4294901760, %v9024_v30 }
 0x249   : > { %v2748_v26 = vand.u32 4294901760, %v8994_v12  ;;  %v2282_v23 = vand.u32 4294901760, %v9006_v4  ;;  %v2743_v37 = vand.u32 4294901760, %v9011_v22  ;;  %v2175_v41 = vcombine.low %v1371_v60, %v1373_v51  ;;  %6541 = vmatmul.mubr.f32.vlgmr.msra.gmra.mrb[4].mxu1 %v8954_v53  ;;  %v1385_v31 = vpop.f32.mrb[6].mxu0 }
 0x24a   : > { %v2289_v11 = vand.u32 4294901760, %v2288_v58  ;;  %v9634_v2 = vand.u32 4294901760, %v9021_v18  ;;  %v2176_v0 = vcombine.high %v1371_v60, %v1373_v51  ;;  %v1387_v10 = vpop.f32.mrb[7].mxu0  ;;  %6547 = vmatprep.mubr.msk.f32.mxu1 %vm7779_vm0, %v9701_v44  ;;  %v9037_v3 = vsub.f32 %v9024_v30, %v5431_v49 }
 0x24b   : > { %v2749_v63 = vsub.f32 %v8994_v12, %v2748_v26  ;;  %v3123_v29 = vand.u32 4294901760, %v2175_v41  ;;  %v2180_v21 = vcombine.high %v2150_v1, %v2150_v1  ;;  %v4042_v57 = vsel %vm2197_vm2, %v2150_v1, 0 }
 0x24c   : > { %v9043_v61 = vsub.f32 %v9021_v18, %v9634_v2  ;;  %v3584_v36 = vand.u32 4294901760, %v2176_v0  ;;  %v4048_v42 = vand.u32 4294901760, %v4042_v57  ;;  %v2178_v6 = vcombine.low %v1378_v40, %v1380_v19 }
 0x24d   : > { %v9635_v46 = vand.u32 4294901760, %v9037_v3  ;;  %v9048_v60 = vpack.c.bf16 %v3126_v17, %v3123_v29  ;;  %v9050_v8 = vsub.f32 %v2175_v41, %v3123_v29  ;;  %v4503_v14 = vsel %vm2197_vm2, %v2180_v21, 0 }
 0x24e   : > { %v9056_v35 = vpack.c.bf16 %v3587_v45, %v3584_v36  ;;  %v9058_v51 = vsub.f32 %v2176_v0, %v3584_v36  ;;  %v9060_v1 = vsub.f32 %v4042_v57, %v4048_v42  ;;  %v4509_v59 = vand.u32 4294901760, %v4503_v14 }
 0x24f   : > { %v9065_v34 = vsub.f32 %v9037_v3, %v9635_v46  ;;  %v3202_v17 = vand.u32 4294901760, %v9050_v8  ;;  %v2179_v4 = vcombine.high %v1378_v40, %v1380_v19  ;;  %v4045_v13 = vand.u32 4294901760, %v2178_v6 }
 0x250   : > { %v3663_v58 = vand.u32 4294901760, %v9058_v51  ;;  %v9638_v30 = vand.u32 4294901760, %v9060_v1  ;;  %v2181_v45 = vcombine.low %v1385_v31, %v1387_v10  ;;  %v9071_v0 = vsub.f32 %v4503_v14, %v4509_v59 }
 0x251   : > { %v3203_v41 = vsub.f32 %v9050_v8, %v3202_v17  ;;  %v4506_v29 = vand.u32 4294901760, %v2179_v4  ;;  %v2182_v21 = vcombine.high %v1385_v31, %v1387_v10  ;;  %v9077_v2 = vpack.c.bf16 %v4048_v42, %v4045_v13 }
 0x252   : > { %v3664_v57 = vsub.f32 %v9058_v51, %v3663_v58  ;;  %v4132_v36 = vsub.f32 %v9060_v1, %v9638_v30  ;;  %v9079_v40 = vsub.f32 %v2178_v6, %v4045_v13  ;;  %v4592_v46 = vand.u32 4294901760, %v9071_v0 }
 0x253   : > { %v3204_v19 = vand.u32 4294901760, %v3203_v41  ;;  %v9082_v25 = vpack.c.bf16 %v4509_v59, %v4506_v29  ;;  %v9084_v62 = vsub.f32 %v2179_v4, %v4506_v29  ;;  %v4967_v10 = vand.u32 4294901760, %v2181_v45 }
 0x254   : > { %v3665_v14 = vand.u32 4294901760, %v3664_v57  ;;  %v4133_v39 = vand.u32 4294901760, %v4132_v36  ;;  %v4124_v31 = vand.u32 4294901760, %v9079_v40  ;;  %v4593_v56 = vsub.f32 %v9071_v0, %v4592_v46 }
 0x255   : > { %v4585_v30 = vand.u32 4294901760, %v9084_v62  ;;  %v5428_v42 = vand.u32 4294901760, %v2182_v21  ;;  %v7260_v43 = vpack.c.bf16 %v2289_v11, %v2282_v23  ;;  %v9092_v13 = vpack.c.bf16 %v4970_v27, %v4967_v10 }
 0x256   : > { %v4125_v6 = vsub.f32 %v9079_v40, %v4124_v31  ;;  %v9094_v59 = vsub.f32 %v2181_v45, %v4967_v10  ;;  %v2750_v4 = vand.u32 4294901760, %v2749_v63  ;;  %v7281_v36 = vpack.c.bf16 %v8994_v12, %v8974_v24 }
 0x257   : > { %v4586_v41 = vsub.f32 %v9084_v62, %v4585_v30  ;;  %v9097_v29 = vpack.c.bf16 %v5431_v49, %v5428_v42  ;;  %v9099_v57 = vsub.f32 %v2182_v21, %v5428_v42  ;;  %7261 = vmatpush3.bf16.msra.mxu1 %v7260_v43  ;;  %v7269_v27 = vpack.c.bf16 %v2287_v7, %v2280_v5 }
 0x258   : > { %v4126_v23 = vand.u32 4294901760, %v4125_v6  ;;  %v5046_v11 = vand.u32 4294901760, %v9094_v59  ;;  %v7278_v50 = vpack.c.bf16 %v2750_v4, %v2743_v37  ;;  %7262 = vmatprep.subr.bf16.mxu1 %v7778_v28  ;;  %v7287_v43 = vpack.c.bf16 %v2748_v26, %v2741_v38 }
 0x259   : > { %v4587_v49 = vand.u32 4294901760, %v4586_v41  ;;  %v5507_v63 = vand.u32 4294901760, %v9099_v57  ;;  %v3672_v45 = vand.u32 4294901760, %v9001_v16  ;;  %v9820_v37 = vand.u32 4294901760, %v8984_v20 }
 0x25a   : > { %v5047_v22 = vsub.f32 %v9094_v59, %v5046_v11  ;;  %7279 = vmatpush3.bf16.msra.mxu0 %v7278_v50  ;;  %6548 = vmatmul.mubr.f32.vlgmr.msra.gmra.mrb[4].mxu1 %v8936_v52  ;;  %v7317_v5 = vpack.c.bf16 %v8970_v32, %v9058_v51  ;;  %v4594_v7 = vand.u32 4294901760, %v4593_v56  ;;  %v9821_v38 = vpack.c.bf16 %v8978_v15, %v8972_v48 }
 0x25b   : > { %v9121_v21 = vpack.c.bf16 %v9820_v37, %v3204_v19  ;;  %v5508_v24 = vsub.f32 %v9099_v57, %v5507_v63  ;;  %7280 = vmatprep.subr.bf16.mxu0 %v7778_v28  ;;  %v7314_v12 = vpack.c.bf16 %v3672_v45, %v3665_v14  ;;  %v7299_v16 = vpack.c.bf16 %v8959_v55, %v9050_v8 }
 0x25c   : > { %7264 = vmatpush3.bf16.msra.mxu1 %v9821_v38  ;;  %v5516_v20 = vand.u32 4294901760, %v9065_v34  ;;  %v5048_v26 = vand.u32 4294901760, %v5047_v22  ;;  %6554 = vmatprep.mubr.msk.f32.mxu1 %vm7779_vm0, %v9701_v44  ;;  %v9822_v56 = vand.u32 4294901760, %v8970_v32  ;;  %v9823_v48 = vand.u32 4294901760, %v8959_v55 }
 0x25d   : > { %7265 = vmatprep.subr.bf16.mxu1 %v7778_v28  ;;  %v9144_v14 = vpack.c.bf16 %v4594_v7, %v4587_v49  ;;  %v5509_v10 = vand.u32 4294901760, %v5508_v24  ;;  %6590 = vmatmul.mubr.f32.vlgmr.msra.gmra.mrb[8].mxu0 %v8936_v52  ;;  %v9147_v34 = vpack.c.bf16 %v4133_v39, %v4126_v23  ;;  %v7353_v42 = vpack.c.bf16 %v9071_v0, %v9084_v62 }
 0x25e   : > { %v9138_v19 = vpack.c.bf16 %v9822_v56, %v3663_v58  ;;  %v9142_v15 = vpack.c.bf16 %v9823_v48, %v3202_v17  ;;  %v7335_v6 = vpack.c.bf16 %v9060_v1, %v9079_v40  ;;  %7282 = vmatpush3.bf16.msra.mxu0 %v7281_v36  ;;  %6596 = vmatprep.mubr.msk.f32.mxu0 %vm7779_vm0, %v9701_v44  ;;  %v9824_v17 = vand.u32 4294901760, %v9060_v1 }
 0x25f   : > { %v9155_v58 = vpack.c.bf16 %v4592_v46, %v4585_v30  ;;  %v9825_v41 = vand.u32 4294901760, %v9043_v61  ;;  %7283 = vmatprep.subr.bf16.mxu0 %v7778_v28  ;;  %v9166_v23 = vpack.c.bf16 %v5516_v20, %v5509_v10  ;;  %v7389_v36 = vpack.c.bf16 %v9037_v3, %v9099_v57 }
 0x260   : > { %v9159_v4 = vpack.c.bf16 %v9824_v17, %v4124_v31  ;;  %v7371_v50 = vpack.c.bf16 %v9021_v18, %v9094_v59  ;;  %v9826_v46 = vand.u32 4294901760, %v9037_v3  ;;  %v9827_v31 = vand.u32 4294901760, %v9021_v18 }
 0x261   : > { %v9163_v39 = vpack.c.bf16 %v9825_v41, %v5048_v26 }
 0x262   : > { %v9174_v30 = vpack.c.bf16 %v9826_v46, %v5507_v63  ;;  %v9178_v49 = vpack.c.bf16 %v9827_v31, %v5046_v11  ;;  %6555 = vmatmul.mubr.f32.vlgmr.msra.gmra.mrb[4].mxu1 %v8939_v54 }
 0x263   : > { %7267 = vmatpush3.bf16.msra.mxu1 %v8976_v9  ;;  %6561 = vmatprep.mubr.msk.f32.mxu1 %vm7779_vm0, %v9701_v44 }
 0x264   : > { %7268 = vmatprep.subr.bf16.mxu1 %v7778_v28 }
 0x265   : > { %6597 = vmatmul.mubr.f32.vlgmr.msra.gmra.mrb[8].mxu0 %v8939_v54 }
 0x266   : > { %7285 = vmatpush3.bf16.msra.mxu0 %v8992_v33  ;;  %6603 = vmatprep.mubr.msk.f32.mxu0 %vm7779_vm0, %v9701_v44 }
 0x267   : > { %7286 = vmatprep.subr.bf16.mxu0 %v7778_v28 }
 0x26a   : > { %6562 = vmatmul.mubr.f32.vlgmr.msra.gmra.mrb[4].mxu1 %v8942_v47 }
 0x26b   : > { %7270 = vmatpush3.bf16.msra.mxu1 %v7269_v27  ;;  %6568 = vmatprep.mubr.msk.f32.mxu1 %vm7779_vm0, %v9701_v44 }
 0x26c   : > { %7271 = vmatprep.subr.bf16.mxu1 %v7778_v28 }
 0x26d   : > { %6604 = vmatmul.mubr.f32.vlgmr.msra.gmra.mrb[8].mxu0 %v8942_v47 }
 0x26e   : > { %7288 = vmatpush3.bf16.msra.mxu0 %v7287_v43  ;;  %6610 = vmatprep.mubr.msk.f32.mxu0 %vm7779_vm0, %v9701_v44 }
 0x26f   : > { %7289 = vmatprep.subr.bf16.mxu0 %v7778_v28 }
 0x272   : > { %6569 = vmatmul.mubr.f32.vlgmr.msra.gmra.mrb[4].mxu1 %v8936_v52 }
 0x273   : > { %7273 = vmatpush3.bf16.msra.mxu1 %v8976_v9  ;;  %6575 = vmatprep.mubr.msk.f32.mxu1 %vm7779_vm0, %v9701_v44 }
 0x274   : > { %7274 = vmatprep.subr.bf16.mxu1 %v7778_v28 }
 0x275   : > { %6611 = vmatmul.mubr.f32.vlgmr.msra.gmra.mrb[8].mxu0 %v8936_v52 }
 0x276   : > { %7291 = vmatpush3.bf16.msra.mxu0 %v8992_v33  ;;  %6617 = vmatprep.mubr.msk.f32.mxu0 %vm7779_vm0, %v9701_v44 }
 0x277   : > { %7310 = vmatprep.subr.bf16.mxu0 %v7778_v28 }
 0x27a   : > { %6576 = vmatmul.mubr.f32.vlgmr.msra.gmra.mrb[4].mxu1 %v8936_v52 }
 0x27b   : > { %7276 = vmatpush3.bf16.msra.mxu1 %v8992_v33  ;;  %6582 = vmatprep.mubr.msk.f32.mxu1 %vm7779_vm0, %v9701_v44 }
 0x27c   : > { %7292 = vmatprep.subr.bf16.mxu1 %v7778_v28 }
 0x27d   : > { %6618 = vmatmul.mubr.f32.vlgmr.msra.gmra.mrb[8].mxu0 %v8936_v52 }
 0x27e   : > { %7312 = vmatpush3.bf16.msra.mxu0 %v9056_v35  ;;  %6583 = vmatmul.mubr.f32.vlgmr.msra.gmra.mrb[6].mxu1 %v8954_v53 }
 0x27f   : > { %7294 = vmatpush3.bf16.msra.mxu1 %v9048_v60  ;;  %6666 = vmatprep.mubr.msk.f32.mxu0 %vm7779_vm0, %v9701_v44 }
 0x280   : > { %7313 = vmatprep.subr.bf16.mxu0 %v7778_v28  ;;  %6624 = vmatprep.mubr.msk.f32.mxu1 %vm7779_vm0, %v9701_v44 }
 0x281   : > { %6667 = vmatmul.mubr.f32.vlgmr.msra.gmra.mrb[10].mxu0 %v8954_v53  ;;  %7295 = vmatprep.subr.bf16.mxu1 %v7778_v28 }
 0x282   : > { %7315 = vmatpush3.bf16.msra.mxu0 %v7314_v12  ;;  %6625 = vmatmul.mubr.f32.vlgmr.msra.gmra.mrb[8].mxu1 %v8954_v53 }
 0x283   : > { %7297 = vmatpush3.bf16.msra.mxu1 %v9121_v21  ;;  %6673 = vmatprep.mubr.msk.f32.mxu0 %vm7779_vm0, %v9701_v44 }
 0x284   : > { %7316 = vmatprep.subr.bf16.mxu0 %v7778_v28  ;;  %6631 = vmatprep.mubr.msk.f32.mxu1 %vm7779_vm0, %v9701_v44 }
 0x285   : > { %7298 = vmatprep.subr.bf16.mxu1 %v7778_v28 }
 0x289   : > { %6674 = vmatmul.mubr.f32.vlgmr.msra.gmra.mrb[10].mxu0 %v8936_v52 }
 0x28a   : > { %7318 = vmatpush3.bf16.msra.mxu0 %v7317_v5  ;;  %6632 = vmatmul.mubr.f32.vlgmr.msra.gmra.mrb[8].mxu1 %v8936_v52 }
 0x28b   : > { %7300 = vmatpush3.bf16.msra.mxu1 %v7299_v16  ;;  %6680 = vmatprep.mubr.msk.f32.mxu0 %vm7779_vm0, %v9701_v44 }
 0x28c   : > { %7319 = vmatprep.subr.bf16.mxu0 %v7778_v28  ;;  %6638 = vmatprep.mubr.msk.f32.mxu1 %vm7779_vm0, %v9701_v44 }
 0x28d   : > { %7301 = vmatprep.subr.bf16.mxu1 %v7778_v28 }
 0x291   : > { %6681 = vmatmul.mubr.f32.vlgmr.msra.gmra.mrb[10].mxu0 %v8939_v54 }
 0x292   : > { %7321 = vmatpush3.bf16.msra.mxu0 %v9056_v35  ;;  %6639 = vmatmul.mubr.f32.vlgmr.msra.gmra.mrb[8].mxu1 %v8939_v54 }
 0x293   : > { %7303 = vmatpush3.bf16.msra.mxu1 %v9048_v60  ;;  %6687 = vmatprep.mubr.msk.f32.mxu0 %vm7779_vm0, %v9701_v44 }
 0x294   : > { %7322 = vmatprep.subr.bf16.mxu0 %v7778_v28  ;;  %6645 = vmatprep.mubr.msk.f32.mxu1 %vm7779_vm0, %v9701_v44 }
 0x295   : > { %7304 = vmatprep.subr.bf16.mxu1 %v7778_v28 }
 0x299   : > { %6688 = vmatmul.mubr.f32.vlgmr.msra.gmra.mrb[10].mxu0 %v8942_v47 }
 0x29a   : > { %7324 = vmatpush3.bf16.msra.mxu0 %v9138_v19  ;;  %6646 = vmatmul.mubr.f32.vlgmr.msra.gmra.mrb[8].mxu1 %v8942_v47 }
 0x29b   : > { %7306 = vmatpush3.bf16.msra.mxu1 %v9142_v15  ;;  %6694 = vmatprep.mubr.msk.f32.mxu0 %vm7779_vm0, %v9701_v44 }
 0x29c   : > { %7325 = vmatprep.subr.bf16.mxu0 %v7778_v28  ;;  %6652 = vmatprep.mubr.msk.f32.mxu1 %vm7779_vm0, %v9701_v44 }
 0x29d   : > { %7307 = vmatprep.subr.bf16.mxu1 %v7778_v28 }
 0x2a1   : > { %6695 = vmatmul.mubr.f32.vlgmr.msra.gmra.mrb[10].mxu0 %v8936_v52 }
 0x2a2   : > { %7327 = vmatpush3.bf16.msra.mxu0 %v9056_v35  ;;  %6653 = vmatmul.mubr.f32.vlgmr.msra.gmra.mrb[8].mxu1 %v8936_v52 }
 0x2a3   : > { %7309 = vmatpush3.bf16.msra.mxu1 %v9048_v60  ;;  %6701 = vmatprep.mubr.msk.f32.mxu0 %vm7779_vm0, %v9701_v44 }
 0x2a4   : > { %7346 = vmatprep.subr.bf16.mxu0 %v7778_v28  ;;  %6659 = vmatprep.mubr.msk.f32.mxu1 %vm7779_vm0, %v9701_v44 }
 0x2a5   : > { %7328 = vmatprep.subr.bf16.mxu1 %v7778_v28 }
 0x2a9   : > { %6702 = vmatmul.mubr.f32.vlgmr.msra.gmra.mrb[10].mxu0 %v8936_v52 }
 0x2aa   : > { %7348 = vmatpush3.bf16.msra.mxu0 %v9082_v25  ;;  %6660 = vmatmul.mubr.f32.vlgmr.msra.gmra.mrb[8].mxu1 %v8936_v52 }
 0x2ab   : > { %7330 = vmatpush3.bf16.msra.mxu1 %v9077_v2  ;;  %6750 = vmatprep.mubr.msk.f32.mxu0 %vm7779_vm0, %v9701_v44 }
 0x2ac   : > { %7349 = vmatprep.subr.bf16.mxu0 %v7778_v28  ;;  %6708 = vmatprep.mubr.msk.f32.mxu1 %vm7779_vm0, %v9701_v44 }
 0x2ad   : > { %6751 = vmatmul.mubr.f32.vlgmr.msra.gmra.mrb[12].mxu0 %v8954_v53  ;;  %7331 = vmatprep.subr.bf16.mxu1 %v7778_v28 }
 0x2ae   : > { %7351 = vmatpush3.bf16.msra.mxu0 %v9144_v14  ;;  %6709 = vmatmul.mubr.f32.vlgmr.msra.gmra.mrb[10].mxu1 %v8954_v53 }
 0x2af   : > { %7333 = vmatpush3.bf16.msra.mxu1 %v9147_v34  ;;  %6757 = vmatprep.mubr.msk.f32.mxu0 %vm7779_vm0, %v9701_v44 }
 0x2b0   : > { %7352 = vmatprep.subr.bf16.mxu0 %v7778_v28  ;;  %6715 = vmatprep.mubr.msk.f32.mxu1 %vm7779_vm0, %v9701_v44 }
 0x2b1   : > { %7334 = vmatprep.subr.bf16.mxu1 %v7778_v28 }
 0x2b5   : > { %6758 = vmatmul.mubr.f32.vlgmr.msra.gmra.mrb[12].mxu0 %v8936_v52 }
 0x2b6   : > { %7354 = vmatpush3.bf16.msra.mxu0 %v7353_v42  ;;  %6716 = vmatmul.mubr.f32.vlgmr.msra.gmra.mrb[10].mxu1 %v8936_v52 }
 0x2b7   : > { %7336 = vmatpush3.bf16.msra.mxu1 %v7335_v6  ;;  %6764 = vmatprep.mubr.msk.f32.mxu0 %vm7779_vm0, %v9701_v44 }
 0x2b8   : > { %7355 = vmatprep.subr.bf16.mxu0 %v7778_v28  ;;  %6722 = vmatprep.mubr.msk.f32.mxu1 %vm7779_vm0, %v9701_v44 }
 0x2b9   : > { %7337 = vmatprep.subr.bf16.mxu1 %v7778_v28 }
 0x2bd   : > { %6765 = vmatmul.mubr.f32.vlgmr.msra.gmra.mrb[12].mxu0 %v8939_v54 }
 0x2be   : > { %7357 = vmatpush3.bf16.msra.mxu0 %v9082_v25  ;;  %6723 = vmatmul.mubr.f32.vlgmr.msra.gmra.mrb[10].mxu1 %v8939_v54 }
 0x2bf   : > { %7339 = vmatpush3.bf16.msra.mxu1 %v9077_v2  ;;  %6771 = vmatprep.mubr.msk.f32.mxu0 %vm7779_vm0, %v9701_v44 }
 0x2c0   : > { %7358 = vmatprep.subr.bf16.mxu0 %v7778_v28  ;;  %6729 = vmatprep.mubr.msk.f32.mxu1 %vm7779_vm0, %v9701_v44 }
 0x2c1   : > { %7340 = vmatprep.subr.bf16.mxu1 %v7778_v28 }
 0x2c5   : > { %6772 = vmatmul.mubr.f32.vlgmr.msra.gmra.mrb[12].mxu0 %v8942_v47 }
 0x2c6   : > { %7360 = vmatpush3.bf16.msra.mxu0 %v9155_v58  ;;  %6730 = vmatmul.mubr.f32.vlgmr.msra.gmra.mrb[10].mxu1 %v8942_v47 }
 0x2c7   : > { %7342 = vmatpush3.bf16.msra.mxu1 %v9159_v4  ;;  %6778 = vmatprep.mubr.msk.f32.mxu0 %vm7779_vm0, %v9701_v44 }
 0x2c8   : > { %7361 = vmatprep.subr.bf16.mxu0 %v7778_v28  ;;  %6736 = vmatprep.mubr.msk.f32.mxu1 %vm7779_vm0, %v9701_v44 }
 0x2c9   : > { %7343 = vmatprep.subr.bf16.mxu1 %v7778_v28 }
 0x2cd   : > { %6779 = vmatmul.mubr.f32.vlgmr.msra.gmra.mrb[12].mxu0 %v8936_v52 }
 0x2ce   : > { %7363 = vmatpush3.bf16.msra.mxu0 %v9082_v25  ;;  %6737 = vmatmul.mubr.f32.vlgmr.msra.gmra.mrb[10].mxu1 %v8936_v52 }
 0x2cf   : > { %7345 = vmatpush3.bf16.msra.mxu1 %v9077_v2  ;;  %6785 = vmatprep.mubr.msk.f32.mxu0 %vm7779_vm0, %v9701_v44 }
 0x2d0   : > { %7382 = vmatprep.subr.bf16.mxu0 %v7778_v28  ;;  %6743 = vmatprep.mubr.msk.f32.mxu1 %vm7779_vm0, %v9701_v44 }
 0x2d1   : > { %7364 = vmatprep.subr.bf16.mxu1 %v7778_v28 }
 0x2d5   : > { %6786 = vmatmul.mubr.f32.vlgmr.msra.gmra.mrb[12].mxu0 %v8936_v52 }
 0x2d6   : > { %7384 = vmatpush3.bf16.msra.mxu0 %v9097_v29  ;;  %6744 = vmatmul.mubr.f32.vlgmr.msra.gmra.mrb[10].mxu1 %v8936_v52 }
 0x2d7   : > { %7366 = vmatpush3.bf16.msra.mxu1 %v9092_v13  ;;  %6834 = vmatprep.mubr.msk.f32.mxu0 %vm7779_vm0, %v9701_v44 }
 0x2d8   : > { %7385 = vmatprep.subr.bf16.mxu0 %v7778_v28  ;;  %6792 = vmatprep.mubr.msk.f32.mxu1 %vm7779_vm0, %v9701_v44 }
 0x2d9   : > { %6835 = vmatmul.mubr.f32.vlgmr.msra.gmra.mrb[14].mxu0 %v8954_v53  ;;  %7367 = vmatprep.subr.bf16.mxu1 %v7778_v28 }
 0x2da   : > { %7387 = vmatpush3.bf16.msra.mxu0 %v9166_v23  ;;  %6793 = vmatmul.mubr.f32.vlgmr.msra.gmra.mrb[12].mxu1 %v8954_v53 }
 0x2db   : > { %7369 = vmatpush3.bf16.msra.mxu1 %v9163_v39  ;;  %6841 = vmatprep.mubr.msk.f32.mxu0 %vm7779_vm0, %v9701_v44 }
 0x2dc   : > { %7388 = vmatprep.subr.bf16.mxu0 %v7778_v28  ;;  %6799 = vmatprep.mubr.msk.f32.mxu1 %vm7779_vm0, %v9701_v44 }
 0x2dd   : > { %7370 = vmatprep.subr.bf16.mxu1 %v7778_v28 }
 0x2e1   : > { %6842 = vmatmul.mubr.f32.vlgmr.msra.gmra.mrb[14].mxu0 %v8936_v52 }
 0x2e2   : > { %7390 = vmatpush3.bf16.msra.mxu0 %v7389_v36  ;;  %6800 = vmatmul.mubr.f32.vlgmr.msra.gmra.mrb[12].mxu1 %v8936_v52 }
 0x2e3   : > { %7372 = vmatpush3.bf16.msra.mxu1 %v7371_v50  ;;  %6848 = vmatprep.mubr.msk.f32.mxu0 %vm7779_vm0, %v9701_v44 }
 0x2e4   : > { %7391 = vmatprep.subr.bf16.mxu0 %v7778_v28  ;;  %6806 = vmatprep.mubr.msk.f32.mxu1 %vm7779_vm0, %v9701_v44 }
 0x2e5   : > { %7373 = vmatprep.subr.bf16.mxu1 %v7778_v28 }
 0x2e9   : > { %6849 = vmatmul.mubr.f32.vlgmr.msra.gmra.mrb[14].mxu0 %v8939_v54 }
 0x2ea   : > { %7393 = vmatpush3.bf16.msra.mxu0 %v9097_v29  ;;  %6807 = vmatmul.mubr.f32.vlgmr.msra.gmra.mrb[12].mxu1 %v8939_v54 }
 0x2eb   : > { %7375 = vmatpush3.bf16.msra.mxu1 %v9092_v13  ;;  %6855 = vmatprep.mubr.msk.f32.mxu0 %vm7779_vm0, %v9701_v44 }
 0x2ec   : > { %7394 = vmatprep.subr.bf16.mxu0 %v7778_v28  ;;  %6813 = vmatprep.mubr.msk.f32.mxu1 %vm7779_vm0, %v9701_v44 }
 0x2ed   : > { %7376 = vmatprep.subr.bf16.mxu1 %v7778_v28 }
 0x2f1   : > { %6856 = vmatmul.mubr.f32.vlgmr.msra.gmra.mrb[14].mxu0 %v8942_v47 }
 0x2f2   : > { %7396 = vmatpush3.bf16.msra.mxu0 %v9174_v30  ;;  %6814 = vmatmul.mubr.f32.vlgmr.msra.gmra.mrb[12].mxu1 %v8942_v47 }
 0x2f3   : > { %7378 = vmatpush3.bf16.msra.mxu1 %v9178_v49  ;;  %6862 = vmatprep.mubr.msk.f32.mxu0 %vm7779_vm0, %v9701_v44 }
 0x2f4   : > { %7397 = vmatprep.subr.bf16.mxu0 %v7778_v28  ;;  %6820 = vmatprep.mubr.msk.f32.mxu1 %vm7779_vm0, %v9701_v44 }
 0x2f5   : > { %7379 = vmatprep.subr.bf16.mxu1 %v7778_v28 }
 0x2f9   : > { %6863 = vmatmul.mubr.f32.vlgmr.msra.gmra.mrb[14].mxu0 %v8936_v52 }
 0x2fa   : > { %7399 = vmatpush3.bf16.msra.mxu0 %v9097_v29  ;;  %6821 = vmatmul.mubr.f32.vlgmr.msra.gmra.mrb[12].mxu1 %v8936_v52 }
 0x2fb   : > { %7381 = vmatpush3.bf16.msra.mxu1 %v9092_v13  ;;  %6869 = vmatprep.mubr.msk.f32.mxu0 %vm7779_vm0, %v9701_v44 }
 0x2fc   : > { %6827 = vmatprep.mubr.msk.f32.mxu1 %vm7779_vm0, %v9701_v44 }
 0x301   : > { %6870 = vmatmul.mubr.f32.vlgmr.msra.gmra.mrb[14].mxu0 %v8936_v52 }
 0x302   : > { %6828 = vmatmul.mubr.f32.vlgmr.msra.gmra.mrb[12].mxu1 %v8936_v52 }
 0x34d   : > { %v2655_v28 = vpop.f32.mrb[4].mxu1 }
 0x34e   : > { %v5886_v54 = vmax.f32 %v2655_v28, 0.0  ;;  %v6577_v47 = vpop.f32.mrb[5].mxu1 }
 0x350   : > { %5894 = vst [vmem:[%s9405_s25] sm:$0xff] %v5886_v54  ;;  %v3116_v53 = vpop.f32.mrb[8].mxu0 }
 0x351   : > { %v6619_v55 = vpop.f32.mrb[9].mxu0  ;;  %v2734_v62 = vpop.f32.mrb[6].mxu1 }
 0x352   : > { %v7400_v32 = vadd.f32 %v3116_v53, %v2734_v62  ;;  %v6584_v44 = vpop.f32.mrb[7].mxu1 }
 0x354   : > { %v5887_v9 = vmax.f32 %v7400_v32, 0.0 }
 0x356   : > { %5895 = vst [vmem:[%s9405_s25 + $0x8] sm:$0xff] %v5887_v9 }
 0x37c   : > { %v4038_v52 = vpop.f32.mrb[10].mxu0 }
 0x37d   : > { %v5889_v33 = vmax.f32 %v4038_v52, 0.0  ;;  %v6703_v18 = vpop.f32.mrb[11].mxu0  ;;  %v3577_v2 = vpop.f32.mrb[8].mxu1 }
 0x37e   : > { %v5888_v3 = vmax.f32 %v3577_v2, 0.0  ;;  %v6661_v61 = vpop.f32.mrb[9].mxu1 }
 0x37f   : > { %5897 = vst [vmem:[%s9405_s25 + $0x18] sm:$0xff] %v5889_v33 }
 0x380   : > { %5896 = vst [vmem:[%s9405_s25 + $0x10] sm:$0xff] %v5888_v3 }
 0x3a8   : > { %v4960_v60 = vpop.f32.mrb[12].mxu0 }
 0x3a9   : > { %v5891_v8 = vmax.f32 %v4960_v60, 0.0  ;;  %v6787_v25 = vpop.f32.mrb[13].mxu0  ;;  %v4499_v35 = vpop.f32.mrb[10].mxu1 }
 0x3aa   : > { %v5890_v51 = vmax.f32 %v4499_v35, 0.0  ;;  %v6745_v1 = vpop.f32.mrb[11].mxu1 }
 0x3ab   : > { %5899 = vst [vmem:[%s9405_s25 + $0x28] sm:$0xff] %v5891_v8 }
 0x3ac   : > { %5898 = vst [vmem:[%s9405_s25 + $0x20] sm:$0xff] %v5890_v51 }
 0x3d4   : > { %v5882_v0 = vpop.f32.mrb[14].mxu0 }
 0x3d5   : > { %v5893_v40 = vmax.f32 %v5882_v0, 0.0  ;;  %v6871_v13 = vpop.f32.mrb[15].mxu0  ;;  %v5421_v59 = vpop.f32.mrb[12].mxu1 }
 0x3d6   : > { %v5892_v29 = vmax.f32 %v5421_v59, 0.0  ;;  %v6829_v57 = vpop.f32.mrb[13].mxu1 }
 0x3d7   : > { %5901 = vst [vmem:[%s9405_s25 + $0x38] sm:$0xff] %v5893_v40 }
 0x3d8   : > { %5900 = vst [vmem:[%s9405_s25 + $0x30] sm:$0xff] %v5892_v29 }
 0x3d9   : > { %7709 = shalt.err (!%p7706_p6)
}
 0x3da   : > { %s7710_s29 = scalar_lea.hbm %s9420_s14, 1024  ;;  %s7714_s12 = scalar_lea.hbm %s9470_s4, 2048 }
 0x3db   : > { %p7711_p8 = scmp.ne.s32.totalorder %s9420_s14, %s7710_s29  ;;  %p7715_p4 = scmp.lt.u32.totalorder %s9420_s14, %s9470_s4 }
 0x3dc   : > { %p7716_p11 = scmp.lt.u32.totalorder %s7714_s12, %s7710_s29  ;;  %p7718_p3 = scmp.lt.u32.totalorder %s7710_s29, %s9420_s14 }
 0x3dd   : > { %p7712_p10 = pnand %p7711_p8, %p7902_p12 }
 0x3de   : > { %p7717_p13 = por %p7716_p11, %p7715_p4 }
 0x3df   : > { %p7713_p0 = pneg %p7712_p10 }
 0x3e0   : > { %p7719_p7 = por %p7718_p3, %p7717_p13 }
 0x3e2   : > { %p7720_p9 = pnand %p7719_p7, %p7713_p0 }
 0x3e4   : > { %7723 = shalt.err (!%p7720_p9)
}
 0x3e5   : > { %s7781_s9 = smov 128   ;;  %s7782_s20 = smov 8  }
 0x3e6   : > { %7547 = dma.vmem_to_hbm [thread:$0]  (%p7902_p12), %s9415_s8, 1024, %s9420_s14, %s5903_s7, %s7781_s9, %s7781_s9, %s7782_s20  }
 0x3e7 PF: > { %s5931_s25 = sand.u32 1, %s7758_s15   ;;  %p9828_p1 = scmp.ne.s32.totalorder %s9642_s22, 0 }
 0x3e8   : > { %p9829_p5 = scmp.ge.s32.totalorder %s7770_s18, 2  ;;  %s5932_s11 = scalar_lea.sflag [#allocation4], %s5931_s25 }
 0x3ea   : > { %p7561_p2 = pnand %p9829_p5, %p9828_p1 }
 0x3ec   : > { %7753 = dma.done.wait (!%p7561_p2), %s5932_s11, 1024  }
 0x3ed   : > { %7755 = vsyncadd (!%p7561_p2), %s5932_s11, 4294966272  ;;  %p20_p6 = scmp.ge.s32.totalorder %s7864_s27, 4   ;;  %s9830_s15 = smov %s7762_s16 }
 0x3ee   : > { %s9831_s16 = smov %s7766_s17  ;;  %s9832_s17 = smov %s7898_s24 }
 0x3ef   : > { %s9833_s18 = smov %s7864_s27  ;;  %22 = sbr.rel (!%p20_p6) target bundleno = 10 (0xa), region = 100 }
 0x3f6   :  { %5937 = vsyncpa [#allocation3], 1 }
 0x3f7   :  { %5939 = vsyncpa [#allocation3 + $0x1], 1 }
 0x3f8   :  { %5940 = vsyncpa [#allocation6], 1 }
 0x3f9   :  { %5942 = vsyncpa [#allocation6 + $0x1], 1 }
 0x3fa   :  { %5943 = vsyncpa [#allocation4], 1 }
 0x3fb   :  { %5945 = vsyncpa [#allocation4 + $0x1], 1 }

// kernel: tpu_custom_call.1
= control target key start
LH: loop header
LB: loop body
LE: loop exit
PB: predicated region body
PF: predicated region fallthrough
CT: control target
= control target key end

     0   :  { %s9466_s0 = inlined_call_operand.hbm [shape: f32[2,32,128], index: 0, kind: input, shape index: {}]   ;;  %s9467_s1 = inlined_call_operand.hbm [shape: f32[2,128,128], index: 1, kind: input, shape index: {}]   ;;  %s9468_s2 = inlined_call_operand.hbm [shape: f32[3,128,128], index: 2, kind: input, shape index: {}]   ;;  %s9469_s3 = inlined_call_operand.vmem [shape: f32[8,12], index: 3, kind: input, shape index: {}]   ;;  %s9470_s4 = inlined_call_operand.hbm [shape: f32[2,8,8,128], index: 4, kind: output, shape index: {}]  }
   0x1   :  { %9639 = sst [smem:[#allocation60_spill]] %s9466_s0 }
   0x2   :  { %9640 = sst [smem:[#allocation61_spill]] %s9468_s2 }
   0x3   :  { %9 = vsyncpa [#allocation3], 0 }
   0x4   :  { %11 = vsyncpa [#allocation3 + $0x1], 0 }
   0x5   :  { %12 = vsyncpa [#allocation6], 0 }
   0x6   :  { %14 = vsyncpa [#allocation6 + $0x1], 0 }
   0x7   :  { %15 = vsyncpa [#allocation4], 0 }
   0x8   :  { %17 = vsyncpa [#allocation4 + $0x1], 0  ;;  %s7808_s15 = smov 0   ;;  %s7810_s16 = smov 0  }
   0x9   :  { %s7812_s17 = smov 0   ;;  %s7814_s18 = smov 0  }
   0xa LB: > { %s7829_s19 = sadd.s32 4294967295, %s7770_s18   ;;  %s6021_s20 = sadd.s32 4294967294, %s7770_s18   ;;  %s7770_s18 = sphi %s7814_s18, %s9833_s18   ;;  %s7766_s17 = sphi %s7812_s17, %s9832_s17   ;;  %s7762_s16 = sphi %s7810_s16, %s9831_s16   ;;  %s7758_s15 = sphi %s7808_s15, %s9830_s15  }
   0xb   : > { %p43_p0 = scmp.ne.s32.totalorder %s7762_s16, %s7758_s15  ;;  %p9471_p1 = scmp.eq.s32.totalorder %s7829_s19, 0 }
   0xc   : > { %p141_p3 = scmp.eq.s32.totalorder %s6021_s20, 1  ;;  %p6022_p5 = scmp.ge.s32.totalorder %s7770_s18, 1 }
   0xd   : > { %p7838_p4 = por %p9471_p1, %p43_p0  ;;  %p148_p7 = scmp.lt.s32.totalorder %s7770_s18, 3 }
   0xe   : > { %p7843_p6 = por %p141_p3, %p43_p0  ;;  %s7772_s24 = smov [#allocation7]  }
   0xf   : > { %s9641_s21 = scalar_select %p7838_p4, 1, 0 }
  0x10   : > { %s9642_s22 = scalar_select %p7843_p6, 1, 0 }
  0x11   : > { %p7848_p8 = pnand %p6022_p5, %p148_p7  ;;  %s160_s25 = sshll.u32 %s7772_s24, 4  ;;  %s7852_s25 = int_to_ptr.vmem [resolvable:$true] %s160_s25 }
  0x12   : > { %s7864_s27 = sadd.s32 1, %s7770_s18   ;;  %s30_s28 = sadd.s32 1, %s7766_s17 }
  0x13   : > { %s9643_s23 = scalar_select %p7848_p8, 1, 0 }
  0x14   : > { %p7549_p9 = pneg %p7848_p8  ;;  %s27_s29 = ssub.s32 %s7770_s18, %s7864_s27 }
  0x15   : > { %s9645_s2 = sld [smem:[#allocation61_spill]] }
  0x16   : > { %p7859_p11 = pnand %p7549_p9, %p9471_p1 }
  0x18   : > { %p7610_p13 = pneg %p7859_p11 }
  0x1b   : > { %s7608_s6 = scalar_lea.hbm %s9645_s2, 6144 }
  0x1c   : > { %p7609_p12 = scmp.ne.s32.totalorder %s9645_s2, %s7608_s6  ;;  %p7615_p5 = scmp.lt.u32.totalorder %s7608_s6, %s9645_s2 }
  0x1e   : > { %p7611_p0 = pnand %p7610_p13, %p7609_p12 }
  0x20   : > { %p7612_p3 = pneg %p7611_p0 }
  0x22   : > { %p7617_p7 = pnand %p7615_p5, %p7612_p3 }
  0x24   : > { %7620 = shalt.err (!%p7617_p7)
}
  0x25   : > { %s7621_s11 = scalar_lea.vmem %s7852_s25, 6144  ;;  %p7629_p2 = scmp.lt.s32.totalorder %s7852_s25, %s7852_s25 }
  0x26   : > { %p7622_p9 = scmp.ne.s32.totalorder %s7852_s25, %s7621_s11  ;;  %p7630_p6 = scmp.lt.s32.totalorder %s7621_s11, %s7621_s11 }
  0x28   : > { %p7624_p10 = pnand %p7622_p9, %p7610_p13  ;;  %p7631_p4 = por %p7630_p6, %p7629_p2 }
  0x2a   : > { %p7625_p1 = pneg %p7624_p10 }
  0x2c   : > { %p7632_p8 = pnand %p7631_p4, %p7625_p1 }
  0x2e   : > { %7635 = shalt.err (!%p7632_p8)
}
  0x2f   : > { %s7773_s12 = smov 128   ;;  %s7774_s13 = smov 8  }
  0x30   : > { %7552 = dma.hbm_to_vmem [thread:$0]  (!%p7859_p11), %s9645_s2, 6144, %s7852_s25, [#allocation6], %s7773_s12, %s7773_s12, %s7774_s13  }
  0x31   : > { %p28_p1 = scmp.eq.s32.totalorder %s27_s29, 0  ;;  %p37_p2 = scmp.ne.s32.totalorder %s7766_s17, %s7762_s16 }
  0x32   : > { %p38_p4 = scmp.eq.s32.totalorder %s7770_s18, 0  ;;  %p7565_p6 = scmp.lt.s32.totalorder %s7770_s18, 2 }
  0x33   : > { %s7898_s24 = scalar_select %p28_p1, %s7766_s17, %s30_s28  }
  0x34   : > { %p39_p8 = por %p38_p4, %p37_p2  ;;  %p9646_p10 = scmp.eq.s32.totalorder %s7829_s19, 1 }
  0x35   : > { %s7907_s26 = sand.u32 1, %s7766_s17   ;;  %s6041_s5 = sshll.u32 %s7770_s18, 9 }
  0x36   : > { %p7902_p12 = por %p9646_p10, %p37_p2  ;;  %s6025_s6 = sshll.u32 %s7907_s26, 5 }
  0x37   : > { %s9648_s0 = sld [smem:[#allocation60_spill]]  ;;  %s181_s28 = scalar_lea.vmem [#allocation2], %s6025_s6 }
  0x38   : > { %s188_s8 = sshll.u32 %s181_s28, 4  ;;  %p7916_p11 = pnand %p7565_p6, %p39_p8  ;;  %s7920_s8 = int_to_ptr.vmem [resolvable:$true] %s188_s8 }
  0x39   : > { %s198_s10 = sand.u32 1, %s7770_s18   ;;  %s178_s11 = scalar_lea.sflag [#allocation3], %s7907_s26 }
  0x3a   : > { %p7638_p0 = pneg %p7916_p11 }
  0x3d   : > { %s7914_s29 = scalar_lea.hbm %s9648_s0, %s6041_s5  ;;  %s7641_s6 = scalar_lea.hbm %s9648_s0, 1024 }
  0x3e   : > { %s7636_s14 = scalar_lea.hbm %s7914_s29, 512  ;;  %p7642_p7 = scmp.lt.u32.totalorder %s7914_s29, %s9648_s0 }
  0x3f   : > { %p7637_p13 = scmp.ne.s32.totalorder %s7914_s29, %s7636_s14  ;;  %p7643_p9 = scmp.lt.u32.totalorder %s7641_s6, %s7636_s14 }
  0x40   : > { %p7645_p2 = scmp.lt.u32.totalorder %s7636_s14, %s7914_s29 }
  0x41   : > { %p7639_p3 = pnand %p7638_p0, %p7637_p13  ;;  %p7644_p1 = por %p7643_p9, %p7642_p7 }
  0x43   : > { %p7640_p5 = pneg %p7639_p3  ;;  %p7646_p4 = por %p7645_p2, %p7644_p1 }
  0x45   : > { %p7647_p6 = pnand %p7646_p4, %p7640_p5 }
  0x47   : > { %7650 = shalt.err (!%p7647_p6)
}
  0x48   : > { %s7651_s28 = scalar_lea.vmem %s7920_s8, 512  ;;  %s7775_s20 = smov [#allocation2]  }
  0x49   : > { %p7652_p8 = scmp.ne.s32.totalorder %s7920_s8, %s7651_s28  ;;  %s7656_s5 = sshll.u32 %s7775_s20, 4  ;;  %s7657_s5 = int_to_ptr.vmem [resolvable:$false] %s7656_s5 }
  0x4a   : > { %s7658_s25 = scalar_lea.vmem %s7657_s5, 1024  ;;  %p7659_p3 = scmp.lt.s32.totalorder %s7920_s8, %s7657_s5 }
  0x4b   : > { %p7654_p10 = pnand %p7652_p8, %p7638_p0  ;;  %p7660_p7 = scmp.lt.s32.totalorder %s7658_s25, %s7651_s28 }
  0x4d   : > { %p7655_p13 = pneg %p7654_p10  ;;  %p7661_p9 = por %p7660_p7, %p7659_p3 }
  0x4f   : > { %p7662_p1 = pnand %p7661_p9, %p7655_p13 }
  0x51   : > { %7665 = shalt.err (!%p7662_p1)
}
  0x52   : > { %7556 = dma.hbm_to_vmem [thread:$0]  (!%p7916_p11), %s7914_s29, 512, %s7920_s8, %s178_s11, %s7773_s12, %s7773_s12, %s7774_s13  }
  0x53   : > { %s6028_s14 = sshll.u32 %s7907_s26, 7  ;;  %s6042_s6 = sshll.u32 %s7770_s18, 11 }
  0x54   : > { %s7959_s20 = scalar_lea.hbm %s9467_s1, %s6042_s6  ;;  %s202_s5 = scalar_lea.vmem [#allocation5], %s6028_s14 }
  0x55   : > { %s209_s25 = sshll.u32 %s202_s5, 4  ;;  %s7965_s0 = scalar_lea.sflag [#allocation6], %s198_s10  ;;  %s7961_s25 = int_to_ptr.vmem [resolvable:$true] %s209_s25 }
  0x56   : > { %s7666_s2 = scalar_lea.hbm %s7959_s20, 2048  ;;  %s7671_s8 = scalar_lea.hbm %s9467_s1, 4096 }
  0x57   : > { %p7667_p5 = scmp.ne.s32.totalorder %s7959_s20, %s7666_s2  ;;  %p7672_p6 = scmp.lt.u32.totalorder %s7959_s20, %s9467_s1 }
  0x58   : > { %p7673_p8 = scmp.lt.u32.totalorder %s7671_s8, %s7666_s2  ;;  %p7675_p13 = scmp.lt.u32.totalorder %s7666_s2, %s7959_s20 }
  0x59   : > { %p7669_p2 = pnand %p7667_p5, %p7638_p0 }
  0x5a   : > { %p7674_p10 = por %p7673_p8, %p7672_p6 }
  0x5b   : > { %p7670_p4 = pneg %p7669_p2 }
  0x5c   : > { %p7676_p3 = por %p7675_p13, %p7674_p10 }
  0x5e   : > { %p7677_p7 = pnand %p7676_p3, %p7670_p4 }
  0x60   : > { %7680 = shalt.err (!%p7677_p7)
}
  0x61   : > { %s7681_s10 = scalar_lea.vmem %s7961_s25, 2048  ;;  %s7776_s14 = smov [#allocation5]  }
  0x62   : > { %p7682_p9 = scmp.ne.s32.totalorder %s7961_s25, %s7681_s10  ;;  %s7686_s7 = sshll.u32 %s7776_s14, 4  ;;  %s7687_s7 = int_to_ptr.vmem [resolvable:$false] %s7686_s7 }
  0x63   : > { %s7688_s28 = scalar_lea.vmem %s7687_s7, 4096  ;;  %p7689_p2 = scmp.lt.s32.totalorder %s7961_s25, %s7687_s7 }
  0x64   : > { %p7684_p1 = pnand %p7682_p9, %p7638_p0  ;;  %p7690_p6 = scmp.lt.s32.totalorder %s7688_s28, %s7681_s10 }
  0x66   : > { %p7685_p5 = pneg %p7684_p1  ;;  %p7691_p8 = por %p7690_p6, %p7689_p2 }
  0x68   : > { %p7692_p10 = pnand %p7691_p8, %p7685_p5 }
  0x6a   : > { %7695 = shalt.err (!%p7692_p10)
}
  0x6b   : > { %7559 = dma.hbm_to_vmem [thread:$0]  (!%p7916_p11), %s7959_s20, 2048, %s7961_s25, %s7965_s0, %s7773_s12, %s7773_s12, %s7774_s13  }
  0x6c   : > { %p9650_p0 = scmp.ne.s32.totalorder %s9643_s23, 0 }
  0x6e   : > { %221 = sbr.rel (%p9650_p0) target bundleno = 999 (0x3e7), region = 36 }
  0x75   : > { %s7997_s2 = sand.u32 1, %s7762_s16   ;;  %p9651_p4 = scmp.ne.s32.totalorder %s9641_s21, 0 }
  0x76   : > { %s6032_s5 = sshll.u32 %s7997_s2, 5  ;;  %s224_s26 = scalar_lea.sflag [#allocation3], %s7997_s2 }
  0x77   : > { %s8001_s29 = scalar_lea.vmem [#allocation2], %s6032_s5 }
  0x78   : > { %7741 = dma.done.wait (%p9651_p4), %s224_s26, 512  }
  0x79   : > { %7743 = vsyncadd (%p9651_p4), %s224_s26, 4294966784  ;;  %s232_s0 = sand.u32 1, %s7829_s19   ;;  %s6033_s23 = sshll.u32 %s7997_s2, 7 }
  0x7a   : > { %s233_s12 = scalar_lea.sflag [#allocation6], %s232_s0  ;;  %s8009_s13 = scalar_lea.vmem [#allocation5], %s6033_s23 }
  0x7b   : > { %7745 = dma.done.wait (%p9651_p4), %s233_s12, 2048  }
  0x7c   : > { %7747 = vsyncadd (%p9651_p4), %s233_s12, 4294965248  ;;  %p9652_p11 = scmp.eq.s32.totalorder %s7829_s19, 0 }
  0x7e   : > { %7749 = dma.done.wait (%p9652_p11), [#allocation6], 6144   ;;  %p9653_p13 = pmov %p9652_p11 }
  0x7f   : > { %v9478_v0 = vmov 0.0   ;;  %v274_v1 = vld [vmem:[%s8009_s13] sm:$0xff]  ;;  %v275_v2 = vld [vmem:[%s8009_s13 + $0x8] sm:$0xff]  ;;  %v276_v13 = vld [vmem:[%s8009_s13 + $0x10] sm:$0xff]  ;;  %vm7779_vm0 = vmmov 0   ;;  %vm2193_vm1 = vcmask 97280  }
  0x80   : > { %7751 = vsyncadd (%p9653_p13), [#allocation6], 4294961152  ;;  %484 = vmatprep.mubr.f32.mxu0 %v9478_v0  ;;  %v323_v3 = vld [vmem:[#allocation7 + $0x80] sm:$0xff]  ;;  %v324_v4 = vld [vmem:[#allocation7 + $0x88] sm:$0xff]  ;;  %vm2197_vm2 = vcmask 1043456   ;;  %s6035_s20 = sshll.u32 %s7997_s2, 6 }
  0x81   : > { %v339_v5 = vmul.f32 %v323_v3, %v274_v1  ;;  %v356_v6 = vld [vmem:[#allocation7 + $0x100] sm:$0xff]  ;;  %v357_v7 = vld [vmem:[#allocation7 + $0x108] sm:$0xff]  ;;  %v340_v8 = vmul.f32 %v324_v4, %v275_v2  ;;  %v277_v17 = vld [vmem:[%s8009_s13 + $0x18] sm:$0xff]  ;;  %s9405_s25 = scalar_lea.vmem [#allocation8], %s6035_s20  ;;  %s6043_s11 = sshll.u32 %s7829_s19, 10 }
  0x82   : > { %v8022_v9 = vmul.f32 %v356_v6, %v274_v1  ;;  %v8024_v10 = vmul.f32 %v357_v7, %v275_v2  ;;  %v290_v11 = vld [vmem:[#allocation7] sm:$0xff]  ;;  %v291_v12 = vld [vmem:[#allocation7 + $0x8] sm:$0xff]  ;;  %v325_v18 = vld [vmem:[#allocation7 + $0x90] sm:$0xff]  ;;  %s5916_s8 = sshll.u32 %s9405_s25, 4  ;;  %s9420_s14 = scalar_lea.hbm %s9470_s4, %s6043_s11  ;;  %s9415_s8 = int_to_ptr.vmem [resolvable:$true] %s5916_s8 }
  0x83   : > { %v388_v14 = vand.u32 4294901760, %v339_v5  ;;  %v306_v15 = vmul.f32 %v290_v11, %v274_v1  ;;  %v307_v16 = vmul.f32 %v291_v12, %v275_v2  ;;  %v326_v19 = vld [vmem:[#allocation7 + $0x98] sm:$0xff]  ;;  %v392_v20 = vand.u32 4294901760, %v340_v8  ;;  %v358_v24 = vld [vmem:[#allocation7 + $0x110] sm:$0xff]  ;;  %v278_v32 = vld [vmem:[%s8009_s13 + $0x20] sm:$0xff]  ;;  %s5903_s7 = scalar_lea.sflag [#allocation4], %s7997_s2 }
  0x84   : > { %v9483_v21 = vand.u32 4294901760, %v8022_v9  ;;  %v9482_v22 = vand.u32 4294901760, %v8024_v10  ;;  %v341_v23 = vmul.f32 %v325_v18, %v276_v13  ;;  %v359_v25 = vld [vmem:[#allocation7 + $0x118] sm:$0xff]  ;;  %v342_v29 = vmul.f32 %v326_v19, %v277_v17  ;;  %v292_v30 = vld [vmem:[#allocation7 + $0x10] sm:$0xff]  ;;  %v279_v37 = vld [vmem:[%s8009_s13 + $0x28] sm:$0xff]  ;;  %s7696_s19 = scalar_lea.vmem %s9415_s8, 1024 }
  0x85   : > { %v8030_v26 = vsub.f32 %v339_v5, %v388_v14  ;;  %v390_v27 = vand.u32 4294901760, %v306_v15  ;;  %v394_v28 = vand.u32 4294901760, %v307_v16  ;;  %v293_v31 = vld [vmem:[#allocation7 + $0x18] sm:$0xff]  ;;  %v8033_v33 = vpack.c.bf16 %v392_v20, %v388_v14  ;;  %v327_v38 = vld [vmem:[#allocation7 + $0xa0] sm:$0xff]  ;;  %v328_v39 = vld [vmem:[#allocation7 + $0xa8] sm:$0xff]  ;;  %p7697_p3 = scmp.ne.s32.totalorder %s9415_s8, %s7696_s19  ;;  %s7780_s28 = smov [#allocation8]  }
  0x86   : > { %v8035_v34 = vsub.f32 %v340_v8, %v392_v20  ;;  %v8041_v35 = vpack.c.bf16 %v9482_v22, %v9483_v21  ;;  %v8043_v36 = vmul.f32 %v358_v24, %v276_v13  ;;  %v8052_v43 = vmul.f32 %v359_v25, %v277_v17  ;;  %v360_v48 = vld [vmem:[#allocation7 + $0x120] sm:$0xff]  ;;  %v361_v49 = vld [vmem:[#allocation7 + $0x128] sm:$0xff]  ;;  %v280_v1 = vld [vmem:[%s8009_s13 + $0x30] sm:$0xff]  ;;  %s7700_s5 = sshll.u32 %s7780_s28, 4  ;;  %s7701_s5 = int_to_ptr.vmem [resolvable:$false] %s7700_s5 }
  0x87   : > { %9654 = vst [vmem:[#allocation13_spill] sm:$0xff] %v8030_v26  ;;  %9655 = vst [vmem:[#allocation14_spill] sm:$0xff] %v8033_v33  ;;  %v8046_v40 = vpack.c.bf16 %v394_v28, %v390_v27  ;;  %v8048_v41 = vsub.f32 %v306_v15, %v390_v27  ;;  %v8050_v42 = vsub.f32 %v307_v16, %v394_v28  ;;  %6873 = vmatprep.subr.bf16.mxu0 %v8033_v33  ;;  %v294_v54 = vld [vmem:[#allocation7 + $0x20] sm:$0xff]  ;;  %v295_v63 = vld [vmem:[#allocation7 + $0x28] sm:$0xff]  ;;  %p7698_p7 = pnand %p7697_p3, %p7902_p12  ;;  %s7702_s26 = scalar_lea.vmem %s7701_s5, 2048 }
  0x88   : > { %9656 = vst [vmem:[#allocation15_spill] sm:$0xff] %v8041_v35  ;;  %7065 = vmatprep.subr.bf16.mxu1 %v8041_v35  ;;  %v396_v44 = vand.u32 4294901760, %v341_v23  ;;  %v400_v45 = vand.u32 4294901760, %v342_v29  ;;  %v9481_v46 = vand.u32 4294901760, %v8043_v36  ;;  %v308_v47 = vmul.f32 %v292_v30, %v276_v13  ;;  %v281_v6 = vld [vmem:[%s8009_s13 + $0x38] sm:$0xff]  ;;  %v329_v7 = vld [vmem:[#allocation7 + $0xb0] sm:$0xff]  ;;  %p7703_p1 = scmp.lt.s32.totalorder %s9415_s8, %s7701_s5  ;;  %p7704_p5 = scmp.lt.s32.totalorder %s7702_s26, %s7696_s19 }
  0x89   : > { %9657 = vst [vmem:[#allocation16_spill] sm:$0xff] %v8046_v40  ;;  %9658 = vst [vmem:[#allocation17_spill] sm:$0xff] %v8048_v41  ;;  %6875 = vmatpush1.bf16.msra.mxu0 %v8046_v40  ;;  %7067 = vmatpush3.bf16.msra.mxu1 %v8041_v35  ;;  %v9480_v50 = vand.u32 4294901760, %v8052_v43  ;;  %v309_v51 = vmul.f32 %v293_v31, %v277_v17  ;;  %v343_v52 = vmul.f32 %v327_v38, %v278_v32  ;;  %v330_v8 = vld [vmem:[#allocation7 + $0xb8] sm:$0xff]  ;;  %v362_v15 = vld [vmem:[#allocation7 + $0x130] sm:$0xff]  ;;  %p7699_p9 = pneg %p7698_p7 }
  0x8a   : > { %9659 = vst [vmem:[#allocation18_spill] sm:$0xff] %v8050_v42  ;;  %v344_v53 = vmul.f32 %v328_v39, %v279_v37  ;;  %v8060_v55 = vpack.c.bf16 %v400_v45, %v396_v44  ;;  %v8062_v56 = vsub.f32 %v341_v23, %v396_v44  ;;  %v8064_v57 = vsub.f32 %v342_v29, %v400_v45  ;;  %v363_v16 = vld [vmem:[#allocation7 + $0x138] sm:$0xff]  ;;  %v296_v17 = vld [vmem:[#allocation7 + $0x30] sm:$0xff]  ;;  %v282_v38 = vld [vmem:[%s8009_s13 + $0x40] sm:$0xff]  ;;  %p7705_p2 = por %p7704_p5, %p7703_p1 }
  0x8b   : > { %v398_v58 = vand.u32 4294901760, %v308_v47  ;;  %v8070_v59 = vpack.c.bf16 %v9480_v50, %v9481_v46  ;;  %v402_v60 = vand.u32 4294901760, %v309_v51  ;;  %v8072_v61 = vmul.f32 %v360_v48, %v278_v32  ;;  %v297_v24 = vld [vmem:[#allocation7 + $0x38] sm:$0xff]  ;;  %v283_v48 = vld [vmem:[%s8009_s13 + $0x48] sm:$0xff]  ;;  %v270_v33 = vld [vmem:[%s8001_s29] sm:$0xff] }
  0x8c   : > { %9660 = vst [vmem:[#allocation19_spill] sm:$0xff] %v8060_v55  ;;  %v8074_v62 = vmul.f32 %v361_v49, %v279_v37  ;;  %6877 = vmatprep.subr.bf16.mxu0 %v8060_v55  ;;  %v404_v3 = vand.u32 4294901760, %v343_v52  ;;  %v408_v4 = vand.u32 4294901760, %v344_v53  ;;  %v310_v5 = vmul.f32 %v294_v54, %v278_v32  ;;  %v331_v49 = vld [vmem:[#allocation7 + $0xc0] sm:$0xff]  ;;  %v301_v50 = vld [vmem:[#allocation7 + $0x58] sm:$0xff]  ;;  %p7706_p6 = pnand %p7705_p2, %p7699_p9 }
  0x8d   : > { %9661 = vst [vmem:[#allocation20_spill] sm:$0xff] %v8070_v59  ;;  %v8078_v2 = vsub.f32 %v308_v47, %v398_v58  ;;  %7069 = vmatprep.subr.bf16.mxu1 %v8070_v59  ;;  %v8082_v11 = vpack.c.bf16 %v402_v60, %v398_v58  ;;  %v8084_v12 = vsub.f32 %v309_v51, %v402_v60  ;;  %v9477_v13 = vand.u32 4294901760, %v8072_v61  ;;  %v332_v51 = vld [vmem:[#allocation7 + $0xc8] sm:$0xff]  ;;  %v364_v60 = vld [vmem:[#allocation7 + $0x140] sm:$0xff]  ;;  %v371_v40 = vld [vmem:[#allocation7 + $0x178] sm:$0xff] }
  0x8e   : > { %v9476_v14 = vand.u32 4294901760, %v8074_v62  ;;  %7071 = vmatpush3.bf16.msra.mxu1 %v8070_v59  ;;  %v8089_v18 = vpack.c.bf16 %v408_v4, %v404_v3  ;;  %v8091_v19 = vsub.f32 %v343_v52, %v404_v3  ;;  %v8093_v20 = vsub.f32 %v344_v53, %v408_v4 }
  0x8f   : > { %9662 = vst [vmem:[#allocation21_spill] sm:$0xff] %v8078_v2  ;;  %9663 = vst [vmem:[#allocation22_spill] sm:$0xff] %v8082_v11  ;;  %v311_v23 = vmul.f32 %v295_v63, %v279_v37  ;;  %6879 = vmatpush1.bf16.msra.mxu0 %v8082_v11  ;;  %v406_v27 = vand.u32 4294901760, %v310_v5  ;;  %v345_v28 = vmul.f32 %v329_v7, %v280_v1  ;;  %v365_v63 = vld [vmem:[#allocation7 + $0x148] sm:$0xff] }
  0x90   : > { %9664 = vst [vmem:[#allocation23_spill] sm:$0xff] %v8089_v18  ;;  %9665 = vst [vmem:[#allocation24_spill] sm:$0xff] %v8093_v20  ;;  %v8100_v25 = vpack.c.bf16 %v9476_v14, %v9477_v13  ;;  %v346_v29 = vmul.f32 %v330_v8, %v281_v6  ;;  %6881 = vmatprep.subr.bf16.mxu0 %v8089_v18  ;;  %v8103_v31 = vmul.f32 %v362_v15, %v280_v1  ;;  %v367_v14 = vld [vmem:[#allocation7 + $0x158] sm:$0xff]  ;;  %v300_v13 = vld [vmem:[#allocation7 + $0x50] sm:$0xff] }
  0x91   : > { %v410_v30 = vand.u32 4294901760, %v311_v23  ;;  %v8105_v32 = vmul.f32 %v363_v16, %v281_v6  ;;  %v312_v37 = vmul.f32 %v296_v17, %v280_v1  ;;  %v8109_v39 = vsub.f32 %v310_v5, %v406_v27  ;;  %v298_v1 = vld [vmem:[#allocation7 + $0x40] sm:$0xff]  ;;  %v299_v17 = vld [vmem:[#allocation7 + $0x48] sm:$0xff] }
  0x92   : > { %9666 = vst [vmem:[#allocation25_spill] sm:$0xff] %v8100_v25  ;;  %7073 = vmatprep.subr.bf16.mxu1 %v8100_v25  ;;  %v412_v44 = vand.u32 4294901760, %v345_v28  ;;  %v416_v45 = vand.u32 4294901760, %v346_v29  ;;  %v313_v47 = vmul.f32 %v297_v24, %v281_v6  ;;  %v9475_v54 = vand.u32 4294901760, %v8103_v31 }
  0x93   : > { %v8112_v52 = vpack.c.bf16 %v410_v30, %v406_v27  ;;  %v8114_v53 = vsub.f32 %v311_v23, %v410_v30  ;;  %7075 = vmatpush3.bf16.msra.mxu1 %v8100_v25  ;;  %v9474_v58 = vand.u32 4294901760, %v8105_v32  ;;  %v414_v6 = vand.u32 4294901760, %v312_v37  ;;  %v333_v30 = vld [vmem:[#allocation7 + $0xd0] sm:$0xff] }
  0x94   : > { %v8119_v3 = vpack.c.bf16 %v416_v45, %v412_v44  ;;  %v8121_v4 = vsub.f32 %v345_v28, %v412_v44  ;;  %v8123_v5 = vsub.f32 %v346_v29, %v416_v45  ;;  %v418_v8 = vand.u32 4294901760, %v313_v47  ;;  %v284_v29 = vld [vmem:[%s8009_s13 + $0x50] sm:$0xff] }
  0x95   : > { %9667 = vst [vmem:[#allocation26_spill] sm:$0xff] %v8112_v52  ;;  %6883 = vmatpush1.bf16.msra.mxu0 %v8112_v52  ;;  %v8130_v7 = vpack.c.bf16 %v9474_v58, %v9475_v54  ;;  %v347_v15 = vmul.f32 %v331_v49, %v282_v38  ;;  %v348_v16 = vmul.f32 %v332_v51, %v283_v48  ;;  %v285_v58 = vld [vmem:[%s8009_s13 + $0x58] sm:$0xff]  ;;  %v303_v52 = vld [vmem:[#allocation7 + $0x68] sm:$0xff] }
  0x96   : > { %9668 = vst [vmem:[#allocation27_spill] sm:$0xff] %v8119_v3  ;;  %6885 = vmatprep.subr.bf16.mxu0 %v8119_v3  ;;  %v8133_v23 = vsub.f32 %v312_v37, %v414_v6  ;;  %v8135_v24 = vmul.f32 %v364_v60, %v282_v38  ;;  %v8137_v27 = vmul.f32 %v365_v63, %v283_v48  ;;  %v334_v54 = vld [vmem:[#allocation7 + $0xd8] sm:$0xff]  ;;  %v302_v3 = vld [vmem:[#allocation7 + $0x60] sm:$0xff] }
  0x97   : > { %9669 = vst [vmem:[#allocation28_spill] sm:$0xff] %v8130_v7  ;;  %v314_v28 = vmul.f32 %v298_v1, %v282_v38  ;;  %7077 = vmatprep.subr.bf16.mxu1 %v8130_v7  ;;  %v8141_v44 = vpack.c.bf16 %v418_v8, %v414_v6  ;;  %v8143_v45 = vsub.f32 %v313_v47, %v418_v8  ;;  %v420_v49 = vand.u32 4294901760, %v347_v15  ;;  %v366_v1 = vld [vmem:[#allocation7 + $0x150] sm:$0xff] }
  0x98   : > { %v424_v51 = vand.u32 4294901760, %v348_v16  ;;  %7079 = vmatpush3.bf16.msra.mxu1 %v8130_v7  ;;  %v9487_v37 = vand.u32 4294901760, %v8135_v24  ;;  %v9486_v60 = vand.u32 4294901760, %v8137_v27  ;;  %v315_v63 = vmul.f32 %v299_v17, %v283_v48  ;;  %v287_v7 = vld [vmem:[%s8009_s13 + $0x68] sm:$0xff] }
  0x99   : > { %9670 = vst [vmem:[#allocation29_spill] sm:$0xff] %v8141_v44  ;;  %v422_v38 = vand.u32 4294901760, %v314_v28  ;;  %6887 = vmatpush1.bf16.msra.mxu0 %v8141_v44  ;;  %v8152_v6 = vsub.f32 %v347_v15, %v420_v49  ;;  %v349_v0 = vmul.f32 %v333_v30, %v284_v29  ;;  %v350_v22 = vmul.f32 %v334_v54, %v285_v58  ;;  %v336_v54 = vld [vmem:[#allocation7 + $0xe8] sm:$0xff] }
  0x9a   : > { %v8150_v47 = vpack.c.bf16 %v424_v51, %v420_v49  ;;  %v8154_v8 = vsub.f32 %v348_v16, %v424_v51  ;;  %v8160_v48 = vpack.c.bf16 %v9486_v60, %v9487_v37  ;;  %v426_v17 = vand.u32 4294901760, %v315_v63  ;;  %v286_v49 = vld [vmem:[%s8009_s13 + $0x60] sm:$0xff] }
  0x9b   : > { %v8162_v46 = vsub.f32 %v314_v28, %v422_v38  ;;  %v8165_v21 = vmul.f32 %v366_v1, %v284_v29  ;;  %v8167_v15 = vmul.f32 %v367_v14, %v285_v58  ;;  %v428_v16 = vand.u32 4294901760, %v349_v0  ;;  %v335_v51 = vld [vmem:[#allocation7 + $0xe0] sm:$0xff] }
  0x9c   : > { %9671 = vst [vmem:[#allocation30_spill] sm:$0xff] %v8150_v47  ;;  %9672 = vst [vmem:[#allocation31_spill] sm:$0xff] %v8160_v48  ;;  %6889 = vmatprep.subr.bf16.mxu0 %v8150_v47  ;;  %v316_v30 = vmul.f32 %v300_v13, %v284_v29  ;;  %7081 = vmatprep.subr.bf16.mxu1 %v8160_v48  ;;  %v8171_v44 = vpack.c.bf16 %v426_v17, %v422_v38  ;;  %v432_v37 = vand.u32 4294901760, %v350_v22  ;;  %v368_v47 = vld [vmem:[#allocation7 + $0x160] sm:$0xff]  ;;  %v369_v38 = vld [vmem:[#allocation7 + $0x168] sm:$0xff] }
  0x9d   : > { %v8173_v60 = vsub.f32 %v315_v63, %v426_v17  ;;  %v317_v28 = vmul.f32 %v301_v50, %v285_v58  ;;  %7083 = vmatpush3.bf16.msra.mxu1 %v8160_v48  ;;  %v8177_v14 = vsub.f32 %v349_v0, %v428_v16  ;;  %v9511_v13 = vand.u32 4294901760, %v8165_v21  ;;  %v288_v48 = vld [vmem:[%s8009_s13 + $0x70] sm:$0xff] }
  0x9e   : > { %9673 = vst [vmem:[#allocation32_spill] sm:$0xff] %v8171_v44  ;;  %v9510_v29 = vand.u32 4294901760, %v8167_v15  ;;  %v430_v1 = vand.u32 4294901760, %v316_v30  ;;  %6891 = vmatpush1.bf16.msra.mxu0 %v8171_v44  ;;  %v8182_v63 = vpack.c.bf16 %v432_v37, %v428_v16  ;;  %v8184_v50 = vsub.f32 %v350_v22, %v432_v37  ;;  %v289_v16 = vld [vmem:[%s8009_s13 + $0x78] sm:$0xff]  ;;  %v337_v44 = vld [vmem:[#allocation7 + $0xf0] sm:$0xff] }
  0x9f   : > { %v434_v58 = vand.u32 4294901760, %v317_v28  ;;  %v351_v17 = vmul.f32 %v335_v51, %v286_v49  ;;  %v352_v18 = vmul.f32 %v336_v54, %v287_v7  ;;  %v8195_v11 = vmul.f32 %v368_v47, %v286_v49  ;;  %v338_v22 = vld [vmem:[#allocation7 + $0xf8] sm:$0xff] }
  0xa0   : > { %9674 = vst [vmem:[#allocation33_spill] sm:$0xff] %v8182_v63  ;;  %v8191_v0 = vpack.c.bf16 %v9510_v29, %v9511_v13  ;;  %v8193_v25 = vsub.f32 %v316_v30, %v430_v1  ;;  %6893 = vmatprep.subr.bf16.mxu0 %v8182_v63  ;;  %v8203_v59 = vmul.f32 %v369_v38, %v287_v7  ;;  %v370_v13 = vld [vmem:[#allocation7 + $0x170] sm:$0xff] }
  0xa1   : > { %v8199_v37 = vpack.c.bf16 %v434_v58, %v430_v1  ;;  %v8201_v51 = vsub.f32 %v317_v28, %v434_v58  ;;  %v436_v55 = vand.u32 4294901760, %v351_v17  ;;  %v440_v29 = vand.u32 4294901760, %v352_v18 }
  0xa2   : > { %9675 = vst [vmem:[#allocation34_spill] sm:$0xff] %v8191_v0  ;;  %7085 = vmatprep.subr.bf16.mxu1 %v8191_v0  ;;  %v318_v54 = vmul.f32 %v302_v3, %v286_v49  ;;  %v319_v47 = vmul.f32 %v303_v52, %v287_v7  ;;  %v9524_v28 = vand.u32 4294901760, %v8203_v59  ;;  %v353_v38 = vmul.f32 %v337_v44, %v288_v48  ;;  %v304_v52 = vld [vmem:[#allocation7 + $0x70] sm:$0xff] }
  0xa3   : > { %9676 = vst [vmem:[#allocation35_spill] sm:$0xff] %v8199_v37  ;;  %6895 = vmatpush1.bf16.msra.mxu0 %v8199_v37  ;;  %7087 = vmatpush3.bf16.msra.mxu1 %v8191_v0  ;;  %v8209_v1 = vsub.f32 %v351_v17, %v436_v55  ;;  %v354_v58 = vmul.f32 %v338_v22, %v289_v16  ;;  %v9678_v7 = vand.u32 4294901760, %v8195_v11  ;;  %v305_v22 = vld [vmem:[#allocation7 + $0x78] sm:$0xff] }
  0xa4   : > { %v8212_v63 = vpack.c.bf16 %v440_v29, %v436_v55  ;;  %v8214_v35 = vsub.f32 %v352_v18, %v440_v29  ;;  %v438_v30 = vand.u32 4294901760, %v318_v54  ;;  %v442_v3 = vand.u32 4294901760, %v319_v47 }
  0xa5   : > { %v8220_v49 = vpack.c.bf16 %v9524_v28, %v9678_v7  ;;  %v8222_v17 = vmul.f32 %v370_v13, %v288_v48  ;;  %v8224_v37 = vmul.f32 %v371_v40, %v289_v16  ;;  %v444_v44 = vand.u32 4294901760, %v353_v38 }
  0xa6   : > { %9677 = vst [vmem:[#allocation36_spill] sm:$0xff] %v8212_v63  ;;  %6897 = vmatprep.subr.bf16.mxu0 %v8212_v63  ;;  %v8227_v55 = vpack.c.bf16 %v442_v3, %v438_v30  ;;  %v8229_v18 = vsub.f32 %v318_v54, %v438_v30  ;;  %v8231_v29 = vsub.f32 %v319_v47, %v442_v3  ;;  %v448_v0 = vand.u32 4294901760, %v354_v58 }
  0xa7   : > { %9679 = vst [vmem:[#allocation37_spill] sm:$0xff] %v8220_v49  ;;  %7089 = vmatprep.subr.bf16.mxu1 %v8220_v49  ;;  %v8235_v7 = vsub.f32 %v353_v38, %v444_v44  ;;  %v9528_v13 = vand.u32 4294901760, %v8222_v17  ;;  %v9527_v40 = vand.u32 4294901760, %v8224_v37  ;;  %v320_v28 = vmul.f32 %v304_v52, %v288_v48 }
  0xa8   : > { %9680 = vst [vmem:[#allocation38_spill] sm:$0xff] %v8227_v55  ;;  %9681 = vst [vmem:[#allocation39_spill] sm:$0xff] %v8229_v18  ;;  %6899 = vmatpush1.bf16.msra.mxu0 %v8227_v55  ;;  %7091 = vmatpush3.bf16.msra.mxu1 %v8220_v49  ;;  %v8241_v63 = vpack.c.bf16 %v448_v0, %v444_v44  ;;  %v8243_v30 = vsub.f32 %v354_v58, %v448_v0  ;;  %v9531_v47 = vand.u32 4294901760, %v8030_v26 }
  0xa9   : > { %9682 = vst [vmem:[#allocation40_spill] sm:$0xff] %v8231_v29  ;;  %9683 = vst [vmem:[#allocation41_spill] sm:$0xff] %v8235_v7  ;;  %v321_v54 = vmul.f32 %v305_v22, %v289_v16  ;;  %v8250_v38 = vpack.c.bf16 %v9527_v40, %v9528_v13  ;;  %v446_v3 = vand.u32 4294901760, %v320_v28  ;;  %v9538_v48 = vand.u32 4294901760, %v8035_v34 }
  0xaa   : > { %9684 = vst [vmem:[#allocation42_spill] sm:$0xff] %v8241_v63  ;;  %9685 = vst [vmem:[#allocation43_spill] sm:$0xff] %v8243_v30  ;;  %v8253_v52 = vand.u32 4294901760, %v270_v33  ;;  %6901 = vmatprep.subr.bf16.mxu0 %v8241_v63  ;;  %v532_v0 = vsub.f32 %v8030_v26, %v9531_v47  ;;  %v9688_v16 = vand.u32 4294901760, %v8022_v9  ;;  %v9689_v22 = vand.u32 4294901760, %v8024_v10 }
  0xab   : > { %9686 = vst [vmem:[#allocation44_spill] sm:$0xff] %v8250_v38  ;;  %v450_v44 = vand.u32 4294901760, %v321_v54  ;;  %7093 = vmatprep.subr.bf16.mxu1 %v8250_v38  ;;  %v8270_v13 = vsub.f32 %v320_v28, %v446_v3  ;;  %v544_v63 = vsub.f32 %v8035_v34, %v9538_v48  ;;  %v9541_v55 = vand.u32 4294901760, %v8048_v41 }
  0xac   : > { %9687 = vst [vmem:[#allocation45_spill] sm:$0xff] %v8253_v52  ;;  %v8262_v58 = vsub.f32 %v8022_v9, %v9688_v16  ;;  %v8267_v40 = vsub.f32 %v8024_v10, %v9689_v22  ;;  %v8276_v47 = vsub.f32 %v270_v33, %v8253_v52  ;;  %v271_v9 = vld [vmem:[%s8001_s29 + $0x8] sm:$0xff]  ;;  %7095 = vmatpush3.bf16.msra.mxu1 %v8250_v38  ;;  %v533_v10 = vand.u32 4294901760, %v532_v0 }
  0xad   : > { %9690 = vst [vmem:[#allocation46_spill] sm:$0xff] %v8270_v13  ;;  %v8280_v16 = vpack.c.bf16 %v450_v44, %v446_v3  ;;  %v8282_v49 = vsub.f32 %v321_v54, %v450_v44  ;;  %v545_v22 = vand.u32 4294901760, %v544_v63  ;;  %v538_v33 = vsub.f32 %v8048_v41, %v9541_v55 }
  0xae   : > { %9691 = vst [vmem:[#allocation47_spill] sm:$0xff] %v8276_v47  ;;  %v9546_v28 = vand.u32 4294901760, %v8262_v58  ;;  %v8287_v26 = vand.u32 4294901760, %v8276_v47  ;;  %v9553_v3 = vand.u32 4294901760, %v8050_v42  ;;  %v8298_v44 = vand.u32 4294901760, %v271_v9 }
  0xaf   : > { %9692 = vst [vmem:[#allocation48_spill] sm:$0xff] %v8280_v16  ;;  %9693 = vst [vmem:[#allocation49_spill] sm:$0xff] %v8282_v49  ;;  %6903 = vmatpush1.bf16.msra.mxu0 %v8280_v16  ;;  %v9559_v63 = vand.u32 4294901760, %v8062_v56  ;;  %v6904_v0 = vpack.c.bf16 %v545_v22, %v533_v10  ;;  %v9696_v38 = vand.u32 4294901760, %v8267_v40  ;;  %v539_v52 = vand.u32 4294901760, %v538_v33 }
  0xb0   : > { %9694 = vst [vmem:[#allocation50_spill] sm:$0xff] %v8287_v26  ;;  %v1515_v54 = vsub.f32 %v8262_v58, %v9546_v28  ;;  %9695 = vst [vmem:[#allocation51_spill] sm:$0xff] %v8298_v44  ;;  %v488_v48 = vsub.f32 %v8276_v47, %v8287_v26  ;;  %v550_v28 = vsub.f32 %v8050_v42, %v9553_v3  ;;  %v9558_v47 = vand.u32 4294901760, %v8064_v57 }
  0xb1   : > { %v1522_v55 = vsub.f32 %v8267_v40, %v9696_v38  ;;  %v8310_v41 = vsub.f32 %v271_v9, %v8298_v44  ;;  %v556_v10 = vsub.f32 %v8062_v56, %v9559_v63  ;;  %6905 = vmatprep.subr.bf16.mxu0 %v6904_v0  ;;  %v9698_v38 = vand.u32 4294901760, %v8043_v36 }
  0xb2   : > { %v1516_v16 = vand.u32 4294901760, %v1515_v54  ;;  %v489_v22 = vand.u32 4294901760, %v488_v48  ;;  %v551_v54 = vand.u32 4294901760, %v550_v28  ;;  %v9700_v44 = vand.u32 4294901760, %v8052_v43 }
  0xb3   : > { %9697 = vst [vmem:[#allocation52_spill] sm:$0xff] %v8310_v41  ;;  %v1523_v26 = vand.u32 4294901760, %v1522_v55  ;;  %v8319_v33 = vsub.f32 %v8043_v36, %v9698_v38  ;;  %v8322_v3 = vand.u32 4294901760, %v8310_v41  ;;  %v557_v9 = vand.u32 4294901760, %v556_v10 }
  0xb4   : > { %v8327_v42 = vsub.f32 %v8052_v43, %v9700_v44  ;;  %6340 = vmatprep.mubr.f32.mxu1 %v489_v22  ;;  %490 = vmatmul.mubr.f32.vlgmr.msra.gmra.mrb[0].mxu0 %v489_v22  ;;  %v568_v55 = vsub.f32 %v8064_v57, %v9558_v47  ;;  %v9565_v28 = vand.u32 4294901760, %v8078_v2  ;;  %v6906_v0 = vpack.c.bf16 %v551_v54, %v539_v52 }
  0xb5   : > { %9699 = vst [vmem:[#allocation53_spill] sm:$0xff] %v8322_v3  ;;  %v7096_v48 = vpack.c.bf16 %v1523_v26, %v1516_v16  ;;  %v9562_v36 = vand.u32 4294901760, %v8319_v33  ;;  %v499_v10 = vsub.f32 %v8310_v41, %v8322_v3  ;;  %v9569_v43 = vand.u32 4294901760, %v8084_v12 }
  0xb6   : > { %v9566_v38 = vand.u32 4294901760, %v8327_v42  ;;  %v9701_v44 = vmov 0.0   ;;  %v569_v26 = vand.u32 4294901760, %v568_v55  ;;  %v562_v22 = vsub.f32 %v8078_v2, %v9565_v28  ;;  %6907 = vmatpush1.bf16.msra.mxu0 %v6906_v0 }
  0xb7   : > { %495 = vmatprep.mubr.f32.mxu0 %v9701_v44  ;;  %7097 = vmatprep.subr.bf16.mxu1 %v7096_v48  ;;  %v1529_v16 = vsub.f32 %v8319_v33, %v9562_v36  ;;  %v9571_v52 = vand.u32 4294901760, %v8091_v19  ;;  %v500_v54 = vand.u32 4294901760, %v499_v10  ;;  %v574_v55 = vsub.f32 %v8084_v12, %v9569_v43 }
  0xb8   : > { %v1536_v47 = vsub.f32 %v8327_v42, %v9566_v38  ;;  %v9570_v63 = vand.u32 4294901760, %v8093_v20  ;;  %v6908_v3 = vpack.c.bf16 %v569_v26, %v557_v9  ;;  %v563_v41 = vand.u32 4294901760, %v562_v22 }
  0xb9   : > { %v1530_v36 = vand.u32 4294901760, %v1529_v16  ;;  %v580_v28 = vsub.f32 %v8091_v19, %v9571_v52  ;;  %6341 = vmatmul.mubr.f32.vlgmr.msra.gmra.mrb[0].mxu1 %v500_v54  ;;  %v575_v10 = vand.u32 4294901760, %v574_v55  ;;  %v9702_v2 = vand.u32 4294901760, %v8072_v61  ;;  %501 = vmatmul.mubr.f32.gmra.mrb[2].mxu0 %v500_v54 }
  0xba   : > { %v1537_v0 = vand.u32 4294901760, %v1536_v47  ;;  %v592_v38 = vsub.f32 %v8093_v20, %v9570_v63  ;;  %7099 = vmatpush3.bf16.msra.mxu1 %v7096_v48  ;;  %6909 = vmatprep.subr.bf16.mxu0 %v6908_v3  ;;  %v9703_v26 = vand.u32 4294901760, %v8074_v62  ;;  %v9575_v47 = vand.u32 4294901760, %v8109_v39 }
  0xbb   : > { %v8362_v43 = vsub.f32 %v8072_v61, %v9702_v2  ;;  %v581_v9 = vand.u32 4294901760, %v580_v28  ;;  %v9574_v22 = vand.u32 4294901760, %v8114_v53  ;;  %v6910_v63 = vpack.c.bf16 %v575_v10, %v563_v41  ;;  %506 = vmatprep.mubr.f32.mxu0 %v9701_v44 }
  0xbc   : > { %v8367_v16 = vsub.f32 %v8074_v62, %v9703_v26  ;;  %v7100_v55 = vpack.c.bf16 %v1537_v0, %v1530_v36  ;;  %v593_v52 = vand.u32 4294901760, %v592_v38  ;;  %v586_v2 = vsub.f32 %v8109_v39, %v9575_v47 }
  0xbd   : > { %v9585_v20 = vand.u32 4294901760, %v8362_v43  ;;  %v598_v62 = vsub.f32 %v8114_v53, %v9574_v22  ;;  %v9577_v3 = vand.u32 4294901760, %v8121_v4  ;;  %6911 = vmatpush1.bf16.msra.mxu0 %v6910_v63  ;;  %v9576_v36 = vand.u32 4294901760, %v8123_v5 }
  0xbe   : > { %v9584_v61 = vand.u32 4294901760, %v8367_v16  ;;  %7101 = vmatprep.subr.bf16.mxu1 %v7100_v55  ;;  %v6912_v41 = vpack.c.bf16 %v593_v52, %v581_v9  ;;  %v9704_v28 = vand.u32 4294901760, %v8103_v31  ;;  %v587_v0 = vand.u32 4294901760, %v586_v2 }
  0xbf   : > { %v1543_v48 = vsub.f32 %v8362_v43, %v9585_v20  ;;  %7103 = vmatpush3.bf16.msra.mxu1 %v7100_v55  ;;  %v599_v10 = vand.u32 4294901760, %v598_v62  ;;  %v604_v63 = vsub.f32 %v8121_v4, %v9577_v3  ;;  %v616_v9 = vsub.f32 %v8123_v5, %v9576_v36 }
  0xc0   : > { %v8388_v38 = vsub.f32 %v8103_v31, %v9704_v28  ;;  %v1550_v54 = vsub.f32 %v8367_v16, %v9584_v61  ;;  %6913 = vmatprep.subr.bf16.mxu0 %v6912_v41  ;;  %v9705_v26 = vand.u32 4294901760, %v8105_v32  ;;  %v9578_v22 = vand.u32 4294901760, %v8133_v23 }
  0xc1   : > { %v1544_v52 = vand.u32 4294901760, %v1543_v48  ;;  %v6914_v2 = vpack.c.bf16 %v599_v10, %v587_v0  ;;  %v605_v62 = vand.u32 4294901760, %v604_v63  ;;  %v617_v47 = vand.u32 4294901760, %v616_v9 }
  0xc2   : > { %v9582_v31 = vand.u32 4294901760, %v8388_v38  ;;  %v8403_v55 = vsub.f32 %v8105_v32, %v9705_v26  ;;  %v1551_v28 = vand.u32 4294901760, %v1550_v54  ;;  %v9579_v36 = vand.u32 4294901760, %v8143_v45 }
  0xc3   : > { %6915 = vmatpush1.bf16.msra.mxu0 %v6914_v2  ;;  %v610_v32 = vsub.f32 %v8133_v23, %v9578_v22  ;;  %v9580_v54 = vand.u32 4294901760, %v8152_v6  ;;  %v9583_v0 = vand.u32 4294901760, %v8154_v8  ;;  %v6916_v10 = vpack.c.bf16 %v617_v47, %v605_v62 }
  0xc4   : > { %v1557_v41 = vsub.f32 %v8388_v38, %v9582_v31  ;;  %v9581_v48 = vand.u32 4294901760, %v8403_v55  ;;  %v7104_v3 = vpack.c.bf16 %v1551_v28, %v1544_v52  ;;  %v622_v26 = vsub.f32 %v8143_v45, %v9579_v36 }
  0xc5   : > { %v611_v52 = vand.u32 4294901760, %v610_v32  ;;  %v628_v28 = vsub.f32 %v8152_v6, %v9580_v54  ;;  %v640_v2 = vsub.f32 %v8154_v8, %v9583_v0  ;;  %v9706_v47 = vand.u32 4294901760, %v8135_v24  ;;  %6917 = vmatprep.subr.bf16.mxu0 %v6916_v10 }
  0xc6   : > { %v1558_v63 = vand.u32 4294901760, %v1557_v41  ;;  %v1564_v9 = vsub.f32 %v8403_v55, %v9581_v48  ;;  %7105 = vmatprep.subr.bf16.mxu1 %v7104_v3  ;;  %v623_v22 = vand.u32 4294901760, %v622_v26  ;;  %v9707_v36 = vand.u32 4294901760, %v8137_v27 }
  0xc7   : > { %v8431_v62 = vsub.f32 %v8135_v24, %v9706_v47  ;;  %7107 = vmatpush3.bf16.msra.mxu1 %v7104_v3  ;;  %v9588_v54 = vand.u32 4294901760, %v8162_v46  ;;  %v629_v48 = vand.u32 4294901760, %v628_v28  ;;  %v641_v31 = vand.u32 4294901760, %v640_v2 }
  0xc8   : > { %v1565_v41 = vand.u32 4294901760, %v1564_v9  ;;  %v8436_v32 = vsub.f32 %v8137_v27, %v9707_v36  ;;  %v9586_v61 = vand.u32 4294901760, %v8173_v60  ;;  %v6918_v24 = vpack.c.bf16 %v623_v22, %v611_v52 }
  0xc9   : > { %v9602_v0 = vand.u32 4294901760, %v8431_v62  ;;  %v634_v10 = vsub.f32 %v8162_v46, %v9588_v54  ;;  %v6920_v9 = vpack.c.bf16 %v641_v31, %v629_v48  ;;  %v9587_v26 = vand.u32 4294901760, %v8177_v14 }
  0xca   : > { %v7108_v20 = vpack.c.bf16 %v1565_v41, %v1558_v63  ;;  %v9594_v3 = vand.u32 4294901760, %v8436_v32  ;;  %v646_v36 = vsub.f32 %v8173_v60, %v9586_v61  ;;  %6919 = vmatpush1.bf16.msra.mxu0 %v6918_v24  ;;  %v9592_v52 = vand.u32 4294901760, %v8184_v50 }
  0xcb   : > { %v1571_v27 = vsub.f32 %v8431_v62, %v9602_v0  ;;  %v635_v63 = vand.u32 4294901760, %v634_v10  ;;  %v9708_v31 = vand.u32 4294901760, %v8165_v21  ;;  %6921 = vmatprep.subr.bf16.mxu0 %v6920_v9  ;;  %v652_v47 = vsub.f32 %v8177_v14, %v9587_v26 }
  0xcc   : > { %7109 = vmatprep.subr.bf16.mxu1 %v7108_v20  ;;  %v1578_v22 = vsub.f32 %v8436_v32, %v9594_v3  ;;  %v647_v2 = vand.u32 4294901760, %v646_v36  ;;  %v9709_v41 = vand.u32 4294901760, %v8167_v15  ;;  %v664_v61 = vsub.f32 %v8184_v50, %v9592_v52 }
  0xcd   : > { %v8459_v48 = vsub.f32 %v8165_v21, %v9708_v31  ;;  %7111 = vmatpush3.bf16.msra.mxu1 %v7108_v20  ;;  %v1572_v28 = vand.u32 4294901760, %v1571_v27  ;;  %v9590_v20 = vand.u32 4294901760, %v8193_v25  ;;  %v653_v27 = vand.u32 4294901760, %v652_v47  ;;  %v272_v47 = vld [vmem:[%s8001_s29 + $0x10] sm:$0xff] }
  0xce   : > { %v8467_v24 = vsub.f32 %v8167_v15, %v9709_v41  ;;  %v1579_v10 = vand.u32 4294901760, %v1578_v22  ;;  %v6922_v9 = vpack.c.bf16 %v647_v2, %v635_v63  ;;  %v9593_v31 = vand.u32 4294901760, %v8201_v51 }
  0xcf   : > { %v9589_v21 = vand.u32 4294901760, %v8459_v48  ;;  %v665_v54 = vand.u32 4294901760, %v664_v61  ;;  %v658_v22 = vsub.f32 %v8193_v25, %v9590_v20  ;;  %v9595_v61 = vand.u32 4294901760, %v8214_v35 }
  0xd0   : > { %v9591_v36 = vand.u32 4294901760, %v8467_v24  ;;  %v7112_v26 = vpack.c.bf16 %v1579_v10, %v1572_v28  ;;  %6923 = vmatpush1.bf16.msra.mxu0 %v6922_v9  ;;  %v670_v2 = vsub.f32 %v8201_v51, %v9593_v31  ;;  %v9596_v28 = vand.u32 4294901760, %v8209_v1 }
  0xd1   : > { %v1585_v15 = vsub.f32 %v8459_v48, %v9589_v21  ;;  %v6924_v41 = vpack.c.bf16 %v665_v54, %v653_v27  ;;  %v659_v21 = vand.u32 4294901760, %v658_v22  ;;  %v9710_v20 = vand.u32 4294901760, %v8195_v11 }
  0xd2   : > { %v1592_v63 = vsub.f32 %v8467_v24, %v9591_v36  ;;  %7113 = vmatprep.subr.bf16.mxu1 %v7112_v26  ;;  %v671_v52 = vand.u32 4294901760, %v670_v2  ;;  %v676_v31 = vsub.f32 %v8209_v1, %v9596_v28  ;;  %v688_v3 = vsub.f32 %v8214_v35, %v9595_v61 }
  0xd3   : > { %v1586_v10 = vand.u32 4294901760, %v1585_v15  ;;  %v8494_v9 = vsub.f32 %v8195_v11, %v9710_v20  ;;  %7115 = vmatpush3.bf16.msra.mxu1 %v7112_v26  ;;  %6925 = vmatprep.subr.bf16.mxu0 %v6924_v41  ;;  %v9711_v27 = vand.u32 4294901760, %v8203_v59  ;;  %v8508_v11 = vand.u32 4294901760, %v272_v47 }
  0xd4   : > { %v1593_v36 = vand.u32 4294901760, %v1592_v63  ;;  %v9597_v26 = vand.u32 4294901760, %v8229_v18  ;;  %v6926_v22 = vpack.c.bf16 %v671_v52, %v659_v21  ;;  %v677_v63 = vand.u32 4294901760, %v676_v31 }
  0xd5   : > { %v9600_v54 = vand.u32 4294901760, %v8494_v9  ;;  %v8506_v15 = vsub.f32 %v8203_v59, %v9711_v27  ;;  %v689_v2 = vand.u32 4294901760, %v688_v3  ;;  %v8516_v28 = vsub.f32 %v272_v47, %v8508_v11 }
  0xd6   : > { %v7116_v20 = vpack.c.bf16 %v1593_v36, %v1586_v10  ;;  %v682_v59 = vsub.f32 %v8229_v18, %v9597_v26  ;;  %6927 = vmatpush1.bf16.msra.mxu0 %v6926_v22  ;;  %v9599_v52 = vand.u32 4294901760, %v8231_v29  ;;  %v9601_v3 = vand.u32 4294901760, %v8235_v7  ;;  %v273_v36 = vld [vmem:[%s8001_s29 + $0x18] sm:$0xff]  ;;  %v9732_v18 = vld [vmem:[#allocation51_spill] sm:$0xff] }
  0xd7   : > { %v1599_v41 = vsub.f32 %v8494_v9, %v9600_v54  ;;  %v9598_v61 = vand.u32 4294901760, %v8506_v15  ;;  %9712 = vst [vmem:[#allocation54_spill] sm:$0xff] %v8516_v28  ;;  %v6928_v27 = vpack.c.bf16 %v689_v2, %v677_v63  ;;  %v9605_v21 = vand.u32 4294901760, %v8243_v30 }
  0xd8   : > { %7117 = vmatprep.subr.bf16.mxu1 %v7116_v20  ;;  %v8529_v10 = vand.u32 4294901760, %v8516_v28  ;;  %v683_v26 = vand.u32 4294901760, %v682_v59  ;;  %v694_v22 = vsub.f32 %v8231_v29, %v9599_v52  ;;  %v700_v63 = vsub.f32 %v8235_v7, %v9601_v3 }
  0xd9   : > { %7119 = vmatpush3.bf16.msra.mxu1 %v7116_v20  ;;  %v1600_v31 = vand.u32 4294901760, %v1599_v41  ;;  %v1606_v47 = vsub.f32 %v8506_v15, %v9598_v61  ;;  %6929 = vmatprep.subr.bf16.mxu0 %v6928_v27  ;;  %v712_v20 = vsub.f32 %v8243_v30, %v9605_v21  ;;  %v9714_v2 = vand.u32 4294901760, %v8222_v17 }
  0xda   : > { %9713 = vst [vmem:[#allocation55_spill] sm:$0xff] %v8529_v10  ;;  %v510_v59 = vsub.f32 %v8516_v28, %v8529_v10  ;;  %v9716_v27 = vand.u32 4294901760, %v8224_v37  ;;  %v8552_v54 = vand.u32 4294901760, %v273_v36  ;;  %v695_v3 = vand.u32 4294901760, %v694_v22 }
  0xdb   : > { %v8543_v41 = vsub.f32 %v8222_v17, %v9714_v2  ;;  %v1607_v61 = vand.u32 4294901760, %v1606_v47  ;;  %v701_v0 = vand.u32 4294901760, %v700_v63  ;;  %v713_v7 = vand.u32 4294901760, %v712_v20 }
  0xdc   : > { %v8550_v52 = vsub.f32 %v8224_v37, %v9716_v27  ;;  %v511_v29 = vand.u32 4294901760, %v510_v59  ;;  %v8557_v47 = vsub.f32 %v273_v36, %v8552_v54  ;;  %v6930_v2 = vpack.c.bf16 %v695_v3, %v683_v26 }
  0xdd   : > { %9715 = vst [vmem:[#allocation56_spill] sm:$0xff] %v8543_v41  ;;  %v9615_v21 = vand.u32 4294901760, %v8543_v41  ;;  %v7120_v30 = vpack.c.bf16 %v1607_v61, %v1600_v31  ;;  %v6932_v10 = vpack.c.bf16 %v713_v7, %v701_v0  ;;  %v9612_v27 = vand.u32 4294901760, %v8270_v13 }
  0xde   : > { %9717 = vst [vmem:[#allocation57_spill] sm:$0xff] %v8550_v52  ;;  %v9613_v17 = vand.u32 4294901760, %v8550_v52  ;;  %9718 = vst [vmem:[#allocation58_spill] sm:$0xff] %v8557_v47  ;;  %512 = vmatmul.mubr.f32.gmra.mrb[4].mxu0 %v511_v29  ;;  %v8567_v31 = vand.u32 4294901760, %v8557_v47  ;;  %v9614_v36 = vand.u32 4294901760, %v8282_v49  ;;  %6343 = vmatprep.mubr.f32.mxu1 %v511_v29  ;;  %v6940_v29 = vpack.c.bf16 %v8064_v57, %v8062_v56 }
  0xdf   : > { %v1613_v37 = vsub.f32 %v8543_v41, %v9615_v21  ;;  %7121 = vmatprep.subr.bf16.mxu1 %v7120_v30  ;;  %6931 = vmatpush1.bf16.msra.mxu0 %v6930_v2  ;;  %v706_v0 = vsub.f32 %v8270_v13, %v9612_v27  ;;  %v9720_v2 = vld [vmem:[#allocation13_spill] sm:$0xff]  ;;  %v9729_v28 = vand.u32 4294901760, %v8267_v40 }
  0xe0   : > { %v1620_v61 = vsub.f32 %v8550_v52, %v9613_v17  ;;  %9719 = vst [vmem:[#allocation59_spill] sm:$0xff] %v8567_v31  ;;  %7123 = vmatpush3.bf16.msra.mxu1 %v7120_v30  ;;  %517 = vmatprep.mubr.f32.mxu0 %v9701_v44  ;;  %v521_v3 = vsub.f32 %v8557_v47, %v8567_v31  ;;  %v9722_v17 = vld [vmem:[#allocation18_spill] sm:$0xff]  ;;  %v9726_v21 = vand.u32 4294901760, %v9720_v2  ;;  %v9727_v31 = vand.u32 4294901760, %v8035_v34 }
  0xe1   : > { %v1614_v7 = vand.u32 4294901760, %v1613_v37  ;;  %6933 = vmatprep.subr.bf16.mxu0 %v6932_v10  ;;  %v718_v22 = vsub.f32 %v8282_v49, %v9614_v36  ;;  %v707_v63 = vand.u32 4294901760, %v706_v0  ;;  %v6936_v37 = vpack.c.bf16 %v8035_v34, %v9720_v2  ;;  %v9723_v0 = vld [vmem:[#allocation21_spill] sm:$0xff] }
  0xe2   : > { %v1621_v26 = vand.u32 4294901760, %v1620_v61  ;;  %v522_v30 = vand.u32 4294901760, %v521_v3  ;;  %v7128_v10 = vpack.c.bf16 %v8267_v40, %v8262_v58  ;;  %v9721_v61 = vld [vmem:[#allocation17_spill] sm:$0xff]  ;;  %v9724_v3 = vld [vmem:[#allocation24_spill] sm:$0xff]  ;;  %v9728_v47 = vand.u32 4294901760, %v8262_v58 }
  0xe3   : > { %v719_v59 = vand.u32 4294901760, %v718_v22  ;;  %v6938_v36 = vpack.c.bf16 %v9722_v17, %v9721_v61  ;;  %v6944_v22 = vpack.c.bf16 %v9724_v3, %v8091_v19  ;;  %v9730_v13 = vand.u32 4294901760, %v9721_v61 }
  0xe4   : > { %v7124_v20 = vpack.c.bf16 %v1621_v26, %v1614_v7  ;;  %523 = vmatmul.mubr.f32.gmra.mrb[6].mxu0 %v522_v30  ;;  %6344 = vmatmul.mubr.f32.gmra.mrb[2].mxu1 %v522_v30  ;;  %v7132_v7 = vpack.c.bf16 %v8327_v42, %v8319_v33  ;;  %v6942_v26 = vpack.c.bf16 %v8084_v12, %v9723_v0  ;;  %v9731_v52 = vand.u32 4294901760, %v9722_v17 }
  0xe5   : > { %v6934_v27 = vpack.c.bf16 %v719_v59, %v707_v63  ;;  %753 = vmatprep.mubr.f32.mxu0 %v9701_v44  ;;  %v9725_v63 = vld [vmem:[#allocation45_spill] sm:$0xff]  ;;  %v7136_v30 = vpack.c.bf16 %v8367_v16, %v8362_v43  ;;  %v6946_v59 = vpack.c.bf16 %v8114_v53, %v8109_v39  ;;  %v8613_v49 = vpack.c.bf16 %v9729_v28, %v9728_v47 }
  0xe6   : > { %7125 = vmatprep.subr.bf16.mxu1 %v7124_v20  ;;  %6378 = vmatprep.mubr.f32.mxu1 %v9725_v63  ;;  %v8619_v41 = vpack.c.bf16 %v9731_v52, %v9730_v13  ;;  %v9733_v34 = vand.u32 4294901760, %v8062_v56  ;;  %v9735_v40 = vand.u32 4294901760, %v8319_v33  ;;  %v9736_v58 = vand.u32 4294901760, %v8327_v42 }
  0xe7   : > { %6935 = vmatpush1.bf16.msra.mxu0 %v6934_v27  ;;  %7127 = vmatpush3.bf16.msra.mxu1 %v7124_v20  ;;  %v6948_v27 = vpack.c.bf16 %v8123_v5, %v8121_v4  ;;  %v7140_v20 = vpack.c.bf16 %v8403_v55, %v8388_v38  ;;  %v9737_v17 = vand.u32 4294901760, %v9723_v0  ;;  %v9738_v13 = vand.u32 4294901760, %v8084_v12 }
  0xe8   : > { %6937 = vmatprep.subr.bf16.mxu0 %v6936_v37  ;;  %7129 = vmatprep.subr.bf16.mxu1 %v7128_v10  ;;  %v8607_v37 = vpack.c.bf16 %v9727_v31, %v9726_v21  ;;  %v9734_v21 = vand.u32 4294901760, %v8064_v57  ;;  %v8633_v28 = vpack.c.bf16 %v9736_v58, %v9735_v40  ;;  %v9739_v56 = vand.u32 4294901760, %v8091_v19 }
  0xe9   : > { %v8639_v52 = vpack.c.bf16 %v9738_v13, %v9737_v17  ;;  %v9740_v57 = vand.u32 4294901760, %v9724_v3  ;;  %v9741_v33 = vand.u32 4294901760, %v8362_v43  ;;  %v9742_v42 = vand.u32 4294901760, %v8367_v16 }
  0xea   : > { %755 = vmatmul.mubr.f32.vlgmr.msra.gmra.mrb[0].mxu0 %v9725_v63  ;;  %6379 = vmatmul.mubr.f32.vlgmr.msra.gmra.mrb[0].mxu1 %v9732_v18  ;;  %v8627_v31 = vpack.c.bf16 %v9734_v21, %v9733_v34  ;;  %v9743_v61 = vand.u32 4294901760, %v8109_v39  ;;  %v9744_v12 = vand.u32 4294901760, %v8114_v53  ;;  %v9745_v19 = vand.u32 4294901760, %v8121_v4 }
  0xeb   : > { %6939 = vmatpush1.bf16.msra.mxu0 %v6938_v36  ;;  %7131 = vmatpush3.bf16.msra.mxu1 %v7128_v10  ;;  %v8645_v47 = vpack.c.bf16 %v9740_v57, %v9739_v56  ;;  %v8651_v2 = vpack.c.bf16 %v9742_v42, %v9741_v33  ;;  %v9746_v36 = vand.u32 4294901760, %v8123_v5  ;;  %v9747_v43 = vand.u32 4294901760, %v8388_v38 }
  0xec   : > { %v8657_v0 = vpack.c.bf16 %v9744_v12, %v9743_v61  ;;  %6941 = vmatprep.subr.bf16.mxu0 %v6940_v29  ;;  %7133 = vmatprep.subr.bf16.mxu1 %v7132_v7  ;;  %v9748_v16 = vand.u32 4294901760, %v8403_v55  ;;  %v9749_v39 = vand.u32 4294901760, %v8133_v23  ;;  %v9750_v53 = vand.u32 4294901760, %v8143_v45 }
  0xed   : > { %v8663_v10 = vpack.c.bf16 %v9746_v36, %v9745_v19  ;;  %760 = vmatprep.mubr.f32.mxu0 %v9701_v44  ;;  %6381 = vmatprep.mubr.f32.mxu1 %v8508_v11  ;;  %v9751_v4 = vand.u32 4294901760, %v8152_v6  ;;  %v9752_v5 = vand.u32 4294901760, %v8154_v8  ;;  %v9753_v38 = vand.u32 4294901760, %v8431_v62 }
  0xee   : > { %v8669_v3 = vpack.c.bf16 %v9748_v16, %v9747_v43  ;;  %v8675_v34 = vpack.c.bf16 %v9750_v53, %v9749_v39  ;;  %v9754_v55 = vand.u32 4294901760, %v8436_v32  ;;  %v9755_v40 = vand.u32 4294901760, %v8162_v46  ;;  %762 = vmatmul.mubr.f32.gmra.mrb[2].mxu0 %v9732_v18  ;;  %6382 = vmatmul.mubr.f32.gmra.mrb[2].mxu1 %v8552_v54 }
  0xef   : > { %v8683_v29 = vpack.c.bf16 %v9752_v5, %v9751_v4  ;;  %v9756_v58 = vand.u32 4294901760, %v8173_v60  ;;  %v9757_v13 = vand.u32 4294901760, %v8177_v14  ;;  %v9758_v56 = vand.u32 4294901760, %v8184_v50  ;;  %6943 = vmatpush1.bf16.msra.mxu0 %v6942_v26  ;;  %7135 = vmatpush3.bf16.msra.mxu1 %v7132_v7  ;;  %v9773_v7 = vld [vmem:[#allocation41_spill] sm:$0xff] }
  0xf0   : > { %v8689_v21 = vpack.c.bf16 %v9754_v55, %v9753_v38  ;;  %v9759_v33 = vand.u32 4294901760, %v8459_v48  ;;  %v9760_v42 = vand.u32 4294901760, %v8467_v24  ;;  %v9761_v12 = vand.u32 4294901760, %v8193_v25  ;;  %v9769_v38 = vld [vmem:[#allocation39_spill] sm:$0xff]  ;;  %6945 = vmatprep.subr.bf16.mxu0 %v6944_v22  ;;  %7137 = vmatprep.subr.bf16.mxu1 %v7136_v30 }
  0xf1   : > { %v8695_v17 = vpack.c.bf16 %v9756_v58, %v9755_v40  ;;  %v8703_v57 = vpack.c.bf16 %v9758_v56, %v9757_v13  ;;  %v9762_v19 = vand.u32 4294901760, %v8201_v51  ;;  %v9763_v43 = vand.u32 4294901760, %v8209_v1  ;;  %v9771_v40 = vld [vmem:[#allocation40_spill] sm:$0xff]  ;;  %v9775_v56 = vld [vmem:[#allocation43_spill] sm:$0xff]  ;;  %767 = vmatprep.mubr.f32.mxu0 %v9701_v44 }
  0xf2   : > { %v8709_v61 = vpack.c.bf16 %v9760_v42, %v9759_v33  ;;  %v9764_v16 = vand.u32 4294901760, %v8214_v35  ;;  %v9766_v53 = vand.u32 4294901760, %v8494_v9  ;;  %v9767_v4 = vand.u32 4294901760, %v8506_v15  ;;  %v9785_v22 = vld [vmem:[#allocation47_spill] sm:$0xff]  ;;  %769 = vmatmul.mubr.f32.gmra.mrb[4].mxu0 %v8508_v11 }
  0xf3   : > { %v8715_v36 = vpack.c.bf16 %v9762_v19, %v9761_v12  ;;  %v9770_v55 = vand.u32 4294901760, %v9769_v38  ;;  %v9772_v58 = vand.u32 4294901760, %v9771_v40  ;;  %v9774_v26 = vand.u32 4294901760, %v9773_v7  ;;  %v9777_v12 = vld [vmem:[#allocation56_spill] sm:$0xff]  ;;  %6416 = vmatprep.mubr.f32.mxu1 %v9785_v22  ;;  %6947 = vmatpush1.bf16.msra.mxu0 %v6946_v59  ;;  %v9795_v59 = vld [vmem:[#allocation23_spill] sm:$0xff] }
  0xf4   : > { %v8721_v39 = vpack.c.bf16 %v9764_v16, %v9763_v43  ;;  %v8727_v5 = vpack.c.bf16 %v9767_v4, %v9766_v53  ;;  %v9776_v33 = vand.u32 4294901760, %v9775_v56  ;;  %v9778_v19 = vand.u32 4294901760, %v9777_v12  ;;  %v9779_v43 = vld [vmem:[#allocation57_spill] sm:$0xff]  ;;  %v9781_v4 = vld [vmem:[#allocation46_spill] sm:$0xff]  ;;  %7139 = vmatpush3.bf16.msra.mxu1 %v7136_v30  ;;  %6949 = vmatprep.subr.bf16.mxu0 %v6948_v27 }
  0xf5   : > { %v8733_v13 = vpack.c.bf16 %v9772_v58, %v9770_v55  ;;  %v9780_v16 = vand.u32 4294901760, %v9779_v43  ;;  %v9782_v18 = vand.u32 4294901760, %v9781_v4  ;;  %v6950_v58 = vpack.c.bf16 %v8143_v45, %v8133_v23  ;;  %7141 = vmatprep.subr.bf16.mxu1 %v7140_v20  ;;  %774 = vmatprep.mubr.f32.mxu0 %v9701_v44  ;;  %v9796_v27 = vld [vmem:[#allocation25_spill] sm:$0xff] }
  0xf6   : > { %9765 = vst [vmem:[#allocation13_spill] sm:$0xff] %v8721_v39  ;;  %9768 = vst [vmem:[#allocation17_spill] sm:$0xff] %v8727_v5  ;;  %v8739_v42 = vpack.c.bf16 %v9776_v33, %v9774_v26  ;;  %v9783_v5 = vld [vmem:[#allocation49_spill] sm:$0xff]  ;;  %v6952_v26 = vpack.c.bf16 %v8154_v8, %v8152_v6  ;;  %776 = vmatmul.mubr.f32.gmra.mrb[6].mxu0 %v8552_v54  ;;  %v6954_v30 = vpack.c.bf16 %v8173_v60, %v8162_v46  ;;  %v9804_v33 = vld [vmem:[#allocation32_spill] sm:$0xff] }
  0xf7   : > { %v8745_v53 = vpack.c.bf16 %v9780_v16, %v9778_v19  ;;  %v9784_v39 = vand.u32 4294901760, %v9783_v5  ;;  %6951 = vmatpush1.bf16.msra.mxu0 %v6950_v58  ;;  %v6956_v23 = vpack.c.bf16 %v8184_v50, %v8177_v14  ;;  %v7148_v45 = vpack.c.bf16 %v8467_v24, %v8459_v48  ;;  %910 = vmatprep.mubr.f32.mxu0 %v9701_v44  ;;  %v9786_v50 = vld [vmem:[#allocation14_spill] sm:$0xff]  ;;  %v9791_v48 = vld [vmem:[#allocation20_spill] sm:$0xff] }
  0xf8   : > { %7143 = vmatpush3.bf16.msra.mxu1 %v7140_v20  ;;  %6953 = vmatprep.subr.bf16.mxu0 %v6952_v26  ;;  %v6958_v6 = vpack.c.bf16 %v8201_v51, %v8193_v25  ;;  %v6960_v46 = vpack.c.bf16 %v8214_v35, %v8209_v1  ;;  %v7152_v60 = vpack.c.bf16 %v8506_v15, %v8494_v9  ;;  %v9787_v51 = vld [vmem:[#allocation15_spill] sm:$0xff]  ;;  %v9788_v1 = vld [vmem:[#allocation52_spill] sm:$0xff]  ;;  %v9792_v24 = vld [vmem:[#allocation54_spill] sm:$0xff] }
  0xf9   : > { %v8751_v55 = vpack.c.bf16 %v9784_v39, %v9782_v18  ;;  %v7144_v18 = vpack.c.bf16 %v8436_v32, %v8431_v62  ;;  %v6962_v8 = vpack.c.bf16 %v9771_v40, %v9769_v38  ;;  %v6964_v14 = vpack.c.bf16 %v9775_v56, %v9773_v7  ;;  %v9789_v62 = vld [vmem:[#allocation16_spill] sm:$0xff]  ;;  %v9790_v32 = vld [vmem:[#allocation19_spill] sm:$0xff]  ;;  %v9793_v9 = vld [vmem:[#allocation58_spill] sm:$0xff] }
  0xfa   : > { %v7156_v25 = vpack.c.bf16 %v9779_v43, %v9777_v12  ;;  %v6966_v35 = vpack.c.bf16 %v9783_v5, %v9781_v4  ;;  %v9794_v15 = vld [vmem:[#allocation22_spill] sm:$0xff]  ;;  %v9799_v5 = vld [vmem:[#allocation27_spill] sm:$0xff]  ;;  %v9800_v38 = vld [vmem:[#allocation28_spill] sm:$0xff] }
  0xfb   : > { %7145 = vmatprep.subr.bf16.mxu1 %v7144_v18  ;;  %6955 = vmatpush1.bf16.msra.mxu0 %v6954_v30  ;;  %v9797_v20 = vld [vmem:[#allocation50_spill] sm:$0xff]  ;;  %v9801_v40 = vld [vmem:[#allocation29_spill] sm:$0xff]  ;;  %v9803_v56 = vld [vmem:[#allocation31_spill] sm:$0xff] }
  0xfc   : > { %7147 = vmatpush3.bf16.msra.mxu1 %v7144_v18  ;;  %6957 = vmatprep.subr.bf16.mxu0 %v6956_v23  ;;  %v9798_v39 = vld [vmem:[#allocation26_spill] sm:$0xff]  ;;  %v9805_v12 = vld [vmem:[#allocation33_spill] sm:$0xff]  ;;  %v9807_v43 = vld [vmem:[#allocation35_spill] sm:$0xff] }
  0xfd   : > { %7149 = vmatprep.subr.bf16.mxu1 %v7148_v45  ;;  %v9802_v7 = vld [vmem:[#allocation30_spill] sm:$0xff]  ;;  %v9808_v16 = vld [vmem:[#allocation36_spill] sm:$0xff]  ;;  %v9809_v4 = vld [vmem:[#allocation37_spill] sm:$0xff] }
  0xfe   : > { %v9806_v19 = vld [vmem:[#allocation34_spill] sm:$0xff]  ;;  %v9812_v26 = vld [vmem:[#allocation44_spill] sm:$0xff]  ;;  %v9814_v30 = vld [vmem:[#allocation53_spill] sm:$0xff] }
  0xff   : > { %6959 = vmatpush1.bf16.msra.mxu0 %v6958_v6  ;;  %v9811_v58 = vld [vmem:[#allocation42_spill] sm:$0xff]  ;;  %v9813_v18 = vld [vmem:[#allocation48_spill] sm:$0xff]  ;;  %v9815_v23 = vld [vmem:[#allocation55_spill] sm:$0xff] }
 0x100   : > { %7151 = vmatpush3.bf16.msra.mxu1 %v7148_v45  ;;  %6961 = vmatprep.subr.bf16.mxu0 %v6960_v46 }
 0x101   : > { %7153 = vmatprep.subr.bf16.mxu1 %v7152_v60 }
 0x103   : > { %6963 = vmatpush1.bf16.msra.mxu0 %v6962_v8 }
 0x104   : > { %7155 = vmatpush3.bf16.msra.mxu1 %v7152_v60  ;;  %6965 = vmatprep.subr.bf16.mxu0 %v6964_v14 }
 0x105   : > { %7157 = vmatprep.subr.bf16.mxu1 %v7156_v25 }
 0x107   : > { %6967 = vmatpush1.bf16.msra.mxu0 %v6966_v35 }
 0x108   : > { %7159 = vmatpush3.bf16.msra.mxu1 %v7156_v25  ;;  %6969 = vmatprep.subr.bf16.mxu0 %v9786_v50 }
 0x109   : > { %7161 = vmatprep.subr.bf16.mxu1 %v9787_v51 }
 0x10a   : > { %913 = vmatmul.mubr.f32.vlgmr.msra.gmra.mrb[0].mxu0 %v9785_v22  ;;  %v9810_v22 = vld [vmem:[#allocation38_spill] sm:$0xff] }
 0x10b   : > { %6417 = vmatmul.mubr.f32.vlgmr.msra.gmra.mrb[0].mxu1 %v9788_v1  ;;  %6971 = vmatpush1.bf16.msra.mxu0 %v9789_v62 }
 0x10c   : > { %7163 = vmatpush3.bf16.msra.mxu1 %v9787_v51  ;;  %6973 = vmatprep.subr.bf16.mxu0 %v9790_v32 }
 0x10d   : > { %7165 = vmatprep.subr.bf16.mxu1 %v9791_v48  ;;  %918 = vmatprep.mubr.f32.mxu0 %v9701_v44 }
 0x10e   : > { %6419 = vmatprep.mubr.f32.mxu1 %v9792_v24  ;;  %921 = vmatmul.mubr.f32.gmra.mrb[2].mxu0 %v9788_v1 }
 0x10f   : > { %6420 = vmatmul.mubr.f32.gmra.mrb[2].mxu1 %v9793_v9  ;;  %6975 = vmatpush1.bf16.msra.mxu0 %v9794_v15 }
 0x110   : > { %7167 = vmatpush3.bf16.msra.mxu1 %v9791_v48  ;;  %6977 = vmatprep.subr.bf16.mxu0 %v9795_v59 }
 0x111   : > { %7169 = vmatprep.subr.bf16.mxu1 %v9796_v27  ;;  %926 = vmatprep.mubr.f32.mxu0 %v9701_v44 }
 0x112   : > { %6454 = vmatprep.mubr.f32.mxu1 %v9797_v20  ;;  %929 = vmatmul.mubr.f32.gmra.mrb[4].mxu0 %v9792_v24 }
 0x113   : > { %6979 = vmatpush1.bf16.msra.mxu0 %v9798_v39  ;;  %934 = vmatprep.mubr.f32.mxu0 %v9701_v44 }
 0x114   : > { %7171 = vmatpush3.bf16.msra.mxu1 %v9796_v27  ;;  %6981 = vmatprep.subr.bf16.mxu0 %v9799_v5 }
 0x115   : > { %7173 = vmatprep.subr.bf16.mxu1 %v9800_v38 }
 0x116   : > { %937 = vmatmul.mubr.f32.gmra.mrb[6].mxu0 %v9793_v9 }
 0x117   : > { %6983 = vmatpush1.bf16.msra.mxu0 %v9801_v40  ;;  %1039 = vmatprep.mubr.f32.mxu0 %v9701_v44 }
 0x118   : > { %7175 = vmatpush3.bf16.msra.mxu1 %v9800_v38  ;;  %6985 = vmatprep.subr.bf16.mxu0 %v9802_v7 }
 0x119   : > { %7177 = vmatprep.subr.bf16.mxu1 %v9803_v56 }
 0x11b   : > { %6987 = vmatpush1.bf16.msra.mxu0 %v9804_v33 }
 0x11c   : > { %7179 = vmatpush3.bf16.msra.mxu1 %v9803_v56  ;;  %6989 = vmatprep.subr.bf16.mxu0 %v9805_v12 }
 0x11d   : > { %7181 = vmatprep.subr.bf16.mxu1 %v9806_v19 }
 0x11f   : > { %6991 = vmatpush1.bf16.msra.mxu0 %v9807_v43 }
 0x120   : > { %7183 = vmatpush3.bf16.msra.mxu1 %v9806_v19  ;;  %6993 = vmatprep.subr.bf16.mxu0 %v9808_v16 }
 0x121   : > { %7185 = vmatprep.subr.bf16.mxu1 %v9809_v4 }
 0x123   : > { %6995 = vmatpush1.bf16.msra.mxu0 %v9810_v22 }
 0x124   : > { %7187 = vmatpush3.bf16.msra.mxu1 %v9809_v4  ;;  %6997 = vmatprep.subr.bf16.mxu0 %v9811_v58 }
 0x125   : > { %7189 = vmatprep.subr.bf16.mxu1 %v9812_v26 }
 0x127   : > { %6999 = vmatpush1.bf16.msra.mxu0 %v9813_v18 }
 0x128   : > { %7191 = vmatpush3.bf16.msra.mxu1 %v9812_v26  ;;  %7001 = vmatprep.subr.bf16.mxu0 %v8607_v37  ;;  %v9816_v37 = vld [vmem:[#allocation59_spill] sm:$0xff] }
 0x129   : > { %7193 = vmatprep.subr.bf16.mxu1 %v8613_v49 }
 0x12a   : > { %1043 = vmatmul.mubr.f32.vlgmr.msra.gmra.mrb[0].mxu0 %v9797_v20 }
 0x12b   : > { %6455 = vmatmul.mubr.f32.vlgmr.msra.gmra.mrb[0].mxu1 %v9814_v30  ;;  %7003 = vmatpush1.bf16.msra.mxu0 %v8619_v41  ;;  %v9818_v41 = vld [vmem:[#allocation17_spill] sm:$0xff] }
 0x12c   : > { %7195 = vmatpush3.bf16.msra.mxu1 %v8613_v49  ;;  %7005 = vmatprep.subr.bf16.mxu0 %v8627_v31  ;;  %v9817_v49 = vld [vmem:[#allocation13_spill] sm:$0xff]  ;;  %v9819_v31 = vld [vmem:[#allocation51_spill] sm:$0xff] }
 0x12d   : > { %7197 = vmatprep.subr.bf16.mxu1 %v8633_v28  ;;  %1048 = vmatprep.mubr.f32.mxu0 %v9701_v44 }
 0x12e   : > { %6457 = vmatprep.mubr.f32.mxu1 %v9815_v23  ;;  %1052 = vmatmul.mubr.f32.gmra.mrb[2].mxu0 %v9814_v30 }
 0x12f   : > { %6458 = vmatmul.mubr.f32.gmra.mrb[2].mxu1 %v9816_v37  ;;  %7007 = vmatpush1.bf16.msra.mxu0 %v8639_v52 }
 0x130   : > { %7199 = vmatpush3.bf16.msra.mxu1 %v8633_v28  ;;  %7009 = vmatprep.subr.bf16.mxu0 %v8645_v47  ;;  %v7778_v28 = vmov 0.0|0.0  }
 0x131   : > { %7201 = vmatprep.subr.bf16.mxu1 %v8651_v2  ;;  %1057 = vmatprep.mubr.f32.mxu0 %v9701_v44 }
 0x132   : > { %6492 = vmatprep.mubr.f32.mxu1 %v9725_v63  ;;  %1061 = vmatmul.mubr.f32.gmra.mrb[4].mxu0 %v9815_v23 }
 0x133   : > { %7011 = vmatpush1.bf16.msra.mxu0 %v8657_v0  ;;  %1066 = vmatprep.mubr.f32.mxu0 %v9701_v44 }
 0x134   : > { %7203 = vmatpush3.bf16.msra.mxu1 %v8651_v2  ;;  %7013 = vmatprep.subr.bf16.mxu0 %v8663_v10 }
 0x135   : > { %7205 = vmatprep.subr.bf16.mxu1 %v8669_v3 }
 0x136   : > { %1070 = vmatmul.mubr.f32.gmra.mrb[6].mxu0 %v9816_v37 }
 0x137   : > { %7015 = vmatpush1.bf16.msra.mxu0 %v8675_v34  ;;  %1236 = vmatprep.mubr.f32.mxu0 %v9701_v44 }
 0x138   : > { %7207 = vmatpush3.bf16.msra.mxu1 %v8669_v3  ;;  %7017 = vmatprep.subr.bf16.mxu0 %v8683_v29 }
 0x139   : > { %7209 = vmatprep.subr.bf16.mxu1 %v8689_v21 }
 0x13b   : > { %7019 = vmatpush1.bf16.msra.mxu0 %v8695_v17 }
 0x13c   : > { %7211 = vmatpush3.bf16.msra.mxu1 %v8689_v21  ;;  %7021 = vmatprep.subr.bf16.mxu0 %v8703_v57 }
 0x13d   : > { %7213 = vmatprep.subr.bf16.mxu1 %v8709_v61 }
 0x13f   : > { %7023 = vmatpush1.bf16.msra.mxu0 %v8715_v36 }
 0x140   : > { %7215 = vmatpush3.bf16.msra.mxu1 %v8709_v61  ;;  %7025 = vmatprep.subr.bf16.mxu0 %v9817_v49 }
 0x141   : > { %7217 = vmatprep.subr.bf16.mxu1 %v9818_v41 }
 0x143   : > { %7027 = vmatpush1.bf16.msra.mxu0 %v8733_v13 }
 0x144   : > { %7219 = vmatpush3.bf16.msra.mxu1 %v9818_v41  ;;  %7029 = vmatprep.subr.bf16.mxu0 %v8739_v42 }
 0x145   : > { %7221 = vmatprep.subr.bf16.mxu1 %v8745_v53 }
 0x147   : > { %7031 = vmatpush1.bf16.msra.mxu0 %v8751_v55 }
 0x148   : > { %7223 = vmatpush3.bf16.msra.mxu1 %v8745_v53  ;;  %7033 = vmatprep.subr.bf16.mxu0 %v9786_v50 }
 0x149   : > { %7225 = vmatprep.subr.bf16.mxu1 %v9787_v51 }
 0x14a   : > { %1238 = vmatmul.mubr.f32.vlgmr.msra.gmra.mrb[0].mxu0 %v9725_v63 }
 0x14b   : > { %6493 = vmatmul.mubr.f32.vlgmr.msra.gmra.mrb[0].mxu1 %v9819_v31  ;;  %7035 = vmatpush1.bf16.msra.mxu0 %v9789_v62 }
 0x14c   : > { %7227 = vmatpush3.bf16.msra.mxu1 %v9787_v51  ;;  %7037 = vmatprep.subr.bf16.mxu0 %v9790_v32 }
 0x14d   : > { %7229 = vmatprep.subr.bf16.mxu1 %v9791_v48  ;;  %1243 = vmatprep.mubr.f32.mxu0 %v9701_v44 }
 0x14e   : > { %6495 = vmatprep.mubr.f32.mxu1 %v8508_v11  ;;  %1245 = vmatmul.mubr.f32.gmra.mrb[2].mxu0 %v9819_v31 }
 0x14f   : > { %6496 = vmatmul.mubr.f32.gmra.mrb[2].mxu1 %v8552_v54  ;;  %7039 = vmatpush1.bf16.msra.mxu0 %v9794_v15 }
 0x150   : > { %7231 = vmatpush3.bf16.msra.mxu1 %v9791_v48  ;;  %7041 = vmatprep.subr.bf16.mxu0 %v9795_v59 }
 0x151   : > { %7233 = vmatprep.subr.bf16.mxu1 %v9796_v27  ;;  %1250 = vmatprep.mubr.f32.mxu0 %v9701_v44 }
 0x152   : > { %6530 = vmatprep.mubr.f32.mxu1 %v9725_v63  ;;  %1252 = vmatmul.mubr.f32.gmra.mrb[4].mxu0 %v8508_v11 }
 0x153   : > { %7043 = vmatpush1.bf16.msra.mxu0 %v9798_v39  ;;  %1257 = vmatprep.mubr.f32.mxu0 %v9701_v44 }
 0x154   : > { %7235 = vmatpush3.bf16.msra.mxu1 %v9796_v27  ;;  %7045 = vmatprep.subr.bf16.mxu0 %v9799_v5 }
 0x155   : > { %7237 = vmatprep.subr.bf16.mxu1 %v9800_v38 }
 0x156   : > { %1259 = vmatmul.mubr.f32.gmra.mrb[6].mxu0 %v8552_v54 }
 0x157   : > { %7047 = vmatpush1.bf16.msra.mxu0 %v9801_v40  ;;  %1361 = vmatprep.mubr.f32.mxu0 %v9701_v44 }
 0x158   : > { %7239 = vmatpush3.bf16.msra.mxu1 %v9800_v38  ;;  %7049 = vmatprep.subr.bf16.mxu0 %v9802_v7 }
 0x159   : > { %7241 = vmatprep.subr.bf16.mxu1 %v9803_v56 }
 0x15b   : > { %7051 = vmatpush1.bf16.msra.mxu0 %v9804_v33 }
 0x15c   : > { %7243 = vmatpush3.bf16.msra.mxu1 %v9803_v56  ;;  %7053 = vmatprep.subr.bf16.mxu0 %v9805_v12 }
 0x15d   : > { %7245 = vmatprep.subr.bf16.mxu1 %v9806_v19 }
 0x15f   : > { %7055 = vmatpush1.bf16.msra.mxu0 %v9807_v43 }
 0x160   : > { %7247 = vmatpush3.bf16.msra.mxu1 %v9806_v19  ;;  %7057 = vmatprep.subr.bf16.mxu0 %v9808_v16 }
 0x161   : > { %7249 = vmatprep.subr.bf16.mxu1 %v9809_v4 }
 0x163   : > { %7059 = vmatpush1.bf16.msra.mxu0 %v9810_v22 }
 0x164   : > { %7251 = vmatpush3.bf16.msra.mxu1 %v9809_v4  ;;  %7061 = vmatprep.subr.bf16.mxu0 %v9811_v58 }
 0x165   : > { %7253 = vmatprep.subr.bf16.mxu1 %v9812_v26 }
 0x167   : > { %7063 = vmatpush1.bf16.msra.mxu0 %v9813_v18 }
 0x168   : > { %7255 = vmatpush3.bf16.msra.mxu1 %v9812_v26  ;;  %7277 = vmatprep.subr.bf16.mxu0 %v7778_v28 }
 0x169   : > { %7256 = vmatprep.subr.bf16.mxu1 %v7778_v28 }
 0x16a   : > { %1363 = vmatmul.mubr.f32.vlgmr.msra.gmra.mrb[0].mxu0 %v9725_v63 }
 0x16b   : > { %6531 = vmatmul.mubr.f32.vlgmr.msra.gmra.mrb[0].mxu1 %v9819_v31  ;;  %1368 = vmatprep.mubr.f32.mxu0 %v9701_v44 }
 0x16c   : > { %6533 = vmatprep.mubr.f32.mxu1 %v8508_v11 }
 0x16e   : > { %1370 = vmatmul.mubr.f32.gmra.mrb[2].mxu0 %v9819_v31 }
 0x16f   : > { %6534 = vmatmul.mubr.f32.gmra.mrb[2].mxu1 %v8552_v54  ;;  %1375 = vmatprep.mubr.f32.mxu0 %v9701_v44 }
 0x170   : > { %6540 = vmatprep.mubr.msk.f32.mxu1 %vm7779_vm0, %v9701_v44 }
 0x172   : > { %1377 = vmatmul.mubr.f32.gmra.mrb[4].mxu0 %v8508_v11  ;;  %v2192_v11 = vld [vmem:[%s9469_s3] sm:$0xff] }
 0x173   : > { %1382 = vmatprep.mubr.f32.mxu0 %v9701_v44  ;;  %v2195_v63 = vsel %vm2193_vm1, %v2192_v11, 0 }
 0x174   : > { %v8936_v52 = vand.u32 4294901760, %v2195_v63 }
 0x176   : > { %1384 = vmatmul.mubr.f32.gmra.mrb[6].mxu0 %v8552_v54  ;;  %v8939_v54 = vsub.f32 %v2195_v63, %v8936_v52 }
 0x177   : > { %6589 = vmatprep.mubr.msk.f32.mxu0 %vm7779_vm0, %v9701_v44 }
 0x178   : > { %v8942_v47 = vand.u32 4294901760, %v8939_v54 }
 0x17a   : > { %v2270_v2 = vsub.f32 %v8939_v54, %v8942_v47 }
 0x17c   : > { %v8954_v53 = vand.u32 4294901760, %v2270_v2 }
 0x23d   : > { %v1364_v0 = vpop.f32.mrb[0].mxu0 }
 0x23e   : > { %v6532_v10 = vpop.f32.mrb[0].mxu1  ;;  %v1366_v29 = vpop.f32.mrb[1].mxu0 }
 0x23f   : > { %v2177_v3 = vcombine.high %v6532_v10, %v6532_v10  ;;  %v8947_v34 = vsel %vm2197_vm2, %v6532_v10, 0  ;;  %v2138_v21 = vpop.f32.mrb[1].mxu1  ;;  %v2172_v57 = vcombine.low %v1364_v0, %v1366_v29  ;;  %v2173_v61 = vcombine.high %v1364_v0, %v1366_v29 }
 0x240   : > { %v3126_v17 = vand.u32 4294901760, %v8947_v34  ;;  %v2174_v36 = vcombine.high %v2138_v21, %v2138_v21  ;;  %v2198_v42 = vsel %vm2197_vm2, %v2138_v21, 0 }
 0x241   : > { %v8951_v13 = vsel %vm2197_vm2, %v2177_v3, 0  ;;  %v2201_v6 = vand.u32 4294901760, %v2172_v57  ;;  %v2662_v46 = vand.u32 4294901760, %v2173_v61  ;;  %v1371_v60 = vpop.f32.mrb[2].mxu0  ;;  %v2204_v14 = vand.u32 4294901760, %v2198_v42 }
 0x242   : > { %v8959_v55 = vsub.f32 %v8947_v34, %v3126_v17  ;;  %v3587_v45 = vand.u32 4294901760, %v8951_v13  ;;  %v6535_v8 = vpop.f32.mrb[2].mxu1  ;;  %v2659_v25 = vsel %vm2197_vm2, %v2174_v36, 0  ;;  %v1373_v51 = vpop.f32.mrb[3].mxu0 }
 0x243   : > { %v2183_v35 = vcombine.high %v6535_v8, %v6535_v8  ;;  %v8964_v50 = vsel %vm2197_vm2, %v6535_v8, 0  ;;  %v2150_v1 = vpop.f32.mrb[3].mxu1  ;;  %v8972_v48 = vsub.f32 %v2172_v57, %v2201_v6  ;;  %v8974_v24 = vsub.f32 %v2173_v61, %v2662_v46 }
 0x244   : > { %v9636_v62 = vand.u32 4294901760, %v8959_v55  ;;  %v8970_v32 = vsub.f32 %v8951_v13, %v3587_v45  ;;  %v8976_v9 = vpack.c.bf16 %v2204_v14, %v2201_v6  ;;  %v8978_v15 = vsub.f32 %v2198_v42, %v2204_v14 }
 0x245   : > { %v2665_v59 = vand.u32 4294901760, %v2659_v25  ;;  %v4970_v27 = vand.u32 4294901760, %v8964_v50  ;;  %v2280_v5 = vand.u32 4294901760, %v8972_v48  ;;  %v2741_v38 = vand.u32 4294901760, %v8974_v24  ;;  %v1378_v40 = vpop.f32.mrb[4].mxu0 }
 0x246   : > { %v8984_v20 = vsub.f32 %v8959_v55, %v9636_v62  ;;  %v9637_v39 = vand.u32 4294901760, %v8970_v32  ;;  %v2287_v7 = vand.u32 4294901760, %v8978_v15  ;;  %7258 = vmatpush3.bf16.msra.mxu1 %v8976_v9  ;;  %v1380_v19 = vpop.f32.mrb[5].mxu0  ;;  %v9024_v30 = vsel %vm2197_vm2, %v2183_v35, 0 }
 0x247   : > { %v8992_v33 = vpack.c.bf16 %v2665_v59, %v2662_v46  ;;  %v8994_v12 = vsub.f32 %v2659_v25, %v2665_v59  ;;  %v9006_v4 = vsub.f32 %v8972_v48, %v2280_v5  ;;  %v9011_v22 = vsub.f32 %v8974_v24, %v2741_v38  ;;  %7259 = vmatprep.subr.bf16.mxu1 %v7778_v28 }
 0x248   : > { %v9001_v16 = vsub.f32 %v8970_v32, %v9637_v39  ;;  %v2288_v58 = vsub.f32 %v8978_v15, %v2287_v7  ;;  %v9021_v18 = vsub.f32 %v8964_v50, %v4970_v27  ;;  %v5431_v49 = vand.u32 4294901760, %v9024_v30 }
 0x249   : > { %v2748_v26 = vand.u32 4294901760, %v8994_v12  ;;  %v2282_v23 = vand.u32 4294901760, %v9006_v4  ;;  %v2743_v37 = vand.u32 4294901760, %v9011_v22  ;;  %v2175_v41 = vcombine.low %v1371_v60, %v1373_v51  ;;  %6541 = vmatmul.mubr.f32.vlgmr.msra.gmra.mrb[4].mxu1 %v8954_v53  ;;  %v1385_v31 = vpop.f32.mrb[6].mxu0 }
 0x24a   : > { %v2289_v11 = vand.u32 4294901760, %v2288_v58  ;;  %v9634_v2 = vand.u32 4294901760, %v9021_v18  ;;  %v2176_v0 = vcombine.high %v1371_v60, %v1373_v51  ;;  %v1387_v10 = vpop.f32.mrb[7].mxu0  ;;  %6547 = vmatprep.mubr.msk.f32.mxu1 %vm7779_vm0, %v9701_v44  ;;  %v9037_v3 = vsub.f32 %v9024_v30, %v5431_v49 }
 0x24b   : > { %v2749_v63 = vsub.f32 %v8994_v12, %v2748_v26  ;;  %v3123_v29 = vand.u32 4294901760, %v2175_v41  ;;  %v2180_v21 = vcombine.high %v2150_v1, %v2150_v1  ;;  %v4042_v57 = vsel %vm2197_vm2, %v2150_v1, 0 }
 0x24c   : > { %v9043_v61 = vsub.f32 %v9021_v18, %v9634_v2  ;;  %v3584_v36 = vand.u32 4294901760, %v2176_v0  ;;  %v4048_v42 = vand.u32 4294901760, %v4042_v57  ;;  %v2178_v6 = vcombine.low %v1378_v40, %v1380_v19 }
 0x24d   : > { %v9635_v46 = vand.u32 4294901760, %v9037_v3  ;;  %v9048_v60 = vpack.c.bf16 %v3126_v17, %v3123_v29  ;;  %v9050_v8 = vsub.f32 %v2175_v41, %v3123_v29  ;;  %v4503_v14 = vsel %vm2197_vm2, %v2180_v21, 0 }
 0x24e   : > { %v9056_v35 = vpack.c.bf16 %v3587_v45, %v3584_v36  ;;  %v9058_v51 = vsub.f32 %v2176_v0, %v3584_v36  ;;  %v9060_v1 = vsub.f32 %v4042_v57, %v4048_v42  ;;  %v4509_v59 = vand.u32 4294901760, %v4503_v14 }
 0x24f   : > { %v9065_v34 = vsub.f32 %v9037_v3, %v9635_v46  ;;  %v3202_v17 = vand.u32 4294901760, %v9050_v8  ;;  %v2179_v4 = vcombine.high %v1378_v40, %v1380_v19  ;;  %v4045_v13 = vand.u32 4294901760, %v2178_v6 }
 0x250   : > { %v3663_v58 = vand.u32 4294901760, %v9058_v51  ;;  %v9638_v30 = vand.u32 4294901760, %v9060_v1  ;;  %v2181_v45 = vcombine.low %v1385_v31, %v1387_v10  ;;  %v9071_v0 = vsub.f32 %v4503_v14, %v4509_v59 }
 0x251   : > { %v3203_v41 = vsub.f32 %v9050_v8, %v3202_v17  ;;  %v4506_v29 = vand.u32 4294901760, %v2179_v4  ;;  %v2182_v21 = vcombine.high %v1385_v31, %v1387_v10  ;;  %v9077_v2 = vpack.c.bf16 %v4048_v42, %v4045_v13 }
 0x252   : > { %v3664_v57 = vsub.f32 %v9058_v51, %v3663_v58  ;;  %v4132_v36 = vsub.f32 %v9060_v1, %v9638_v30  ;;  %v9079_v40 = vsub.f32 %v2178_v6, %v4045_v13  ;;  %v4592_v46 = vand.u32 4294901760, %v9071_v0 }
 0x253   : > { %v3204_v19 = vand.u32 4294901760, %v3203_v41  ;;  %v9082_v25 = vpack.c.bf16 %v4509_v59, %v4506_v29  ;;  %v9084_v62 = vsub.f32 %v2179_v4, %v4506_v29  ;;  %v4967_v10 = vand.u32 4294901760, %v2181_v45 }
 0x254   : > { %v3665_v14 = vand.u32 4294901760, %v3664_v57  ;;  %v4133_v39 = vand.u32 4294901760, %v4132_v36  ;;  %v4124_v31 = vand.u32 4294901760, %v9079_v40  ;;  %v4593_v56 = vsub.f32 %v9071_v0, %v4592_v46 }
 0x255   : > { %v4585_v30 = vand.u32 4294901760, %v9084_v62  ;;  %v5428_v42 = vand.u32 4294901760, %v2182_v21  ;;  %v7260_v43 = vpack.c.bf16 %v2289_v11, %v2282_v23  ;;  %v9092_v13 = vpack.c.bf16 %v4970_v27, %v4967_v10 }
 0x256   : > { %v4125_v6 = vsub.f32 %v9079_v40, %v4124_v31  ;;  %v9094_v59 = vsub.f32 %v2181_v45, %v4967_v10  ;;  %v2750_v4 = vand.u32 4294901760, %v2749_v63  ;;  %v7281_v36 = vpack.c.bf16 %v8994_v12, %v8974_v24 }
 0x257   : > { %v4586_v41 = vsub.f32 %v9084_v62, %v4585_v30  ;;  %v9097_v29 = vpack.c.bf16 %v5431_v49, %v5428_v42  ;;  %v9099_v57 = vsub.f32 %v2182_v21, %v5428_v42  ;;  %7261 = vmatpush3.bf16.msra.mxu1 %v7260_v43  ;;  %v7269_v27 = vpack.c.bf16 %v2287_v7, %v2280_v5 }
 0x258   : > { %v4126_v23 = vand.u32 4294901760, %v4125_v6  ;;  %v5046_v11 = vand.u32 4294901760, %v9094_v59  ;;  %v7278_v50 = vpack.c.bf16 %v2750_v4, %v2743_v37  ;;  %7262 = vmatprep.subr.bf16.mxu1 %v7778_v28  ;;  %v7287_v43 = vpack.c.bf16 %v2748_v26, %v2741_v38 }
 0x259   : > { %v4587_v49 = vand.u32 4294901760, %v4586_v41  ;;  %v5507_v63 = vand.u32 4294901760, %v9099_v57  ;;  %v3672_v45 = vand.u32 4294901760, %v9001_v16  ;;  %v9820_v37 = vand.u32 4294901760, %v8984_v20 }
 0x25a   : > { %v5047_v22 = vsub.f32 %v9094_v59, %v5046_v11  ;;  %7279 = vmatpush3.bf16.msra.mxu0 %v7278_v50  ;;  %6548 = vmatmul.mubr.f32.vlgmr.msra.gmra.mrb[4].mxu1 %v8936_v52  ;;  %v7317_v5 = vpack.c.bf16 %v8970_v32, %v9058_v51  ;;  %v4594_v7 = vand.u32 4294901760, %v4593_v56  ;;  %v9821_v38 = vpack.c.bf16 %v8978_v15, %v8972_v48 }
 0x25b   : > { %v9121_v21 = vpack.c.bf16 %v9820_v37, %v3204_v19  ;;  %v5508_v24 = vsub.f32 %v9099_v57, %v5507_v63  ;;  %7280 = vmatprep.subr.bf16.mxu0 %v7778_v28  ;;  %v7314_v12 = vpack.c.bf16 %v3672_v45, %v3665_v14  ;;  %v7299_v16 = vpack.c.bf16 %v8959_v55, %v9050_v8 }
 0x25c   : > { %7264 = vmatpush3.bf16.msra.mxu1 %v9821_v38  ;;  %v5516_v20 = vand.u32 4294901760, %v9065_v34  ;;  %v5048_v26 = vand.u32 4294901760, %v5047_v22  ;;  %6554 = vmatprep.mubr.msk.f32.mxu1 %vm7779_vm0, %v9701_v44  ;;  %v9822_v56 = vand.u32 4294901760, %v8970_v32  ;;  %v9823_v48 = vand.u32 4294901760, %v8959_v55 }
 0x25d   : > { %7265 = vmatprep.subr.bf16.mxu1 %v7778_v28  ;;  %v9144_v14 = vpack.c.bf16 %v4594_v7, %v4587_v49  ;;  %v5509_v10 = vand.u32 4294901760, %v5508_v24  ;;  %6590 = vmatmul.mubr.f32.vlgmr.msra.gmra.mrb[8].mxu0 %v8936_v52  ;;  %v9147_v34 = vpack.c.bf16 %v4133_v39, %v4126_v23  ;;  %v7353_v42 = vpack.c.bf16 %v9071_v0, %v9084_v62 }
 0x25e   : > { %v9138_v19 = vpack.c.bf16 %v9822_v56, %v3663_v58  ;;  %v9142_v15 = vpack.c.bf16 %v9823_v48, %v3202_v17  ;;  %v7335_v6 = vpack.c.bf16 %v9060_v1, %v9079_v40  ;;  %7282 = vmatpush3.bf16.msra.mxu0 %v7281_v36  ;;  %6596 = vmatprep.mubr.msk.f32.mxu0 %vm7779_vm0, %v9701_v44  ;;  %v9824_v17 = vand.u32 4294901760, %v9060_v1 }
 0x25f   : > { %v9155_v58 = vpack.c.bf16 %v4592_v46, %v4585_v30  ;;  %v9825_v41 = vand.u32 4294901760, %v9043_v61  ;;  %7283 = vmatprep.subr.bf16.mxu0 %v7778_v28  ;;  %v9166_v23 = vpack.c.bf16 %v5516_v20, %v5509_v10  ;;  %v7389_v36 = vpack.c.bf16 %v9037_v3, %v9099_v57 }
 0x260   : > { %v9159_v4 = vpack.c.bf16 %v9824_v17, %v4124_v31  ;;  %v7371_v50 = vpack.c.bf16 %v9021_v18, %v9094_v59  ;;  %v9826_v46 = vand.u32 4294901760, %v9037_v3  ;;  %v9827_v31 = vand.u32 4294901760, %v9021_v18 }
 0x261   : > { %v9163_v39 = vpack.c.bf16 %v9825_v41, %v5048_v26 }
 0x262   : > { %v9174_v30 = vpack.c.bf16 %v9826_v46, %v5507_v63  ;;  %v9178_v49 = vpack.c.bf16 %v9827_v31, %v5046_v11  ;;  %6555 = vmatmul.mubr.f32.vlgmr.msra.gmra.mrb[4].mxu1 %v8939_v54 }
 0x263   : > { %7267 = vmatpush3.bf16.msra.mxu1 %v8976_v9  ;;  %6561 = vmatprep.mubr.msk.f32.mxu1 %vm7779_vm0, %v9701_v44 }
 0x264   : > { %7268 = vmatprep.subr.bf16.mxu1 %v7778_v28 }
 0x265   : > { %6597 = vmatmul.mubr.f32.vlgmr.msra.gmra.mrb[8].mxu0 %v8939_v54 }
 0x266   : > { %7285 = vmatpush3.bf16.msra.mxu0 %v8992_v33  ;;  %6603 = vmatprep.mubr.msk.f32.mxu0 %vm7779_vm0, %v9701_v44 }
 0x267   : > { %7286 = vmatprep.subr.bf16.mxu0 %v7778_v28 }
 0x26a   : > { %6562 = vmatmul.mubr.f32.vlgmr.msra.gmra.mrb[4].mxu1 %v8942_v47 }
 0x26b   : > { %7270 = vmatpush3.bf16.msra.mxu1 %v7269_v27  ;;  %6568 = vmatprep.mubr.msk.f32.mxu1 %vm7779_vm0, %v9701_v44 }
 0x26c   : > { %7271 = vmatprep.subr.bf16.mxu1 %v7778_v28 }
 0x26d   : > { %6604 = vmatmul.mubr.f32.vlgmr.msra.gmra.mrb[8].mxu0 %v8942_v47 }
 0x26e   : > { %7288 = vmatpush3.bf16.msra.mxu0 %v7287_v43  ;;  %6610 = vmatprep.mubr.msk.f32.mxu0 %vm7779_vm0, %v9701_v44 }
 0x26f   : > { %7289 = vmatprep.subr.bf16.mxu0 %v7778_v28 }
 0x272   : > { %6569 = vmatmul.mubr.f32.vlgmr.msra.gmra.mrb[4].mxu1 %v8936_v52 }
 0x273   : > { %7273 = vmatpush3.bf16.msra.mxu1 %v8976_v9  ;;  %6575 = vmatprep.mubr.msk.f32.mxu1 %vm7779_vm0, %v9701_v44 }
 0x274   : > { %7274 = vmatprep.subr.bf16.mxu1 %v7778_v28 }
 0x275   : > { %6611 = vmatmul.mubr.f32.vlgmr.msra.gmra.mrb[8].mxu0 %v8936_v52 }
 0x276   : > { %7291 = vmatpush3.bf16.msra.mxu0 %v8992_v33  ;;  %6617 = vmatprep.mubr.msk.f32.mxu0 %vm7779_vm0, %v9701_v44 }
 0x277   : > { %7310 = vmatprep.subr.bf16.mxu0 %v7778_v28 }
 0x27a   : > { %6576 = vmatmul.mubr.f32.vlgmr.msra.gmra.mrb[4].mxu1 %v8936_v52 }
 0x27b   : > { %7276 = vmatpush3.bf16.msra.mxu1 %v8992_v33  ;;  %6582 = vmatprep.mubr.msk.f32.mxu1 %vm7779_vm0, %v9701_v44 }
 0x27c   : > { %7292 = vmatprep.subr.bf16.mxu1 %v7778_v28 }
 0x27d   : > { %6618 = vmatmul.mubr.f32.vlgmr.msra.gmra.mrb[8].mxu0 %v8936_v52 }
 0x27e   : > { %7312 = vmatpush3.bf16.msra.mxu0 %v9056_v35  ;;  %6583 = vmatmul.mubr.f32.vlgmr.msra.gmra.mrb[6].mxu1 %v8954_v53 }
 0x27f   : > { %7294 = vmatpush3.bf16.msra.mxu1 %v9048_v60  ;;  %6666 = vmatprep.mubr.msk.f32.mxu0 %vm7779_vm0, %v9701_v44 }
 0x280   : > { %7313 = vmatprep.subr.bf16.mxu0 %v7778_v28  ;;  %6624 = vmatprep.mubr.msk.f32.mxu1 %vm7779_vm0, %v9701_v44 }
 0x281   : > { %6667 = vmatmul.mubr.f32.vlgmr.msra.gmra.mrb[10].mxu0 %v8954_v53  ;;  %7295 = vmatprep.subr.bf16.mxu1 %v7778_v28 }
 0x282   : > { %7315 = vmatpush3.bf16.msra.mxu0 %v7314_v12  ;;  %6625 = vmatmul.mubr.f32.vlgmr.msra.gmra.mrb[8].mxu1 %v8954_v53 }
 0x283   : > { %7297 = vmatpush3.bf16.msra.mxu1 %v9121_v21  ;;  %6673 = vmatprep.mubr.msk.f32.mxu0 %vm7779_vm0, %v9701_v44 }
 0x284   : > { %7316 = vmatprep.subr.bf16.mxu0 %v7778_v28  ;;  %6631 = vmatprep.mubr.msk.f32.mxu1 %vm7779_vm0, %v9701_v44 }
 0x285   : > { %7298 = vmatprep.subr.bf16.mxu1 %v7778_v28 }
 0x289   : > { %6674 = vmatmul.mubr.f32.vlgmr.msra.gmra.mrb[10].mxu0 %v8936_v52 }
 0x28a   : > { %7318 = vmatpush3.bf16.msra.mxu0 %v7317_v5  ;;  %6632 = vmatmul.mubr.f32.vlgmr.msra.gmra.mrb[8].mxu1 %v8936_v52 }
 0x28b   : > { %7300 = vmatpush3.bf16.msra.mxu1 %v7299_v16  ;;  %6680 = vmatprep.mubr.msk.f32.mxu0 %vm7779_vm0, %v9701_v44 }
 0x28c   : > { %7319 = vmatprep.subr.bf16.mxu0 %v7778_v28  ;;  %6638 = vmatprep.mubr.msk.f32.mxu1 %vm7779_vm0, %v9701_v44 }
 0x28d   : > { %7301 = vmatprep.subr.bf16.mxu1 %v7778_v28 }
 0x291   : > { %6681 = vmatmul.mubr.f32.vlgmr.msra.gmra.mrb[10].mxu0 %v8939_v54 }
 0x292   : > { %7321 = vmatpush3.bf16.msra.mxu0 %v9056_v35  ;;  %6639 = vmatmul.mubr.f32.vlgmr.msra.gmra.mrb[8].mxu1 %v8939_v54 }
 0x293   : > { %7303 = vmatpush3.bf16.msra.mxu1 %v9048_v60  ;;  %6687 = vmatprep.mubr.msk.f32.mxu0 %vm7779_vm0, %v9701_v44 }
 0x294   : > { %7322 = vmatprep.subr.bf16.mxu0 %v7778_v28  ;;  %6645 = vmatprep.mubr.msk.f32.mxu1 %vm7779_vm0, %v9701_v44 }
 0x295   : > { %7304 = vmatprep.subr.bf16.mxu1 %v7778_v28 }
 0x299   : > { %6688 = vmatmul.mubr.f32.vlgmr.msra.gmra.mrb[10].mxu0 %v8942_v47 }
 0x29a   : > { %7324 = vmatpush3.bf16.msra.mxu0 %v9138_v19  ;;  %6646 = vmatmul.mubr.f32.vlgmr.msra.gmra.mrb[8].mxu1 %v8942_v47 }
 0x29b   : > { %7306 = vmatpush3.bf16.msra.mxu1 %v9142_v15  ;;  %6694 = vmatprep.mubr.msk.f32.mxu0 %vm7779_vm0, %v9701_v44 }
 0x29c   : > { %7325 = vmatprep.subr.bf16.mxu0 %v7778_v28  ;;  %6652 = vmatprep.mubr.msk.f32.mxu1 %vm7779_vm0, %v9701_v44 }
 0x29d   : > { %7307 = vmatprep.subr.bf16.mxu1 %v7778_v28 }
 0x2a1   : > { %6695 = vmatmul.mubr.f32.vlgmr.msra.gmra.mrb[10].mxu0 %v8936_v52 }
 0x2a2   : > { %7327 = vmatpush3.bf16.msra.mxu0 %v9056_v35  ;;  %6653 = vmatmul.mubr.f32.vlgmr.msra.gmra.mrb[8].mxu1 %v8936_v52 }
 0x2a3   : > { %7309 = vmatpush3.bf16.msra.mxu1 %v9048_v60  ;;  %6701 = vmatprep.mubr.msk.f32.mxu0 %vm7779_vm0, %v9701_v44 }
 0x2a4   : > { %7346 = vmatprep.subr.bf16.mxu0 %v7778_v28  ;;  %6659 = vmatprep.mubr.msk.f32.mxu1 %vm7779_vm0, %v9701_v44 }
 0x2a5   : > { %7328 = vmatprep.subr.bf16.mxu1 %v7778_v28 }
 0x2a9   : > { %6702 = vmatmul.mubr.f32.vlgmr.msra.gmra.mrb[10].mxu0 %v8936_v52 }
 0x2aa   : > { %7348 = vmatpush3.bf16.msra.mxu0 %v9082_v25  ;;  %6660 = vmatmul.mubr.f32.vlgmr.msra.gmra.mrb[8].mxu1 %v8936_v52 }
 0x2ab   : > { %7330 = vmatpush3.bf16.msra.mxu1 %v9077_v2  ;;  %6750 = vmatprep.mubr.msk.f32.mxu0 %vm7779_vm0, %v9701_v44 }
 0x2ac   : > { %7349 = vmatprep.subr.bf16.mxu0 %v7778_v28  ;;  %6708 = vmatprep.mubr.msk.f32.mxu1 %vm7779_vm0, %v9701_v44 }
 0x2ad   : > { %6751 = vmatmul.mubr.f32.vlgmr.msra.gmra.mrb[12].mxu0 %v8954_v53  ;;  %7331 = vmatprep.subr.bf16.mxu1 %v7778_v28 }
 0x2ae   : > { %7351 = vmatpush3.bf16.msra.mxu0 %v9144_v14  ;;  %6709 = vmatmul.mubr.f32.vlgmr.msra.gmra.mrb[10].mxu1 %v8954_v53 }
 0x2af   : > { %7333 = vmatpush3.bf16.msra.mxu1 %v9147_v34  ;;  %6757 = vmatprep.mubr.msk.f32.mxu0 %vm7779_vm0, %v9701_v44 }
 0x2b0   : > { %7352 = vmatprep.subr.bf16.mxu0 %v7778_v28  ;;  %6715 = vmatprep.mubr.msk.f32.mxu1 %vm7779_vm0, %v9701_v44 }
 0x2b1   : > { %7334 = vmatprep.subr.bf16.mxu1 %v7778_v28 }
 0x2b5   : > { %6758 = vmatmul.mubr.f32.vlgmr.msra.gmra.mrb[12].mxu0 %v8936_v52 }
 0x2b6   : > { %7354 = vmatpush3.bf16.msra.mxu0 %v7353_v42  ;;  %6716 = vmatmul.mubr.f32.vlgmr.msra.gmra.mrb[10].mxu1 %v8936_v52 }
 0x2b7   : > { %7336 = vmatpush3.bf16.msra.mxu1 %v7335_v6  ;;  %6764 = vmatprep.mubr.msk.f32.mxu0 %vm7779_vm0, %v9701_v44 }
 0x2b8   : > { %7355 = vmatprep.subr.bf16.mxu0 %v7778_v28  ;;  %6722 = vmatprep.mubr.msk.f32.mxu1 %vm7779_vm0, %v9701_v44 }
 0x2b9   : > { %7337 = vmatprep.subr.bf16.mxu1 %v7778_v28 }
 0x2bd   : > { %6765 = vmatmul.mubr.f32.vlgmr.msra.gmra.mrb[12].mxu0 %v8939_v54 }
 0x2be   : > { %7357 = vmatpush3.bf16.msra.mxu0 %v9082_v25  ;;  %6723 = vmatmul.mubr.f32.vlgmr.msra.gmra.mrb[10].mxu1 %v8939_v54 }
 0x2bf   : > { %7339 = vmatpush3.bf16.msra.mxu1 %v9077_v2  ;;  %6771 = vmatprep.mubr.msk.f32.mxu0 %vm7779_vm0, %v9701_v44 }
 0x2c0   : > { %7358 = vmatprep.subr.bf16.mxu0 %v7778_v28  ;;  %6729 = vmatprep.mubr.msk.f32.mxu1 %vm7779_vm0, %v9701_v44 }
 0x2c1   : > { %7340 = vmatprep.subr.bf16.mxu1 %v7778_v28 }
 0x2c5   : > { %6772 = vmatmul.mubr.f32.vlgmr.msra.gmra.mrb[12].mxu0 %v8942_v47 }
 0x2c6   : > { %7360 = vmatpush3.bf16.msra.mxu0 %v9155_v58  ;;  %6730 = vmatmul.mubr.f32.vlgmr.msra.gmra.mrb[10].mxu1 %v8942_v47 }
 0x2c7   : > { %7342 = vmatpush3.bf16.msra.mxu1 %v9159_v4  ;;  %6778 = vmatprep.mubr.msk.f32.mxu0 %vm7779_vm0, %v9701_v44 }
 0x2c8   : > { %7361 = vmatprep.subr.bf16.mxu0 %v7778_v28  ;;  %6736 = vmatprep.mubr.msk.f32.mxu1 %vm7779_vm0, %v9701_v44 }
 0x2c9   : > { %7343 = vmatprep.subr.bf16.mxu1 %v7778_v28 }
 0x2cd   : > { %6779 = vmatmul.mubr.f32.vlgmr.msra.gmra.mrb[12].mxu0 %v8936_v52 }
 0x2ce   : > { %7363 = vmatpush3.bf16.msra.mxu0 %v9082_v25  ;;  %6737 = vmatmul.mubr.f32.vlgmr.msra.gmra.mrb[10].mxu1 %v8936_v52 }
 0x2cf   : > { %7345 = vmatpush3.bf16.msra.mxu1 %v9077_v2  ;;  %6785 = vmatprep.mubr.msk.f32.mxu0 %vm7779_vm0, %v9701_v44 }
 0x2d0   : > { %7382 = vmatprep.subr.bf16.mxu0 %v7778_v28  ;;  %6743 = vmatprep.mubr.msk.f32.mxu1 %vm7779_vm0, %v9701_v44 }
 0x2d1   : > { %7364 = vmatprep.subr.bf16.mxu1 %v7778_v28 }
 0x2d5   : > { %6786 = vmatmul.mubr.f32.vlgmr.msra.gmra.mrb[12].mxu0 %v8936_v52 }
 0x2d6   : > { %7384 = vmatpush3.bf16.msra.mxu0 %v9097_v29  ;;  %6744 = vmatmul.mubr.f32.vlgmr.msra.gmra.mrb[10].mxu1 %v8936_v52 }
 0x2d7   : > { %7366 = vmatpush3.bf16.msra.mxu1 %v9092_v13  ;;  %6834 = vmatprep.mubr.msk.f32.mxu0 %vm7779_vm0, %v9701_v44 }
 0x2d8   : > { %7385 = vmatprep.subr.bf16.mxu0 %v7778_v28  ;;  %6792 = vmatprep.mubr.msk.f32.mxu1 %vm7779_vm0, %v9701_v44 }
 0x2d9   : > { %6835 = vmatmul.mubr.f32.vlgmr.msra.gmra.mrb[14].mxu0 %v8954_v53  ;;  %7367 = vmatprep.subr.bf16.mxu1 %v7778_v28 }
 0x2da   : > { %7387 = vmatpush3.bf16.msra.mxu0 %v9166_v23  ;;  %6793 = vmatmul.mubr.f32.vlgmr.msra.gmra.mrb[12].mxu1 %v8954_v53 }
 0x2db   : > { %7369 = vmatpush3.bf16.msra.mxu1 %v9163_v39  ;;  %6841 = vmatprep.mubr.msk.f32.mxu0 %vm7779_vm0, %v9701_v44 }
 0x2dc   : > { %7388 = vmatprep.subr.bf16.mxu0 %v7778_v28  ;;  %6799 = vmatprep.mubr.msk.f32.mxu1 %vm7779_vm0, %v9701_v44 }
 0x2dd   : > { %7370 = vmatprep.subr.bf16.mxu1 %v7778_v28 }
 0x2e1   : > { %6842 = vmatmul.mubr.f32.vlgmr.msra.gmra.mrb[14].mxu0 %v8936_v52 }
 0x2e2   : > { %7390 = vmatpush3.bf16.msra.mxu0 %v7389_v36  ;;  %6800 = vmatmul.mubr.f32.vlgmr.msra.gmra.mrb[12].mxu1 %v8936_v52 }
 0x2e3   : > { %7372 = vmatpush3.bf16.msra.mxu1 %v7371_v50  ;;  %6848 = vmatprep.mubr.msk.f32.mxu0 %vm7779_vm0, %v9701_v44 }
 0x2e4   : > { %7391 = vmatprep.subr.bf16.mxu0 %v7778_v28  ;;  %6806 = vmatprep.mubr.msk.f32.mxu1 %vm7779_vm0, %v9701_v44 }
 0x2e5   : > { %7373 = vmatprep.subr.bf16.mxu1 %v7778_v28 }
 0x2e9   : > { %6849 = vmatmul.mubr.f32.vlgmr.msra.gmra.mrb[14].mxu0 %v8939_v54 }
 0x2ea   : > { %7393 = vmatpush3.bf16.msra.mxu0 %v9097_v29  ;;  %6807 = vmatmul.mubr.f32.vlgmr.msra.gmra.mrb[12].mxu1 %v8939_v54 }
 0x2eb   : > { %7375 = vmatpush3.bf16.msra.mxu1 %v9092_v13  ;;  %6855 = vmatprep.mubr.msk.f32.mxu0 %vm7779_vm0, %v9701_v44 }
 0x2ec   : > { %7394 = vmatprep.subr.bf16.mxu0 %v7778_v28  ;;  %6813 = vmatprep.mubr.msk.f32.mxu1 %vm7779_vm0, %v9701_v44 }
 0x2ed   : > { %7376 = vmatprep.subr.bf16.mxu1 %v7778_v28 }
 0x2f1   : > { %6856 = vmatmul.mubr.f32.vlgmr.msra.gmra.mrb[14].mxu0 %v8942_v47 }
 0x2f2   : > { %7396 = vmatpush3.bf16.msra.mxu0 %v9174_v30  ;;  %6814 = vmatmul.mubr.f32.vlgmr.msra.gmra.mrb[12].mxu1 %v8942_v47 }
 0x2f3   : > { %7378 = vmatpush3.bf16.msra.mxu1 %v9178_v49  ;;  %6862 = vmatprep.mubr.msk.f32.mxu0 %vm7779_vm0, %v9701_v44 }
 0x2f4   : > { %7397 = vmatprep.subr.bf16.mxu0 %v7778_v28  ;;  %6820 = vmatprep.mubr.msk.f32.mxu1 %vm7779_vm0, %v9701_v44 }
 0x2f5   : > { %7379 = vmatprep.subr.bf16.mxu1 %v7778_v28 }
 0x2f9   : > { %6863 = vmatmul.mubr.f32.vlgmr.msra.gmra.mrb[14].mxu0 %v8936_v52 }
 0x2fa   : > { %7399 = vmatpush3.bf16.msra.mxu0 %v9097_v29  ;;  %6821 = vmatmul.mubr.f32.vlgmr.msra.gmra.mrb[12].mxu1 %v8936_v52 }
 0x2fb   : > { %7381 = vmatpush3.bf16.msra.mxu1 %v9092_v13  ;;  %6869 = vmatprep.mubr.msk.f32.mxu0 %vm7779_vm0, %v9701_v44 }
 0x2fc   : > { %6827 = vmatprep.mubr.msk.f32.mxu1 %vm7779_vm0, %v9701_v44 }
 0x301   : > { %6870 = vmatmul.mubr.f32.vlgmr.msra.gmra.mrb[14].mxu0 %v8936_v52 }
 0x302   : > { %6828 = vmatmul.mubr.f32.vlgmr.msra.gmra.mrb[12].mxu1 %v8936_v52 }
 0x34d   : > { %v2655_v28 = vpop.f32.mrb[4].mxu1 }
 0x34e   : > { %v5886_v54 = vmax.f32 %v2655_v28, 0.0  ;;  %v6577_v47 = vpop.f32.mrb[5].mxu1 }
 0x350   : > { %5894 = vst [vmem:[%s9405_s25] sm:$0xff] %v5886_v54  ;;  %v3116_v53 = vpop.f32.mrb[8].mxu0 }
 0x351   : > { %v6619_v55 = vpop.f32.mrb[9].mxu0  ;;  %v2734_v62 = vpop.f32.mrb[6].mxu1 }
 0x352   : > { %v7400_v32 = vadd.f32 %v3116_v53, %v2734_v62  ;;  %v6584_v44 = vpop.f32.mrb[7].mxu1 }
 0x354   : > { %v5887_v9 = vmax.f32 %v7400_v32, 0.0 }
 0x356   : > { %5895 = vst [vmem:[%s9405_s25 + $0x8] sm:$0xff] %v5887_v9 }
 0x37c   : > { %v4038_v52 = vpop.f32.mrb[10].mxu0 }
 0x37d   : > { %v5889_v33 = vmax.f32 %v4038_v52, 0.0  ;;  %v6703_v18 = vpop.f32.mrb[11].mxu0  ;;  %v3577_v2 = vpop.f32.mrb[8].mxu1 }
 0x37e   : > { %v5888_v3 = vmax.f32 %v3577_v2, 0.0  ;;  %v6661_v61 = vpop.f32.mrb[9].mxu1 }
 0x37f   : > { %5897 = vst [vmem:[%s9405_s25 + $0x18] sm:$0xff] %v5889_v33 }
 0x380   : > { %5896 = vst [vmem:[%s9405_s25 + $0x10] sm:$0xff] %v5888_v3 }
 0x3a8   : > { %v4960_v60 = vpop.f32.mrb[12].mxu0 }
 0x3a9   : > { %v5891_v8 = vmax.f32 %v4960_v60, 0.0  ;;  %v6787_v25 = vpop.f32.mrb[13].mxu0  ;;  %v4499_v35 = vpop.f32.mrb[10].mxu1 }
 0x3aa   : > { %v5890_v51 = vmax.f32 %v4499_v35, 0.0  ;;  %v6745_v1 = vpop.f32.mrb[11].mxu1 }
 0x3ab   : > { %5899 = vst [vmem:[%s9405_s25 + $0x28] sm:$0xff] %v5891_v8 }
 0x3ac   : > { %5898 = vst [vmem:[%s9405_s25 + $0x20] sm:$0xff] %v5890_v51 }
 0x3d4   : > { %v5882_v0 = vpop.f32.mrb[14].mxu0 }
 0x3d5   : > { %v5893_v40 = vmax.f32 %v5882_v0, 0.0  ;;  %v6871_v13 = vpop.f32.mrb[15].mxu0  ;;  %v5421_v59 = vpop.f32.mrb[12].mxu1 }
 0x3d6   : > { %v5892_v29 = vmax.f32 %v5421_v59, 0.0  ;;  %v6829_v57 = vpop.f32.mrb[13].mxu1 }
 0x3d7   : > { %5901 = vst [vmem:[%s9405_s25 + $0x38] sm:$0xff] %v5893_v40 }
 0x3d8   : > { %5900 = vst [vmem:[%s9405_s25 + $0x30] sm:$0xff] %v5892_v29 }
 0x3d9   : > { %7709 = shalt.err (!%p7706_p6)
}
 0x3da   : > { %s7710_s29 = scalar_lea.hbm %s9420_s14, 1024  ;;  %s7714_s12 = scalar_lea.hbm %s9470_s4, 2048 }
 0x3db   : > { %p7711_p8 = scmp.ne.s32.totalorder %s9420_s14, %s7710_s29  ;;  %p7715_p4 = scmp.lt.u32.totalorder %s9420_s14, %s9470_s4 }
 0x3dc   : > { %p7716_p11 = scmp.lt.u32.totalorder %s7714_s12, %s7710_s29  ;;  %p7718_p3 = scmp.lt.u32.totalorder %s7710_s29, %s9420_s14 }
 0x3dd   : > { %p7712_p10 = pnand %p7711_p8, %p7902_p12 }
 0x3de   : > { %p7717_p13 = por %p7716_p11, %p7715_p4 }
 0x3df   : > { %p7713_p0 = pneg %p7712_p10 }
 0x3e0   : > { %p7719_p7 = por %p7718_p3, %p7717_p13 }
 0x3e2   : > { %p7720_p9 = pnand %p7719_p7, %p7713_p0 }
 0x3e4   : > { %7723 = shalt.err (!%p7720_p9)
}
 0x3e5   : > { %s7781_s9 = smov 128   ;;  %s7782_s20 = smov 8  }
 0x3e6   : > { %7547 = dma.vmem_to_hbm [thread:$0]  (%p7902_p12), %s9415_s8, 1024, %s9420_s14, %s5903_s7, %s7781_s9, %s7781_s9, %s7782_s20  }
 0x3e7 PF: > { %s5931_s25 = sand.u32 1, %s7758_s15   ;;  %p9828_p1 = scmp.ne.s32.totalorder %s9642_s22, 0 }
 0x3e8   : > { %p9829_p5 = scmp.ge.s32.totalorder %s7770_s18, 2  ;;  %s5932_s11 = scalar_lea.sflag [#allocation4], %s5931_s25 }
 0x3ea   : > { %p7561_p2 = pnand %p9829_p5, %p9828_p1 }
 0x3ec   : > { %7753 = dma.done.wait (!%p7561_p2), %s5932_s11, 1024  }
 0x3ed   : > { %7755 = vsyncadd (!%p7561_p2), %s5932_s11, 4294966272  ;;  %p20_p6 = scmp.ge.s32.totalorder %s7864_s27, 4   ;;  %s9830_s15 = smov %s7762_s16 }
 0x3ee   : > { %s9831_s16 = smov %s7766_s17  ;;  %s9832_s17 = smov %s7898_s24 }
 0x3ef   : > { %s9833_s18 = smov %s7864_s27  ;;  %22 = sbr.rel (!%p20_p6) target bundleno = 10 (0xa), region = 100 }
 0x3f6   :  { %5937 = vsyncpa [#allocation3], 1 }
 0x3f7   :  { %5939 = vsyncpa [#allocation3 + $0x1], 1 }
 0x3f8   :  { %5940 = vsyncpa [#allocation6], 1 }
 0x3f9   :  { %5942 = vsyncpa [#allocation6 + $0x1], 1 }
 0x3fa   :  { %5943 = vsyncpa [#allocation4], 1 }
 0x3fb   :  { %5945 = vsyncpa [#allocation4 + $0x1], 1 }

</bundles_post_ra>
